<compile_context>
chip_gen: v7x
topology: tpu7x:2x2x1
jax: 0.10.0
libtpu: 0.0.40
codegen_flags: <defaults>
</compile_context>

<pallas_src>
import jax
import jax.numpy as jnp
from jax.experimental import pallas as pl
from jax.experimental.pallas import tpu as pltpu


# ----------------------------------------------------------------------------
# Kernel: single invocation, in-kernel unrolled time loop.
# Inputs : x_flat (T*B, I), wx_cat (I, 4H), wh_cat (H, 4H), b_cat (1, 4H),
#          wfc_row (1, H), bfc (1,) [SMEM]
# Outputs: y_slab (T*B, 128), gates_all (T, B, 4H), ct_slab (B, CT_LANES)
# Scratch: xp_scr (T*B, 4H)  -- hoisted input projection
#          h_scr  (T*B, H)   -- hidden-state history (never leaves VMEM)
# ----------------------------------------------------------------------------
def sinenet_kernel(x_ref, wx_ref, wh_ref, b_ref, wfc_ref, bfc_ref,
                   y_ref, gates_ref, ct_ref, xp_scr, h_scr):
    T, B, H4 = gates_ref.shape            # 4H (= 128 for H=32 -> full lane width)
    H = wh_ref.shape[0]
    TB = xp_scr.shape[0]

    # ---- hoisted input projection: ONE (T*B, I) @ (I, 4H) matmul, bias folded.
    xp_scr[...] = (
        jnp.dot(x_ref[...], wx_ref[...], preferred_element_type=jnp.float32)
        + b_ref[...])

    wh = wh_ref[...]                       # hoist weight load out of the loop

    # Lane mask selecting the candidate-gate (sine) lanes [2H, 3H).
    lane = jax.lax.broadcasted_iota(jnp.int32, (B, H4), 1)
    g_mask = (lane >= 2 * H) & (lane < 3 * H)

    def step(t, carry):
        h, c = carry
        off = pl.multiple_of(t * B, B)
        # One fused-gate matmul per step: (B, H) @ (H, 4H).
        pre = xp_scr[pl.ds(off, B), :] + jnp.dot(
            h, wh, preferred_element_type=jnp.float32)          # (B, 4H)
        act = jnp.where(g_mask, jnp.sin(pre), jax.nn.sigmoid(pre))
        gates_ref[t] = act                 # single lane-dense 128-wide store

        ft = act[:, 0 * H:1 * H]
        it = act[:, 1 * H:2 * H]
        gt = act[:, 2 * H:3 * H]           # candidate gate (sine activation)
        ot = act[:, 3 * H:4 * H]

        c_new = ft * c + it * gt
        h_new = ot * jnp.sin(c_new)
        h_scr[pl.ds(off, B), :] = h_new    # VMEM scratch only (no HBM traffic)
        return h_new, c_new

    h0 = jnp.zeros((B, H), jnp.float32)
    c0 = jnp.zeros((B, H), jnp.float32)
    _, c_final = jax.lax.fori_loop(0, T, step, (h0, c0), unroll=True)

    # ---- final cell state, written once, lane-dense (tiled across lanes). ----
    reps = ct_ref.shape[-1] // H
    ct_ref[...] = jnp.tile(c_final, (1, reps))

    # ---- fco head (out_features == 1): VPU multiply + lane reduce, once. ----
    y_col = (jnp.sum(h_scr[...] * wfc_ref[...], axis=-1, keepdims=True)
             + bfc_ref[0])                 # bfc: scalar read from SMEM
    # Lane-dense writeback: broadcast value across all 128 lanes; wrapper
    # slices [:, :1].  Unmasked full-width store instead of lane-1 vst.msk.
    y_ref[...] = jnp.broadcast_to(y_col, y_ref.shape)


PARAM_ORDER_GATES = [("wfx", "wfh", "bf"),
                     ("wix", "wih", "bi"),
                     ("wgx", "wgh", "bg"),
                     ("wox", "woh", "bo")]


@jax.jit
def sinenet_forward(x, params):
    T, B, I = x.shape
    H = params["wfh"].shape[0]
    H4 = 4 * H
    Y_LANES = 128
    ct_reps = (Y_LANES // H) if (Y_LANES % H == 0) else 1
    CT_LANES = ct_reps * H

    # TODO(synk): VMEM scaling guardrail — for large T*B (tens of thousands of
    # rows) the whole-sequence xp/gates/h slabs below must be re-tiled over an
    # 'arbitrary' time-grid axis with h/c carried in persistent scratch; the
    # ceiling arrives 2x sooner on v7x (64 MiB VMEM) than on v5e/v6e.
    assert T * B * (H4 * 3 + H + Y_LANES) * 4 < 8 * 1024 * 1024, (
        "sequence too large for single-slab kernel; re-tile over T")

    # Fuse per-gate weights along the output (lane) dimension: [f, i, g, o].
    wx_cat = jnp.concatenate([params[n] for n, _, _ in PARAM_ORDER_GATES], axis=1)
    wh_cat = jnp.concatenate([params[n] for _, n, _ in PARAM_ORDER_GATES], axis=1)
    b_cat = jnp.concatenate([params[n] for _, _, n in PARAM_ORDER_GATES], axis=1)
    wfc_row = params["wfc"].reshape(1, H)
    bfc = params["bfc"].reshape(-1)        # (1,) scalar, lives in SMEM
    x_flat = x.reshape(T * B, I)

    out_shapes = (
        jax.ShapeDtypeStruct((T * B, Y_LANES), jnp.float32),   # fco head, lane-dense
        jax.ShapeDtypeStruct((T, B, H4), jnp.float32),         # fused gate activations
        jax.ShapeDtypeStruct((B, CT_LANES), jnp.float32),      # ct, lane-dense
    )

    fn = pl.pallas_call(
        sinenet_kernel,
        out_shape=out_shapes,
        grid_spec=pltpu.PrefetchScalarGridSpec(
            num_scalar_prefetch=0,
            grid=(1,),
            in_specs=[
                pl.BlockSpec((T * B, I), lambda i: (0, 0)),
                pl.BlockSpec((I, H4), lambda i: (0, 0)),
                pl.BlockSpec((H, H4), lambda i: (0, 0)),
                pl.BlockSpec((1, H4), lambda i: (0, 0)),
                pl.BlockSpec((1, H), lambda i: (0, 0)),
                pl.BlockSpec(memory_space=pltpu.MemorySpace.SMEM),  # bfc scalar
            ],
            out_specs=[
                pl.BlockSpec((T * B, Y_LANES), lambda i: (0, 0)),
                pl.BlockSpec((T, B, H4), lambda i: (0, 0, 0)),
                pl.BlockSpec((B, CT_LANES), lambda i: (0, 0)),
            ],
            scratch_shapes=[
                pltpu.VMEM((T * B, H4), jnp.float32),   # hoisted x-projection
                pltpu.VMEM((T * B, H), jnp.float32),    # hidden-state history
            ],
        ),
        compiler_params=pltpu.CompilerParams(
            dimension_semantics=("arbitrary",)),
    )

    y_slab, gates_all, ct_slab = fn(x_flat, wx_cat, wh_cat, b_cat, wfc_row, bfc)

    output = y_slab[:, :1].reshape(T, B, 1)
    ct = ct_slab[:, :H]

    # Split the fused, lane-dense gate slab (cheap XLA slices under jit).
    ft = gates_all[:, :, 0 * H:1 * H]
    it = gates_all[:, :, 1 * H:2 * H]
    ot = gates_all[:, :, 3 * H:4 * H]

    f_weights = (params["wfx"], params["wfh"], params["bf"])
    i_weights = (params["wix"], params["wih"], params["bi"])
    o_weights = (params["wox"], params["woh"], params["bo"])
    # mirrors: return (output, ct, gates, f_weights, i_weights, o_weights)
    return output, ct, (ft, it, ot), f_weights, i_weights, o_weights


# ----------------------------------------------------------------------------
# Pure-JAX reference (correctness check only).
# ----------------------------------------------------------------------------
def sinenet_ref(x, p):
    T, B, I = x.shape
    H = p["wfh"].shape[0]
    h0 = jnp.zeros((B, H), jnp.float32)
    c0 = jnp.zeros((B, H), jnp.float32)

    def step(carry, x_t):
        h, c = carry
        ft = jax.nn.sigmoid(x_t @ p["wfx"] + h @ p["wfh"] + p["bf"])
        it = jax.nn.sigmoid(x_t @ p["wix"] + h @ p["wih"] + p["bi"])
        gt = jnp.sin(x_t @ p["wgx"] + h @ p["wgh"] + p["bg"])
        ot = jax.nn.sigmoid(x_t @ p["wox"] + h @ p["woh"] + p["bo"])
        c_new = ft * c + it * gt
        h_new = ot * jnp.sin(c_new)
        return (h_new, c_new), (h_new, ft, it, ot)

    (_, c_final), (hs, fts, its, ots) = jax.lax.scan(step, (h0, c0), x)
    y = hs @ p["wfc"] + p["bfc"]
    return y, c_final, (fts, its, ots)


def make_params(key, input_size, hidden_size):
    ks = jax.random.split(key, 14)
    s = 0.1
    p = {}
    names_shapes = [
        ("wfx", (input_size, hidden_size)), ("wfh", (hidden_size, hidden_size)), ("bf", (1, hidden_size)),
        ("wix", (input_size, hidden_size)), ("wih", (hidden_size, hidden_size)), ("bi", (1, hidden_size)),
        ("wgx", (input_size, hidden_size)), ("wgh", (hidden_size, hidden_size)), ("bg", (1, hidden_size)),
        ("wox", (input_size, hidden_size)), ("woh", (hidden_size, hidden_size)), ("bo", (1, hidden_size)),
        ("wfc", (hidden_size, 1)), ("bfc", (1, 1)),
    ]
    for k, (name, shape) in zip(ks, names_shapes):
        p[name] = (s * jax.random.normal(k, shape)).astype(jnp.float32)
    return p


if __name__ == "__main__":
    T, B, I, H = 8, 8, 4, 32   # seq=8, batch=8, input_size=4, hidden_size=32

    key = jax.random.PRNGKey(0)
    kx, kp = jax.random.split(key)
    x = jax.random.normal(kx, (T, B, I), dtype=jnp.float32)
    params = make_params(kp, I, H)

    output, ct, gates, f_w, i_w, o_w = sinenet_forward(x, params)
    jax.block_until_ready((output, ct, gates))

    # correctness check vs pure-JAX reference
    y_ref, ct_ref, gates_ref = sinenet_ref(x, params)
    assert jnp.allclose(output, y_ref, atol=1e-5, rtol=1e-5)
    assert jnp.allclose(ct, ct_ref, atol=1e-5, rtol=1e-5)
    for g, gr in zip(gates, gates_ref):
        assert jnp.allclose(g, gr, atol=1e-5, rtol=1e-5)

    print("KERNEL_OK")
</pallas_src>

<mosaic_0001>
module attributes {stable_mosaic.version = 11 : i64} {
  func.func @sinenet_kernel(%arg0: i32, %arg1: memref<64x4xf32, #tpu.memory_space<vmem>>, %arg2: memref<4x128xf32, #tpu.memory_space<vmem>>, %arg3: memref<32x128xf32, #tpu.memory_space<vmem>>, %arg4: memref<1x128xf32, #tpu.memory_space<vmem>>, %arg5: memref<1x32xf32, #tpu.memory_space<vmem>>, %arg6: memref<1xf32, #tpu.memory_space<smem>>, %arg7: memref<64x128xf32, #tpu.memory_space<vmem>>, %arg8: memref<8x8x128xf32, #tpu.memory_space<vmem>>, %arg9: memref<8x128xf32, #tpu.memory_space<vmem>>, %arg10: memref<64x128xf32, #tpu.memory_space<vmem>>, %arg11: memref<64x32xf32, #tpu.memory_space<vmem>>) attributes {dimension_semantics = [#tpu.dimension_semantics<arbitrary>], iteration_bounds = array<i64: 1>, scalar_prefetch = 0 : i64, scratch_operands = 2 : i64, tpu.core_type = #tpu.core_type<tc>, window_params = [{pipeline_mode = #tpu.pipeline_mode<synchronous>, transform_indices = @transform_0, window_bounds = array<i64: 64, 4>}, {pipeline_mode = #tpu.pipeline_mode<synchronous>, transform_indices = @transform_1, window_bounds = array<i64: 4, 128>}, {pipeline_mode = #tpu.pipeline_mode<synchronous>, transform_indices = @transform_2, window_bounds = array<i64: 32, 128>}, {pipeline_mode = #tpu.pipeline_mode<synchronous>, transform_indices = @transform_3, window_bounds = array<i64: 1, 128>}, {pipeline_mode = #tpu.pipeline_mode<synchronous>, transform_indices = @transform_4, window_bounds = array<i64: 1, 32>}, {transform_indices = @transform_5, window_bounds = array<i64: 1>}, {pipeline_mode = #tpu.pipeline_mode<synchronous>, transform_indices = @transform_6, window_bounds = array<i64: 64, 128>}, {pipeline_mode = #tpu.pipeline_mode<synchronous>, transform_indices = @transform_7, window_bounds = array<i64: 8, 8, 128>}, {pipeline_mode = #tpu.pipeline_mode<synchronous>, transform_indices = @transform_8, window_bounds = array<i64: 8, 128>}]} {
    %c0 = arith.constant 0 : index
    %c0_0 = arith.constant 0 : index
    %0 = vector.load %arg1[%c0, %c0_0] : memref<64x4xf32, #tpu.memory_space<vmem>>, vector<64x4xf32>
    %c0_1 = arith.constant 0 : index
    %c0_2 = arith.constant 0 : index
    %1 = vector.load %arg2[%c0_1, %c0_2] : memref<4x128xf32, #tpu.memory_space<vmem>>, vector<4x128xf32>
    %cst = arith.constant dense<0.000000e+00> : vector<64x128xf32>
    %2 = tpu.matmul %0, %1, %cst {dimension_numbers = #tpu.dot_dimension_numbers<[1], [0], [0], [1], [0, 0, 1, 1], [], []>} : vector<64x4xf32>, vector<4x128xf32>, vector<64x128xf32> -> vector<64x128xf32>
    %c0_3 = arith.constant 0 : index
    %c0_4 = arith.constant 0 : index
    %3 = vector.load %arg4[%c0_3, %c0_4] : memref<1x128xf32, #tpu.memory_space<vmem>>, vector<1x128xf32>
    %4 = vector.broadcast %3 : vector<1x128xf32> to vector<64x128xf32>
    %5 = arith.addf %2, %4 : vector<64x128xf32>
    %c0_5 = arith.constant 0 : index
    %c0_6 = arith.constant 0 : index
    %6 = vector.load %arg10[%c0_5, %c0_6] : memref<64x128xf32, #tpu.memory_space<vmem>>, vector<64x128xf32>
    tpu.vector_store %arg10[%c0_5, %c0_6], %5 {strides = array<i32>} : memref<64x128xf32, #tpu.memory_space<vmem>>, vector<64x128xf32>,
    %c0_7 = arith.constant 0 : index
    %c0_8 = arith.constant 0 : index
    %7 = vector.load %arg3[%c0_7, %c0_8] : memref<32x128xf32, #tpu.memory_space<vmem>>, vector<32x128xf32>
    %8 = tpu.iota {dimensions = array<i32: 1>} : vector<8x128xi32>
    %c64_i32 = arith.constant 64 : i32
    %9 = vector.broadcast %c64_i32 : i32 to vector<8x128xi32>
    %10 = arith.cmpi sge, %8, %9 : vector<8x128xi32>
    %c96_i32 = arith.constant 96 : i32
    %11 = vector.broadcast %c96_i32 : i32 to vector<8x128xi32>
    %12 = arith.cmpi slt, %8, %11 : vector<8x128xi32>
    %13 = arith.andi %10, %12 : vector<8x128xi1>
    %cst_9 = arith.constant 0.000000e+00 : f32
    %14 = vector.broadcast %cst_9 : f32 to vector<8x32xf32>
    %cst_10 = arith.constant 0.000000e+00 : f32
    %15 = vector.broadcast %cst_10 : f32 to vector<8x32xf32>
    %c0_i32 = arith.constant 0 : i32
    %c8_i32 = arith.constant 8 : i32
    %16 = arith.muli %c0_i32, %c8_i32 : i32
    %17 = tpu.assume_multiple %16, 8 : i32
    %18 = arith.index_cast %17 : i32 to index
    %c0_11 = arith.constant 0 : index
    %19 = vector.load %arg10[%18, %c0_11] : memref<64x128xf32, #tpu.memory_space<vmem>>, vector<8x128xf32>
    %cst_12 = arith.constant dense<0.000000e+00> : vector<8x128xf32>
    %20 = tpu.matmul %14, %7, %cst_12 {dimension_numbers = #tpu.dot_dimension_numbers<[1], [0], [0], [1], [0, 0, 1, 1], [], []>} : vector<8x32xf32>, vector<32x128xf32>, vector<8x128xf32> -> vector<8x128xf32>
    %21 = arith.addf %19, %20 : vector<8x128xf32>
    %22 = math.sin %21 : vector<8x128xf32>
    %23 = arith.negf %21 : vector<8x128xf32>
    %24 = math.exp %23 : vector<8x128xf32>
    %cst_13 = arith.constant 1.000000e+00 : f32
    %25 = vector.broadcast %cst_13 : f32 to vector<8x128xf32>
    %26 = arith.addf %25, %24 : vector<8x128xf32>
    %27 = arith.divf %25, %26 : vector<8x128xf32>
    %28 = arith.select %13, %22, %27 : vector<8x128xi1>, vector<8x128xf32>
    %29 = arith.index_cast %c0_i32 : i32 to index
    %c0_14 = arith.constant 0 : index
    %c0_15 = arith.constant 0 : index
    %30 = vector.load %arg8[%29, %c0_14, %c0_15] : memref<8x8x128xf32, #tpu.memory_space<vmem>>, vector<1x8x128xf32>
    %31 = vector.shape_cast %30 : vector<1x8x128xf32> to vector<8x128xf32>
    %32 = vector.shape_cast %28 : vector<8x128xf32> to vector<1x8x128xf32>
    tpu.vector_store %arg8[%29, %c0_14, %c0_15], %32 {strides = array<i32>} : memref<8x8x128xf32, #tpu.memory_space<vmem>>, vector<1x8x128xf32>,
    %33 = vector.extract_strided_slice %28 {offsets = [0, 0], sizes = [8, 32], strides = [1, 1]} : vector<8x128xf32> to vector<8x32xf32>
    %34 = vector.extract_strided_slice %28 {offsets = [0, 32], sizes = [8, 32], strides = [1, 1]} : vector<8x128xf32> to vector<8x32xf32>
    %35 = vector.extract_strided_slice %28 {offsets = [0, 64], sizes = [8, 32], strides = [1, 1]} : vector<8x128xf32> to vector<8x32xf32>
    %36 = vector.extract_strided_slice %28 {offsets = [0, 96], sizes = [8, 32], strides = [1, 1]} : vector<8x128xf32> to vector<8x32xf32>
    %37 = arith.mulf %33, %15 : vector<8x32xf32>
    %38 = arith.mulf %34, %35 : vector<8x32xf32>
    %39 = arith.addf %37, %38 : vector<8x32xf32>
    %40 = math.sin %39 : vector<8x32xf32>
    %41 = arith.mulf %36, %40 : vector<8x32xf32>
    %42 = arith.index_cast %17 : i32 to index
    %c0_16 = arith.constant 0 : index
    %43 = vector.load %arg11[%42, %c0_16] : memref<64x32xf32, #tpu.memory_space<vmem>>, vector<8x32xf32>
    tpu.vector_store %arg11[%42, %c0_16], %41 {strides = array<i32>} : memref<64x32xf32, #tpu.memory_space<vmem>>, vector<8x32xf32>,
    %c1_i32 = arith.constant 1 : i32
    %c8_i32_17 = arith.constant 8 : i32
    %44 = arith.muli %c1_i32, %c8_i32_17 : i32
    %45 = tpu.assume_multiple %44, 8 : i32
    %46 = arith.index_cast %45 : i32 to index
    %c0_18 = arith.constant 0 : index
    %47 = vector.load %arg10[%46, %c0_18] : memref<64x128xf32, #tpu.memory_space<vmem>>, vector<8x128xf32>
    %cst_19 = arith.constant dense<0.000000e+00> : vector<8x128xf32>
    %48 = tpu.matmul %41, %7, %cst_19 {dimension_numbers = #tpu.dot_dimension_numbers<[1], [0], [0], [1], [0, 0, 1, 1], [], []>} : vector<8x32xf32>, vector<32x128xf32>, vector<8x128xf32> -> vector<8x128xf32>
    %49 = arith.addf %47, %48 : vector<8x128xf32>
    %50 = math.sin %49 : vector<8x128xf32>
    %51 = arith.negf %49 : vector<8x128xf32>
    %52 = math.exp %51 : vector<8x128xf32>
    %cst_20 = arith.constant 1.000000e+00 : f32
    %53 = vector.broadcast %cst_20 : f32 to vector<8x128xf32>
    %54 = arith.addf %53, %52 : vector<8x128xf32>
    %55 = arith.divf %53, %54 : vector<8x128xf32>
    %56 = arith.select %13, %50, %55 : vector<8x128xi1>, vector<8x128xf32>
    %57 = arith.index_cast %c1_i32 : i32 to index
    %c0_21 = arith.constant 0 : index
    %c0_22 = arith.constant 0 : index
    %58 = vector.load %arg8[%57, %c0_21, %c0_22] : memref<8x8x128xf32, #tpu.memory_space<vmem>>, vector<1x8x128xf32>
    %59 = vector.shape_cast %58 : vector<1x8x128xf32> to vector<8x128xf32>
    %60 = vector.shape_cast %56 : vector<8x128xf32> to vector<1x8x128xf32>
    tpu.vector_store %arg8[%57, %c0_21, %c0_22], %60 {strides = array<i32>} : memref<8x8x128xf32, #tpu.memory_space<vmem>>, vector<1x8x128xf32>,
    %61 = vector.extract_strided_slice %56 {offsets = [0, 0], sizes = [8, 32], strides = [1, 1]} : vector<8x128xf32> to vector<8x32xf32>
    %62 = vector.extract_strided_slice %56 {offsets = [0, 32], sizes = [8, 32], strides = [1, 1]} : vector<8x128xf32> to vector<8x32xf32>
    %63 = vector.extract_strided_slice %56 {offsets = [0, 64], sizes = [8, 32], strides = [1, 1]} : vector<8x128xf32> to vector<8x32xf32>
    %64 = vector.extract_strided_slice %56 {offsets = [0, 96], sizes = [8, 32], strides = [1, 1]} : vector<8x128xf32> to vector<8x32xf32>
    %65 = arith.mulf %61, %39 : vector<8x32xf32>
    %66 = arith.mulf %62, %63 : vector<8x32xf32>
    %67 = arith.addf %65, %66 : vector<8x32xf32>
    %68 = math.sin %67 : vector<8x32xf32>
    %69 = arith.mulf %64, %68 : vector<8x32xf32>
    %70 = arith.index_cast %45 : i32 to index
    %c0_23 = arith.constant 0 : index
    %71 = vector.load %arg11[%70, %c0_23] : memref<64x32xf32, #tpu.memory_space<vmem>>, vector<8x32xf32>
    tpu.vector_store %arg11[%70, %c0_23], %69 {strides = array<i32>} : memref<64x32xf32, #tpu.memory_space<vmem>>, vector<8x32xf32>,
    %c2_i32 = arith.constant 2 : i32
    %c8_i32_24 = arith.constant 8 : i32
    %72 = arith.muli %c2_i32, %c8_i32_24 : i32
    %73 = tpu.assume_multiple %72, 8 : i32
    %74 = arith.index_cast %73 : i32 to index
    %c0_25 = arith.constant 0 : index
    %75 = vector.load %arg10[%74, %c0_25] : memref<64x128xf32, #tpu.memory_space<vmem>>, vector<8x128xf32>
    %cst_26 = arith.constant dense<0.000000e+00> : vector<8x128xf32>
    %76 = tpu.matmul %69, %7, %cst_26 {dimension_numbers = #tpu.dot_dimension_numbers<[1], [0], [0], [1], [0, 0, 1, 1], [], []>} : vector<8x32xf32>, vector<32x128xf32>, vector<8x128xf32> -> vector<8x128xf32>
    %77 = arith.addf %75, %76 : vector<8x128xf32>
    %78 = math.sin %77 : vector<8x128xf32>
    %79 = arith.negf %77 : vector<8x128xf32>
    %80 = math.exp %79 : vector<8x128xf32>
    %cst_27 = arith.constant 1.000000e+00 : f32
    %81 = vector.broadcast %cst_27 : f32 to vector<8x128xf32>
    %82 = arith.addf %81, %80 : vector<8x128xf32>
    %83 = arith.divf %81, %82 : vector<8x128xf32>
    %84 = arith.select %13, %78, %83 : vector<8x128xi1>, vector<8x128xf32>
    %85 = arith.index_cast %c2_i32 : i32 to index
    %c0_28 = arith.constant 0 : index
    %c0_29 = arith.constant 0 : index
    %86 = vector.load %arg8[%85, %c0_28, %c0_29] : memref<8x8x128xf32, #tpu.memory_space<vmem>>, vector<1x8x128xf32>
    %87 = vector.shape_cast %86 : vector<1x8x128xf32> to vector<8x128xf32>
    %88 = vector.shape_cast %84 : vector<8x128xf32> to vector<1x8x128xf32>
    tpu.vector_store %arg8[%85, %c0_28, %c0_29], %88 {strides = array<i32>} : memref<8x8x128xf32, #tpu.memory_space<vmem>>, vector<1x8x128xf32>,
    %89 = vector.extract_strided_slice %84 {offsets = [0, 0], sizes = [8, 32], strides = [1, 1]} : vector<8x128xf32> to vector<8x32xf32>
    %90 = vector.extract_strided_slice %84 {offsets = [0, 32], sizes = [8, 32], strides = [1, 1]} : vector<8x128xf32> to vector<8x32xf32>
    %91 = vector.extract_strided_slice %84 {offsets = [0, 64], sizes = [8, 32], strides = [1, 1]} : vector<8x128xf32> to vector<8x32xf32>
    %92 = vector.extract_strided_slice %84 {offsets = [0, 96], sizes = [8, 32], strides = [1, 1]} : vector<8x128xf32> to vector<8x32xf32>
    %93 = arith.mulf %89, %67 : vector<8x32xf32>
    %94 = arith.mulf %90, %91 : vector<8x32xf32>
    %95 = arith.addf %93, %94 : vector<8x32xf32>
    %96 = math.sin %95 : vector<8x32xf32>
    %97 = arith.mulf %92, %96 : vector<8x32xf32>
    %98 = arith.index_cast %73 : i32 to index
    %c0_30 = arith.constant 0 : index
    %99 = vector.load %arg11[%98, %c0_30] : memref<64x32xf32, #tpu.memory_space<vmem>>, vector<8x32xf32>
    tpu.vector_store %arg11[%98, %c0_30], %97 {strides = array<i32>} : memref<64x32xf32, #tpu.memory_space<vmem>>, vector<8x32xf32>,
    %c3_i32 = arith.constant 3 : i32
    %c8_i32_31 = arith.constant 8 : i32
    %100 = arith.muli %c3_i32, %c8_i32_31 : i32
    %101 = tpu.assume_multiple %100, 8 : i32
    %102 = arith.index_cast %101 : i32 to index
    %c0_32 = arith.constant 0 : index
    %103 = vector.load %arg10[%102, %c0_32] : memref<64x128xf32, #tpu.memory_space<vmem>>, vector<8x128xf32>
    %cst_33 = arith.constant dense<0.000000e+00> : vector<8x128xf32>
    %104 = tpu.matmul %97, %7, %cst_33 {dimension_numbers = #tpu.dot_dimension_numbers<[1], [0], [0], [1], [0, 0, 1, 1], [], []>} : vector<8x32xf32>, vector<32x128xf32>, vector<8x128xf32> -> vector<8x128xf32>
    %105 = arith.addf %103, %104 : vector<8x128xf32>
    %106 = math.sin %105 : vector<8x128xf32>
    %107 = arith.negf %105 : vector<8x128xf32>
    %108 = math.exp %107 : vector<8x128xf32>
    %cst_34 = arith.constant 1.000000e+00 : f32
    %109 = vector.broadcast %cst_34 : f32 to vector<8x128xf32>
    %110 = arith.addf %109, %108 : vector<8x128xf32>
    %111 = arith.divf %109, %110 : vector<8x128xf32>
    %112 = arith.select %13, %106, %111 : vector<8x128xi1>, vector<8x128xf32>
    %113 = arith.index_cast %c3_i32 : i32 to index
    %c0_35 = arith.constant 0 : index
    %c0_36 = arith.constant 0 : index
    %114 = vector.load %arg8[%113, %c0_35, %c0_36] : memref<8x8x128xf32, #tpu.memory_space<vmem>>, vector<1x8x128xf32>
    %115 = vector.shape_cast %114 : vector<1x8x128xf32> to vector<8x128xf32>
    %116 = vector.shape_cast %112 : vector<8x128xf32> to vector<1x8x128xf32>
    tpu.vector_store %arg8[%113, %c0_35, %c0_36], %116 {strides = array<i32>} : memref<8x8x128xf32, #tpu.memory_space<vmem>>, vector<1x8x128xf32>,
    %117 = vector.extract_strided_slice %112 {offsets = [0, 0], sizes = [8, 32], strides = [1, 1]} : vector<8x128xf32> to vector<8x32xf32>
    %118 = vector.extract_strided_slice %112 {offsets = [0, 32], sizes = [8, 32], strides = [1, 1]} : vector<8x128xf32> to vector<8x32xf32>
    %119 = vector.extract_strided_slice %112 {offsets = [0, 64], sizes = [8, 32], strides = [1, 1]} : vector<8x128xf32> to vector<8x32xf32>
    %120 = vector.extract_strided_slice %112 {offsets = [0, 96], sizes = [8, 32], strides = [1, 1]} : vector<8x128xf32> to vector<8x32xf32>
    %121 = arith.mulf %117, %95 : vector<8x32xf32>
    %122 = arith.mulf %118, %119 : vector<8x32xf32>
    %123 = arith.addf %121, %122 : vector<8x32xf32>
    %124 = math.sin %123 : vector<8x32xf32>
    %125 = arith.mulf %120, %124 : vector<8x32xf32>
    %126 = arith.index_cast %101 : i32 to index
    %c0_37 = arith.constant 0 : index
    %127 = vector.load %arg11[%126, %c0_37] : memref<64x32xf32, #tpu.memory_space<vmem>>, vector<8x32xf32>
    tpu.vector_store %arg11[%126, %c0_37], %125 {strides = array<i32>} : memref<64x32xf32, #tpu.memory_space<vmem>>, vector<8x32xf32>,
    %c4_i32 = arith.constant 4 : i32
    %c8_i32_38 = arith.constant 8 : i32
    %128 = arith.muli %c4_i32, %c8_i32_38 : i32
    %129 = tpu.assume_multiple %128, 8 : i32
    %130 = arith.index_cast %129 : i32 to index
    %c0_39 = arith.constant 0 : index
    %131 = vector.load %arg10[%130, %c0_39] : memref<64x128xf32, #tpu.memory_space<vmem>>, vector<8x128xf32>
    %cst_40 = arith.constant dense<0.000000e+00> : vector<8x128xf32>
    %132 = tpu.matmul %125, %7, %cst_40 {dimension_numbers = #tpu.dot_dimension_numbers<[1], [0], [0], [1], [0, 0, 1, 1], [], []>} : vector<8x32xf32>, vector<32x128xf32>, vector<8x128xf32> -> vector<8x128xf32>
    %133 = arith.addf %131, %132 : vector<8x128xf32>
    %134 = math.sin %133 : vector<8x128xf32>
    %135 = arith.negf %133 : vector<8x128xf32>
    %136 = math.exp %135 : vector<8x128xf32>
    %cst_41 = arith.constant 1.000000e+00 : f32
    %137 = vector.broadcast %cst_41 : f32 to vector<8x128xf32>
    %138 = arith.addf %137, %136 : vector<8x128xf32>
    %139 = arith.divf %137, %138 : vector<8x128xf32>
    %140 = arith.select %13, %134, %139 : vector<8x128xi1>, vector<8x128xf32>
    %141 = arith.index_cast %c4_i32 : i32 to index
    %c0_42 = arith.constant 0 : index
    %c0_43 = arith.constant 0 : index
    %142 = vector.load %arg8[%141, %c0_42, %c0_43] : memref<8x8x128xf32, #tpu.memory_space<vmem>>, vector<1x8x128xf32>
    %143 = vector.shape_cast %142 : vector<1x8x128xf32> to vector<8x128xf32>
    %144 = vector.shape_cast %140 : vector<8x128xf32> to vector<1x8x128xf32>
    tpu.vector_store %arg8[%141, %c0_42, %c0_43], %144 {strides = array<i32>} : memref<8x8x128xf32, #tpu.memory_space<vmem>>, vector<1x8x128xf32>,
    %145 = vector.extract_strided_slice %140 {offsets = [0, 0], sizes = [8, 32], strides = [1, 1]} : vector<8x128xf32> to vector<8x32xf32>
    %146 = vector.extract_strided_slice %140 {offsets = [0, 32], sizes = [8, 32], strides = [1, 1]} : vector<8x128xf32> to vector<8x32xf32>
    %147 = vector.extract_strided_slice %140 {offsets = [0, 64], sizes = [8, 32], strides = [1, 1]} : vector<8x128xf32> to vector<8x32xf32>
    %148 = vector.extract_strided_slice %140 {offsets = [0, 96], sizes = [8, 32], strides = [1, 1]} : vector<8x128xf32> to vector<8x32xf32>
    %149 = arith.mulf %145, %123 : vector<8x32xf32>
    %150 = arith.mulf %146, %147 : vector<8x32xf32>
    %151 = arith.addf %149, %150 : vector<8x32xf32>
    %152 = math.sin %151 : vector<8x32xf32>
    %153 = arith.mulf %148, %152 : vector<8x32xf32>
    %154 = arith.index_cast %129 : i32 to index
    %c0_44 = arith.constant 0 : index
    %155 = vector.load %arg11[%154, %c0_44] : memref<64x32xf32, #tpu.memory_space<vmem>>, vector<8x32xf32>
    tpu.vector_store %arg11[%154, %c0_44], %153 {strides = array<i32>} : memref<64x32xf32, #tpu.memory_space<vmem>>, vector<8x32xf32>,
    %c5_i32 = arith.constant 5 : i32
    %c8_i32_45 = arith.constant 8 : i32
    %156 = arith.muli %c5_i32, %c8_i32_45 : i32
    %157 = tpu.assume_multiple %156, 8 : i32
    %158 = arith.index_cast %157 : i32 to index
    %c0_46 = arith.constant 0 : index
    %159 = vector.load %arg10[%158, %c0_46] : memref<64x128xf32, #tpu.memory_space<vmem>>, vector<8x128xf32>
    %cst_47 = arith.constant dense<0.000000e+00> : vector<8x128xf32>
    %160 = tpu.matmul %153, %7, %cst_47 {dimension_numbers = #tpu.dot_dimension_numbers<[1], [0], [0], [1], [0, 0, 1, 1], [], []>} : vector<8x32xf32>, vector<32x128xf32>, vector<8x128xf32> -> vector<8x128xf32>
    %161 = arith.addf %159, %160 : vector<8x128xf32>
    %162 = math.sin %161 : vector<8x128xf32>
    %163 = arith.negf %161 : vector<8x128xf32>
    %164 = math.exp %163 : vector<8x128xf32>
    %cst_48 = arith.constant 1.000000e+00 : f32
    %165 = vector.broadcast %cst_48 : f32 to vector<8x128xf32>
    %166 = arith.addf %165, %164 : vector<8x128xf32>
    %167 = arith.divf %165, %166 : vector<8x128xf32>
    %168 = arith.select %13, %162, %167 : vector<8x128xi1>, vector<8x128xf32>
    %169 = arith.index_cast %c5_i32 : i32 to index
    %c0_49 = arith.constant 0 : index
    %c0_50 = arith.constant 0 : index
    %170 = vector.load %arg8[%169, %c0_49, %c0_50] : memref<8x8x128xf32, #tpu.memory_space<vmem>>, vector<1x8x128xf32>
    %171 = vector.shape_cast %170 : vector<1x8x128xf32> to vector<8x128xf32>
    %172 = vector.shape_cast %168 : vector<8x128xf32> to vector<1x8x128xf32>
    tpu.vector_store %arg8[%169, %c0_49, %c0_50], %172 {strides = array<i32>} : memref<8x8x128xf32, #tpu.memory_space<vmem>>, vector<1x8x128xf32>,
    %173 = vector.extract_strided_slice %168 {offsets = [0, 0], sizes = [8, 32], strides = [1, 1]} : vector<8x128xf32> to vector<8x32xf32>
    %174 = vector.extract_strided_slice %168 {offsets = [0, 32], sizes = [8, 32], strides = [1, 1]} : vector<8x128xf32> to vector<8x32xf32>
    %175 = vector.extract_strided_slice %168 {offsets = [0, 64], sizes = [8, 32], strides = [1, 1]} : vector<8x128xf32> to vector<8x32xf32>
    %176 = vector.extract_strided_slice %168 {offsets = [0, 96], sizes = [8, 32], strides = [1, 1]} : vector<8x128xf32> to vector<8x32xf32>
    %177 = arith.mulf %173, %151 : vector<8x32xf32>
    %178 = arith.mulf %174, %175 : vector<8x32xf32>
    %179 = arith.addf %177, %178 : vector<8x32xf32>
    %180 = math.sin %179 : vector<8x32xf32>
    %181 = arith.mulf %176, %180 : vector<8x32xf32>
    %182 = arith.index_cast %157 : i32 to index
    %c0_51 = arith.constant 0 : index
    %183 = vector.load %arg11[%182, %c0_51] : memref<64x32xf32, #tpu.memory_space<vmem>>, vector<8x32xf32>
    tpu.vector_store %arg11[%182, %c0_51], %181 {strides = array<i32>} : memref<64x32xf32, #tpu.memory_space<vmem>>, vector<8x32xf32>,
    %c6_i32 = arith.constant 6 : i32
    %c8_i32_52 = arith.constant 8 : i32
    %184 = arith.muli %c6_i32, %c8_i32_52 : i32
    %185 = tpu.assume_multiple %184, 8 : i32
    %186 = arith.index_cast %185 : i32 to index
    %c0_53 = arith.constant 0 : index
    %187 = vector.load %arg10[%186, %c0_53] : memref<64x128xf32, #tpu.memory_space<vmem>>, vector<8x128xf32>
    %cst_54 = arith.constant dense<0.000000e+00> : vector<8x128xf32>
    %188 = tpu.matmul %181, %7, %cst_54 {dimension_numbers = #tpu.dot_dimension_numbers<[1], [0], [0], [1], [0, 0, 1, 1], [], []>} : vector<8x32xf32>, vector<32x128xf32>, vector<8x128xf32> -> vector<8x128xf32>
    %189 = arith.addf %187, %188 : vector<8x128xf32>
    %190 = math.sin %189 : vector<8x128xf32>
    %191 = arith.negf %189 : vector<8x128xf32>
    %192 = math.exp %191 : vector<8x128xf32>
    %cst_55 = arith.constant 1.000000e+00 : f32
    %193 = vector.broadcast %cst_55 : f32 to vector<8x128xf32>
    %194 = arith.addf %193, %192 : vector<8x128xf32>
    %195 = arith.divf %193, %194 : vector<8x128xf32>
    %196 = arith.select %13, %190, %195 : vector<8x128xi1>, vector<8x128xf32>
    %197 = arith.index_cast %c6_i32 : i32 to index
    %c0_56 = arith.constant 0 : index
    %c0_57 = arith.constant 0 : index
    %198 = vector.load %arg8[%197, %c0_56, %c0_57] : memref<8x8x128xf32, #tpu.memory_space<vmem>>, vector<1x8x128xf32>
    %199 = vector.shape_cast %198 : vector<1x8x128xf32> to vector<8x128xf32>
    %200 = vector.shape_cast %196 : vector<8x128xf32> to vector<1x8x128xf32>
    tpu.vector_store %arg8[%197, %c0_56, %c0_57], %200 {strides = array<i32>} : memref<8x8x128xf32, #tpu.memory_space<vmem>>, vector<1x8x128xf32>,
    %201 = vector.extract_strided_slice %196 {offsets = [0, 0], sizes = [8, 32], strides = [1, 1]} : vector<8x128xf32> to vector<8x32xf32>
    %202 = vector.extract_strided_slice %196 {offsets = [0, 32], sizes = [8, 32], strides = [1, 1]} : vector<8x128xf32> to vector<8x32xf32>
    %203 = vector.extract_strided_slice %196 {offsets = [0, 64], sizes = [8, 32], strides = [1, 1]} : vector<8x128xf32> to vector<8x32xf32>
    %204 = vector.extract_strided_slice %196 {offsets = [0, 96], sizes = [8, 32], strides = [1, 1]} : vector<8x128xf32> to vector<8x32xf32>
    %205 = arith.mulf %201, %179 : vector<8x32xf32>
    %206 = arith.mulf %202, %203 : vector<8x32xf32>
    %207 = arith.addf %205, %206 : vector<8x32xf32>
    %208 = math.sin %207 : vector<8x32xf32>
    %209 = arith.mulf %204, %208 : vector<8x32xf32>
    %210 = arith.index_cast %185 : i32 to index
    %c0_58 = arith.constant 0 : index
    %211 = vector.load %arg11[%210, %c0_58] : memref<64x32xf32, #tpu.memory_space<vmem>>, vector<8x32xf32>
    tpu.vector_store %arg11[%210, %c0_58], %209 {strides = array<i32>} : memref<64x32xf32, #tpu.memory_space<vmem>>, vector<8x32xf32>,
    %c7_i32 = arith.constant 7 : i32
    %c8_i32_59 = arith.constant 8 : i32
    %212 = arith.muli %c7_i32, %c8_i32_59 : i32
    %213 = tpu.assume_multiple %212, 8 : i32
    %214 = arith.index_cast %213 : i32 to index
    %c0_60 = arith.constant 0 : index
    %215 = vector.load %arg10[%214, %c0_60] : memref<64x128xf32, #tpu.memory_space<vmem>>, vector<8x128xf32>
    %cst_61 = arith.constant dense<0.000000e+00> : vector<8x128xf32>
    %216 = tpu.matmul %209, %7, %cst_61 {dimension_numbers = #tpu.dot_dimension_numbers<[1], [0], [0], [1], [0, 0, 1, 1], [], []>} : vector<8x32xf32>, vector<32x128xf32>, vector<8x128xf32> -> vector<8x128xf32>
    %217 = arith.addf %215, %216 : vector<8x128xf32>
    %218 = math.sin %217 : vector<8x128xf32>
    %219 = arith.negf %217 : vector<8x128xf32>
    %220 = math.exp %219 : vector<8x128xf32>
    %cst_62 = arith.constant 1.000000e+00 : f32
    %221 = vector.broadcast %cst_62 : f32 to vector<8x128xf32>
    %222 = arith.addf %221, %220 : vector<8x128xf32>
    %223 = arith.divf %221, %222 : vector<8x128xf32>
    %224 = arith.select %13, %218, %223 : vector<8x128xi1>, vector<8x128xf32>
    %225 = arith.index_cast %c7_i32 : i32 to index
    %c0_63 = arith.constant 0 : index
    %c0_64 = arith.constant 0 : index
    %226 = vector.load %arg8[%225, %c0_63, %c0_64] : memref<8x8x128xf32, #tpu.memory_space<vmem>>, vector<1x8x128xf32>
    %227 = vector.shape_cast %226 : vector<1x8x128xf32> to vector<8x128xf32>
    %228 = vector.shape_cast %224 : vector<8x128xf32> to vector<1x8x128xf32>
    tpu.vector_store %arg8[%225, %c0_63, %c0_64], %228 {strides = array<i32>} : memref<8x8x128xf32, #tpu.memory_space<vmem>>, vector<1x8x128xf32>,
    %229 = vector.extract_strided_slice %224 {offsets = [0, 0], sizes = [8, 32], strides = [1, 1]} : vector<8x128xf32> to vector<8x32xf32>
    %230 = vector.extract_strided_slice %224 {offsets = [0, 32], sizes = [8, 32], strides = [1, 1]} : vector<8x128xf32> to vector<8x32xf32>
    %231 = vector.extract_strided_slice %224 {offsets = [0, 64], sizes = [8, 32], strides = [1, 1]} : vector<8x128xf32> to vector<8x32xf32>
    %232 = vector.extract_strided_slice %224 {offsets = [0, 96], sizes = [8, 32], strides = [1, 1]} : vector<8x128xf32> to vector<8x32xf32>
    %233 = arith.mulf %229, %207 : vector<8x32xf32>
    %234 = arith.mulf %230, %231 : vector<8x32xf32>
    %235 = arith.addf %233, %234 : vector<8x32xf32>
    %236 = math.sin %235 : vector<8x32xf32>
    %237 = arith.mulf %232, %236 : vector<8x32xf32>
    %238 = arith.index_cast %213 : i32 to index
    %c0_65 = arith.constant 0 : index
    %239 = vector.load %arg11[%238, %c0_65] : memref<64x32xf32, #tpu.memory_space<vmem>>, vector<8x32xf32>
    tpu.vector_store %arg11[%238, %c0_65], %237 {strides = array<i32>} : memref<64x32xf32, #tpu.memory_space<vmem>>, vector<8x32xf32>,
    %c8_i32_66 = arith.constant 8 : i32
    %240 = tpu.concatenate %235, %235, %235, %235 in 1 : vector<8x32xf32>, vector<8x32xf32>, vector<8x32xf32>, vector<8x32xf32> -> vector<8x128xf32>
    %c0_67 = arith.constant 0 : index
    %c0_68 = arith.constant 0 : index
    %241 = vector.load %arg9[%c0_67, %c0_68] : memref<8x128xf32, #tpu.memory_space<vmem>>, vector<8x128xf32>
    tpu.vector_store %arg9[%c0_67, %c0_68], %240 {strides = array<i32>} : memref<8x128xf32, #tpu.memory_space<vmem>>, vector<8x128xf32>,
    %c0_69 = arith.constant 0 : index
    %c0_70 = arith.constant 0 : index
    %242 = vector.load %arg11[%c0_69, %c0_70] : memref<64x32xf32, #tpu.memory_space<vmem>>, vector<64x32xf32>
    %c0_71 = arith.constant 0 : index
    %c0_72 = arith.constant 0 : index
    %243 = vector.load %arg5[%c0_71, %c0_72] : memref<1x32xf32, #tpu.memory_space<vmem>>, vector<1x32xf32>
    %244 = vector.broadcast %243 : vector<1x32xf32> to vector<64x32xf32>
    %245 = arith.mulf %242, %244 : vector<64x32xf32>
    %cst_73 = arith.constant dense<0.000000e+00> : vector<64xf32>
    %246 = vector.multi_reduction <add>, %245, %cst_73 [1] : vector<64x32xf32> to vector<64xf32>
    %247 = vector.shape_cast %246 : vector<64xf32> to vector<64x1xf32>
    %c0_74 = arith.constant 0 : index
    %248 = memref.load %arg6[%c0_74] : memref<1xf32, #tpu.memory_space<smem>>
    %249 = vector.broadcast %248 : f32 to vector<64x1xf32>
    %250 = arith.addf %247, %249 : vector<64x1xf32>
    %251 = vector.shape_cast %250 : vector<64x1xf32> to vector<64x1xf32>
    %252 = vector.broadcast %251 : vector<64x1xf32> to vector<64x128xf32>
    %c0_75 = arith.constant 0 : index
    %c0_76 = arith.constant 0 : index
    %253 = vector.load %arg7[%c0_75, %c0_76] : memref<64x128xf32, #tpu.memory_space<vmem>>, vector<64x128xf32>
    tpu.vector_store %arg7[%c0_75, %c0_76], %252 {strides = array<i32>} : memref<64x128xf32, #tpu.memory_space<vmem>>, vector<64x128xf32>,
    return
  }
  func.func @transform_0(%arg0: i32) -> (i32, i32) {
    %c0_i32 = arith.constant 0 : i32
    %c0_i32_0 = arith.constant 0 : i32
    %c0_i32_1 = arith.constant 0 : i32
    return %c0_i32, %c0_i32_0 : i32, i32
  }
  func.func @transform_1(%arg0: i32) -> (i32, i32) {
    %c0_i32 = arith.constant 0 : i32
    %c0_i32_0 = arith.constant 0 : i32
    %c0_i32_1 = arith.constant 0 : i32
    return %c0_i32, %c0_i32_0 : i32, i32
  }
  func.func @transform_2(%arg0: i32) -> (i32, i32) {
    %c0_i32 = arith.constant 0 : i32
    %c0_i32_0 = arith.constant 0 : i32
    %c0_i32_1 = arith.constant 0 : i32
    return %c0_i32, %c0_i32_0 : i32, i32
  }
  func.func @transform_3(%arg0: i32) -> (i32, i32) {
    %c0_i32 = arith.constant 0 : i32
    %c0_i32_0 = arith.constant 0 : i32
    %c0_i32_1 = arith.constant 0 : i32
    return %c0_i32, %c0_i32_0 : i32, i32
  }
  func.func @transform_4(%arg0: i32) -> (i32, i32) {
    %c0_i32 = arith.constant 0 : i32
    %c0_i32_0 = arith.constant 0 : i32
    %c0_i32_1 = arith.constant 0 : i32
    return %c0_i32, %c0_i32_0 : i32, i32
  }
  func.func @transform_5(%arg0: i32) -> i32 {
    %c0_i32 = arith.constant 0 : i32
    %c0_i32_0 = arith.constant 0 : i32
    return %c0_i32 : i32
  }
  func.func @transform_6(%arg0: i32) -> (i32, i32) {
    %c0_i32 = arith.constant 0 : i32
    %c0_i32_0 = arith.constant 0 : i32
    %c0_i32_1 = arith.constant 0 : i32
    return %c0_i32, %c0_i32_0 : i32, i32
  }
  func.func @transform_7(%arg0: i32) -> (i32, i32, i32) {
    %c0_i32 = arith.constant 0 : i32
    %c0_i32_0 = arith.constant 0 : i32
    %c0_i32_1 = arith.constant 0 : i32
    %c0_i32_2 = arith.constant 0 : i32
    return %c0_i32, %c0_i32_0, %c0_i32_1 : i32, i32, i32
  }
  func.func @transform_8(%arg0: i32) -> (i32, i32) {
    %c0_i32 = arith.constant 0 : i32
    %c0_i32_0 = arith.constant 0 : i32
    %c0_i32_1 = arith.constant 0 : i32
    return %c0_i32, %c0_i32_0 : i32, i32
  }
}

</mosaic_0001>

<bundles_post_ra>
// kernel: sinenet_forward.1
= control target key start
LH: loop header
LB: loop body
LE: loop exit
PB: predicated region body
PF: predicated region fallthrough
CT: control target
= control target key end

     0   :  { %vm69_vm0 = vcmask 1043456   ;;  %v3304_v3 = vmov 0.0|0.0   ;;  %vm44_vm1 = vcmask 31744   ;;  %s4234_s0 = inlined_call_operand.vmem [shape: f32[64,4], index: 0, kind: input, shape index: {}]   ;;  %s4235_s1 = inlined_call_operand.vmem [shape: f32[4,128], index: 1, kind: input, shape index: {}]   ;;  %s4236_s2 = inlined_call_operand.vmem [shape: f32[32,128], index: 2, kind: input, shape index: {}]   ;;  %s4237_s3 = inlined_call_operand.vmem [shape: f32[1,128], index: 3, kind: input, shape index: {}]   ;;  %s4238_s4 = inlined_call_operand.vmem [shape: f32[1,32], index: 4, kind: input, shape index: {}]   ;;  %s4239_s5 = inlined_call_operand.<no memory space> [shape: f32[1], index: 5, kind: input, shape index: {}]   ;;  %s4240_s6 = inlined_call_operand.vmem [shape: f32[64,128], index: 6, kind: output, shape index: {0}]   ;;  %s4241_s7 = inlined_call_operand.vmem [shape: f32[8,8,128], index: 7, kind: output, shape index: {1}]   ;;  %s4242_s8 = inlined_call_operand.hbm [shape: f32[8,128], index: 8, kind: output, shape index: {2}]  }
   0x1   :  { %v186_v0 = vld [vmem:[%s4236_s2] sm:$0xff]  ;;  %v187_v1 = vld [vmem:[%s4236_s2 + $0x8] sm:$0xff]  ;;  %3057 = vmatprep.subr.bf16.mxu1 %v3304_v3  ;;  %v188_v7 = vld [vmem:[%s4236_s2 + $0x10] sm:$0xff] }
   0x2   :  { %v36_v2 = vld [vmem:[%s4235_s1] sm:$0xf]  ;;  %v3372_v4 = vpack.c.bf16 %v187_v1, %v186_v0  ;;  %v29_v6 = vld [vmem:[%s4234_s0 + $0x8] sm:$0xff]  ;;  %v189_v8 = vld [vmem:[%s4236_s2 + $0x18] sm:$0xff] }
   0x3   :  { %2955 = vmatprep.subr.msk.mxu0 %vm69_vm0, %v36_v2  ;;  %v28_v5 = vld [vmem:[%s4234_s0] sm:$0xff] }
   0x4   :  { %2956 = vmatpush3.msk.msra.mxu0 %vm69_vm0, %v36_v2  ;;  %2957 = vmatprep.mubr.msk.f32.mxu0 %vm44_vm1, %v28_v5 }
   0x5   :  { %15 = vsyncpa [#allocation6], 0  ;;  %3059 = vmatpush3.bf16.msra.mxu1 %v3372_v4  ;;  %2958 = vmatmul.mubr.msk.f32.vlgmr.msra.gmra.mrb[0].mxu0 %vm44_vm1, %v29_v6  ;;  %v3389_v9 = vpack.c.bf16 %v189_v8, %v188_v7  ;;  %vm3305_vm2 = vmmov 0   ;;  %v3306_v10 = vmov 0.0   ;;  %v3413_v12 = vld [vmem:[%s4237_s3] ss:$0 sm:$0xff] }
   0x6   :  { %3060 = vmatprep.subr.bf16.mxu1 %v3304_v3  ;;  %2977 = vmatprep.mubr.msk.f32.mxu1 %vm3305_vm2, %v3306_v10  ;;  %v3307_v28 = vmov 683565275   ;;  %v3308_v30 = vmov 2475754826   ;;  %v3309_v33 = vmov 2131351028  }
   0x7   :  { %3069 = vmatprep.subr.bf16.mxu0 %v3304_v3  ;;  %v3310_v36 = vmov 2102212464   ;;  %v3311_v39 = vmov 920167782   ;;  %v3312_v42 = vmov 1326507024  }
   0x8   :  { %3071 = vmatpush3.bf16.msra.mxu0 %v3372_v4  ;;  %s3313_s19 = smov 96   ;;  %s3314_s22 = smov 32  }
   0x9   :  { %3062 = vmatpush3.bf16.msra.mxu1 %v3389_v9  ;;  %3072 = vmatprep.subr.bf16.mxu0 %v3304_v3  ;;  %s3316_s18 = smov [#allocation5]  }
   0xa   :  { %3063 = vmatprep.subr.bf16.mxu1 %v3304_v3  ;;  %s2797_s20 = sshll.u32 %s3316_s18, 4  ;;  %s2798_s20 = int_to_ptr.vmem [resolvable:$true] %s2797_s20 }
   0xb   :  { %s3280_s24 = scalar_lea.vmem %s2798_s20, 128  ;;  %p3285_p1 = scmp.lt.s32.totalorder %s2798_s20, %s2798_s20 }
   0xc   :  { %2978 = vmatmul.mubr.f32.vlgmr.msra.gmra.mrb[0].mxu1 %v3306_v10  ;;  %3074 = vmatpush3.bf16.msra.mxu0 %v3389_v9  ;;  %p3281_p0 = scmp.ne.s32.totalorder %s2798_s20, %s3280_s24  ;;  %p3286_p2 = scmp.lt.s32.totalorder %s3280_s24, %s3280_s24 }
   0xd   :  { %3065 = vmatpush3.bf16.msra.mxu1 %v3372_v4  ;;  %2988 = vmatprep.mubr.msk.f32.mxu1 %vm3305_vm2, %v3306_v10 }
   0xe   :  { %3066 = vmatprep.subr.bf16.mxu1 %v3304_v3  ;;  %3081 = vmatprep.subr.bf16.mxu0 %v3304_v3  ;;  %p3287_p3 = por %p3286_p2, %p3285_p1 }
  0x10   :  { %p3288_p4 = pnand %p3287_p3, %p3281_p0 }
  0x11   :  { %3068 = vmatpush3.bf16.msra.mxu1 %v3389_v9 }
  0x12   :  { %3075 = vmatprep.subr.bf16.mxu1 %v3304_v3 }
  0xd8   :  { %v3408_v11 = vpop.f32.mrb[0].mxu0 }
  0xd9   :  { %v139_v13 = vpop.f32.mrb[1].mxu0 }
  0xda   :  { %v140_v14 = vadd.f32 %v3413_v12, %v139_v13 }
  0xdf   :  { %v266_v15 = vpop.f32.mrb[0].mxu1 }
  0xe0   :  { %v3416_v16 = vadd.f32 %v266_v15, %v140_v14  ;;  %v2979_v17 = vpop.f32.mrb[1].mxu1 }
  0xe2   :  { %v274_v18 = vand.u32 2139095040, %v3416_v16  ;;  %v271_v22 = vand.u32 2147483647, %v3416_v16  ;;  %vm273_vm10 = vcmp.lt.s32.totalorder %v3416_v16, 0 }
  0xe4   :  { %v275_v19 = vshrl.u32 %v274_v18, 23  ;;  %v278_v25 = vand.u32 8388607, %v271_v22  ;;  %vm272_vm11 = vcmp.le.f32.partialorder %v271_v22, 0.7853982 }
  0xe6   :  { %v2819_v20 = vadd.s32 4294967169, %v275_v19  ;;  %v279_v44 = vor.u32 8388608, %v278_v25 }
  0xe8   :  { %v281_v21 = vadd.s32 1, %v2819_v20  ;;  %v319_v58 = vshll.u32 %v279_v44, 8 }
  0xea   :  { %vm282_vm3 = vcmp.gt.s32.totalorder %v281_v21, 0 }
  0xeb   :  { %v283_v23 = vsel %vm282_vm3, %v281_v21, 0 }
  0xec   :  { %v285_v24 = vand.u32 31, %v283_v23  ;;  %v284_v27 = vshrl.u32 %v283_v23, 5 }
  0xee   :  { %v286_v26 = vsub.s32 32, %v285_v24  ;;  %v288_v29 = vshll.u32 %v3307_v28, %v285_v24  ;;  %v291_v31 = vshll.u32 %v3308_v30, %v285_v24  ;;  %v294_v35 = vshll.u32 %v3309_v33, %v285_v24 }
  0xef   :  { %v297_v38 = vshll.u32 %v3310_v36, %v285_v24  ;;  %v300_v41 = vshll.u32 %v3311_v39, %v285_v24  ;;  %vm303_vm4 = vcmp.lt.s32.totalorder %v284_v27, 1  ;;  %vm306_vm5 = vcmp.lt.s32.totalorder %v284_v27, 4 }
  0xf0   :  { %v289_v32 = vshrl.u32 %v3308_v30, %v286_v26  ;;  %v292_v34 = vshrl.u32 %v3309_v33, %v286_v26  ;;  %v295_v37 = vshrl.u32 %v3310_v36, %v286_v26  ;;  %v298_v40 = vshrl.u32 %v3311_v39, %v286_v26 }
  0xf1   :  { %v301_v43 = vshrl.u32 %v3312_v42, %v286_v26  ;;  %v287_v53 = vshrl.u32 %v3307_v28, %v286_v26  ;;  %vm305_vm6 = vcmp.lt.s32.totalorder %v284_v27, 3  ;;  %vm304_vm7 = vcmp.lt.s32.totalorder %v284_v27, 2 }
  0xf2   :  { %v290_v45 = vor.u32 %v289_v32, %v288_v29  ;;  %v293_v46 = vor.u32 %v292_v34, %v291_v31  ;;  %v296_v47 = vor.u32 %v295_v37, %v294_v35  ;;  %v299_v48 = vor.u32 %v298_v40, %v297_v38 }
  0xf3   :  { %v302_v49 = vor.u32 %v301_v43, %v300_v41  ;;  %v2823_v29 = vmul.f32 -1.442695, %v3416_v16 }
  0xf4   :  { %v308_v50 = vsel %vm306_vm5, %v296_v47, 2102212464  ;;  %v311_v51 = vsel %vm303_vm4, %v290_v45, %v293_v46  ;;  %v315_v52 = vsel %vm303_vm4, %v293_v46, %v296_v47  ;;  %v312_v54 = vsel %vm306_vm5, %v299_v48, 920167782 }
  0xf5   :  { %v316_v55 = vsel %vm306_vm5, %v302_v49, 1326507024  ;;  %v313_v56 = vsel %vm305_vm6, %v296_v47, %v312_v54  ;;  %v307_v59 = vsel %vm303_vm4, %v287_v53, %v290_v45  ;;  %v309_v60 = vsel %vm305_vm6, %v293_v46, %v308_v50 }
  0xf6   :  { %v317_v57 = vsel %vm305_vm6, %v299_v48, %v316_v55  ;;  %v314_v61 = vsel %vm304_vm7, %v311_v51, %v313_v56  ;;  %v310_v5 = vsel %vm304_vm7, %v307_v59, %v309_v60  ;;  %3182 = vpow2.f32 %v2823_v29 }
  0xf7   :  { %v318_v62 = vsel %vm304_vm7, %v315_v52, %v317_v57  ;;  %v3436_v1 = vmul.u32.u64.low %v319_v58, %v314_v61  ;;  %v3437_v2 = vmul.u32.u64.high %v319_v58, %v314_v61, %v3436_v1  ;;  %v326_v7 = vmul.u32 %v319_v58, %v310_v5 }
  0xf8   :  { %v3433_v63 = vmul.u32.u64.low %v319_v58, %v318_v62  ;;  %v3434_v0 = vmul.u32.u64.high %v319_v58, %v318_v62, %v3433_v63  ;;  %v190_v52 = vlaneseq  ;;  %vm363_vm4 = vweird.f32 %v3416_v16 }
  0xf9   :  { %v329_v6 = vadd.s32 1, %v3437_v2 }
  0xfa   :  { %vm328_vm8 = vc.u32 %v3434_v0, %v3436_v1  ;;  %v327_v25 = vadd.s32 %v3436_v1, %v3434_v0  ;;  %v191_v54 = vand.u32 127, %v190_v52 }
  0xfb   :  { %v330_v8 = vsel %vm328_vm8, %v329_v6, %v3437_v2 }
  0xfc   :  { %v331_v13 = vadd.s32 %v330_v8, %v326_v7  ;;  %vm192_vm12 = vcmp.ge.s32.totalorder %v191_v54, 64  ;;  %vm193_vm13 = vcmp.lt.s32.totalorder %v191_v54, 96 }
  0xfd   :  { %vm3448_vm0 = vmand %vm192_vm12, %vm193_vm13 }
  0xfe   :  { %v332_v14 = vadd.s32 536870912, %v331_v13 }
 0x100   :  { %v333_v15 = vshrl.u32 %v332_v14, 30  ;;  %v3183_v48 = vpop.eup %3182 }
 0x101   :  { %v378_v51 = vadd.f32 1.0, %v3183_v48 }
 0x102   :  { %v334_v17 = vshll.u32 %v333_v15, 30  ;;  %v357_v44 = vsub.s32 4, %v333_v15 }
 0x104   :  { %v335_v18 = vsub.s32 %v331_v13, %v334_v17  ;;  %v358_v47 = vsel %vm273_vm10, %v357_v44, %v333_v15 }
 0x105   :  { %v360_v50 = vsel %vm272_vm11, 0, %v358_v47 }
 0x106   :  { %v337_v19 = vsub.s32 0, %v335_v18  ;;  %v364_v53 = vadd.s32 3, %v360_v50 }
 0x108   :  { %v2820_v20 = vmin.u32 %v337_v19, %v335_v18  ;;  %v365_v55 = vand.u32 3, %v364_v53 }
 0x10a   :  { %v339_v21 = vclz %v2820_v20  ;;  %vm370_vm14 = vcmp.eq.s32.totalorder %v365_v55, 2  ;;  %vm367_vm15 = vcmp.eq.s32.totalorder %v365_v55, 0  ;;  %vm366_vm3 = vcmp.lt.s32.totalorder %v365_v55, 2 }
 0x10c   :  { %v2821_v23 = vadd.s32 4294967294, %v339_v21 }
 0x10e   :  { %vm2822_vm9 = vcmp.lt.s32.totalorder %v2821_v23, 0 }
 0x10f   :  { %v342_v24 = vsel %vm2822_vm9, 0, %v2821_v23 }
 0x110   :  { %v343_v26 = vsub.s32 32, %v342_v24  ;;  %v347_v27 = vsub.s32 4294967266, %v342_v24  ;;  %v344_v31 = vshll.u32 %v335_v18, %v342_v24 }
 0x112   :  { %v345_v32 = vshrl.u32 %v327_v25, %v343_v26  ;;  %v348_v34 = vadd.s32 127, %v347_v27 }
 0x114   :  { %v346_v35 = vor.u32 %v345_v32, %v344_v31  ;;  %v349_v37 = vshll.u32 %v348_v34, 23 }
 0x116   :  { %v350_v38 = vor.u32 4788187, %v349_v37  ;;  %v353_v41 = vcvt.s32.f32 %v346_v35 }
 0x118   :  { %v351_v40 = vand.u32 2147483647, %v350_v38 }
 0x11a   :  { %v354_v43 = vmul.f32 %v353_v41, %v351_v40 }
 0x11c   :  { %v355_v45 = vxor.u32 2147483648, %v354_v43 }
 0x11e   :  { %v356_v46 = vsel %vm273_vm10, %v355_v45, %v354_v43 }
 0x11f   :  { %v359_v49 = vsel %vm272_vm11, %v3416_v16, %v356_v46 }
 0x120   :  { %3184 = vcosq.f32 %v359_v49 }
 0x121   :  { %3186 = vsinq.f32 %v359_v49 }
 0x122   :  { %3188 = vrcp.f32 %v378_v51 }
 0x12a   :  { %v3185_v56 = vpop.eup %3184 }
 0x12b   :  { %v3187_v57 = vpop.eup %3186  ;;  %v371_v58 = vxor.u32 2147483648, %v3185_v56 }
 0x12c   :  { %v368_v59 = vxor.u32 2147483648, %v3187_v57  ;;  %v3189_v63 = vpop.eup %3188 }
 0x12d   :  { %v372_v22 = vsel %vm370_vm14, %v371_v58, %v3187_v57 }
 0x12e   :  { %v369_v61 = vsel %vm367_vm15, %v3185_v56, %v368_v59 }
 0x12f   :  { %v373_v62 = vsel %vm366_vm3, %v369_v61, %v372_v22 }
 0x130   :  { %v374_v0 = vsel %vm363_vm4, nan, %v373_v62 }
 0x131   :  { %v3455_v1 = vsel %vm3448_vm0, %v374_v0, %v3189_v63 }
 0x132   :  { %385 = vrot.lane.b32.xlu0 %v3455_v1, %s3313_s19  ;;  %382 = vst [vmem:[%s4241_s7] sm:$0xff] %v3455_v1  ;;  %v383_v16 = vmul.f32 0.0, %v3455_v1 }
 0x1a4   :  { %v386_v2 = vpop.permute.xlu0 %385 }
 0x1a5   :  { %v388_v5 = vmul.f32 %v386_v2, %v3455_v1 }
 0x1a7   :  { %390 = vrot.lane.b32.xlu0 %v388_v5, %s3313_s19 }
 0x219   :  { %v391_v6 = vpop.permute.xlu0 %390 }
 0x21a   :  { %v3466_v7 = vadd.f32 %v391_v6, %v383_v16 }
 0x21c   :  { %v397_v8 = vand.u32 2139095040, %v3466_v7  ;;  %v394_v17 = vand.u32 2147483647, %v3466_v7  ;;  %vm396_vm12 = vcmp.lt.s32.totalorder %v3466_v7, 0  ;;  %vm486_vm4 = vweird.f32 %v3466_v7 }
 0x21e   :  { %v398_v13 = vshrl.u32 %v397_v8, 23  ;;  %v401_v21 = vand.u32 8388607, %v394_v17  ;;  %vm395_vm13 = vcmp.le.f32.partialorder %v394_v17, 0.7853982 }
 0x220   :  { %v2824_v14 = vadd.s32 4294967169, %v398_v13  ;;  %v402_v38 = vor.u32 8388608, %v401_v21 }
 0x222   :  { %v404_v15 = vadd.s32 1, %v2824_v14  ;;  %v442_v54 = vshll.u32 %v402_v38, 8 }
 0x224   :  { %vm405_vm5 = vcmp.gt.s32.totalorder %v404_v15, 0 }
 0x225   :  { %v406_v18 = vsel %vm405_vm5, %v404_v15, 0  ;;  %vm196_vm5 = vcmask 261120  }
 0x226   :  { %v408_v19 = vand.u32 31, %v406_v18  ;;  %v407_v23 = vshrl.u32 %v406_v18, 5 }
 0x228   :  { %v409_v20 = vsub.s32 32, %v408_v19  ;;  %v411_v24 = vshll.u32 %v3307_v28, %v408_v19  ;;  %v414_v25 = vshll.u32 %v3308_v30, %v408_v19  ;;  %v417_v29 = vshll.u32 %v3309_v33, %v408_v19 }
 0x229   :  { %v420_v32 = vshll.u32 %v3310_v36, %v408_v19  ;;  %v423_v35 = vshll.u32 %v3311_v39, %v408_v19  ;;  %vm426_vm6 = vcmp.lt.s32.totalorder %v407_v23, 1  ;;  %vm429_vm7 = vcmp.lt.s32.totalorder %v407_v23, 4 }
 0x22a   :  { %v412_v26 = vshrl.u32 %v3308_v30, %v409_v20  ;;  %v415_v27 = vshrl.u32 %v3309_v33, %v409_v20  ;;  %v418_v31 = vshrl.u32 %v3310_v36, %v409_v20  ;;  %v421_v34 = vshrl.u32 %v3311_v39, %v409_v20 }
 0x22b   :  { %v424_v37 = vshrl.u32 %v3312_v42, %v409_v20  ;;  %v410_v49 = vshrl.u32 %v3307_v28, %v409_v20  ;;  %vm428_vm8 = vcmp.lt.s32.totalorder %v407_v23, 3  ;;  %vm427_vm9 = vcmp.lt.s32.totalorder %v407_v23, 2 }
 0x22c   :  { %v413_v40 = vor.u32 %v412_v26, %v411_v24  ;;  %v416_v41 = vor.u32 %v415_v27, %v414_v25  ;;  %v419_v43 = vor.u32 %v418_v31, %v417_v29  ;;  %v422_v44 = vor.u32 %v421_v34, %v420_v32 }
 0x22d   :  { %v425_v45 = vor.u32 %v424_v37, %v423_v35 }
 0x22e   :  { %v431_v46 = vsel %vm429_vm7, %v419_v43, 2102212464  ;;  %v434_v47 = vsel %vm426_vm6, %v413_v40, %v416_v41  ;;  %v438_v48 = vsel %vm426_vm6, %v416_v41, %v419_v43  ;;  %v435_v50 = vsel %vm429_vm7, %v422_v44, 920167782 }
 0x22f   :  { %v439_v51 = vsel %vm429_vm7, %v425_v45, 1326507024  ;;  %v436_v52 = vsel %vm428_vm8, %v419_v43, %v435_v50  ;;  %v430_v55 = vsel %vm426_vm6, %v410_v49, %v413_v40  ;;  %v432_v56 = vsel %vm428_vm8, %v416_v41, %v431_v46 }
 0x230   :  { %v440_v53 = vsel %vm428_vm8, %v422_v44, %v439_v51  ;;  %v437_v57 = vsel %vm427_vm9, %v434_v47, %v436_v52  ;;  %v433_v63 = vsel %vm427_vm9, %v430_v55, %v432_v56 }
 0x231   :  { %v441_v58 = vsel %vm427_vm9, %v438_v48, %v440_v53  ;;  %v3486_v61 = vmul.u32.u64.low %v442_v54, %v437_v57  ;;  %v3487_v62 = vmul.u32.u64.high %v442_v54, %v437_v57, %v3486_v61  ;;  %v449_v2 = vmul.u32 %v442_v54, %v433_v63 }
 0x232   :  { %v3483_v59 = vmul.u32.u64.low %v442_v54, %v441_v58  ;;  %v3484_v22 = vmul.u32.u64.high %v442_v54, %v441_v58, %v3483_v59 }
 0x233   :  { %v452_v0 = vadd.s32 1, %v3487_v62 }
 0x234   :  { %vm451_vm10 = vc.u32 %v3484_v22, %v3486_v61  ;;  %v450_v23 = vadd.s32 %v3486_v61, %v3484_v22 }
 0x235   :  { %v453_v5 = vsel %vm451_vm10, %v452_v0, %v3487_v62 }
 0x236   :  { %v454_v16 = vadd.s32 %v453_v5, %v449_v2 }
 0x238   :  { %v455_v6 = vadd.s32 536870912, %v454_v16 }
 0x23a   :  { %v456_v8 = vshrl.u32 %v455_v6, 30 }
 0x23c   :  { %v457_v13 = vshll.u32 %v456_v8, 30  ;;  %v480_v40 = vsub.s32 4, %v456_v8 }
 0x23e   :  { %v458_v14 = vsub.s32 %v454_v16, %v457_v13  ;;  %v481_v44 = vsel %vm396_vm12, %v480_v40, %v456_v8 }
 0x23f   :  { %v483_v46 = vsel %vm395_vm13, 0, %v481_v44 }
 0x240   :  { %v460_v15 = vsub.s32 0, %v458_v14  ;;  %v487_v47 = vadd.s32 3, %v483_v46 }
 0x242   :  { %v2825_v18 = vmin.u32 %v460_v15, %v458_v14  ;;  %v488_v48 = vand.u32 3, %v487_v47 }
 0x244   :  { %v462_v19 = vclz %v2825_v18  ;;  %vm493_vm14 = vcmp.eq.s32.totalorder %v488_v48, 2  ;;  %vm490_vm15 = vcmp.eq.s32.totalorder %v488_v48, 0  ;;  %vm489_vm3 = vcmp.lt.s32.totalorder %v488_v48, 2 }
 0x246   :  { %v2826_v20 = vadd.s32 4294967294, %v462_v19 }
 0x248   :  { %vm2827_vm11 = vcmp.lt.s32.totalorder %v2826_v20, 0 }
 0x249   :  { %v465_v21 = vsel %vm2827_vm11, 0, %v2826_v20 }
 0x24a   :  { %v466_v24 = vsub.s32 32, %v465_v21  ;;  %v470_v25 = vsub.s32 4294967266, %v465_v21  ;;  %v467_v26 = vshll.u32 %v458_v14, %v465_v21 }
 0x24c   :  { %v468_v27 = vshrl.u32 %v450_v23, %v466_v24  ;;  %v471_v29 = vadd.s32 127, %v470_v25 }
 0x24e   :  { %v469_v31 = vor.u32 %v468_v27, %v467_v26  ;;  %v472_v32 = vshll.u32 %v471_v29, 23 }
 0x250   :  { %v473_v34 = vor.u32 4788187, %v472_v32  ;;  %v476_v37 = vcvt.s32.f32 %v469_v31 }
 0x252   :  { %v474_v35 = vand.u32 2147483647, %v473_v34 }
 0x254   :  { %v477_v38 = vmul.f32 %v476_v37, %v474_v35 }
 0x256   :  { %v478_v41 = vxor.u32 2147483648, %v477_v38 }
 0x258   :  { %v479_v43 = vsel %vm396_vm12, %v478_v41, %v477_v38 }
 0x259   :  { %v482_v45 = vsel %vm395_vm13, %v3466_v7, %v479_v43 }
 0x25a   :  { %3190 = vcosq.f32 %v482_v45 }
 0x25b   :  { %3192 = vsinq.f32 %v482_v45 }
 0x264   :  { %v3191_v49 = vpop.eup %3190 }
 0x265   :  { %v3193_v50 = vpop.eup %3192  ;;  %v494_v51 = vxor.u32 2147483648, %v3191_v49 }
 0x266   :  { %v491_v52 = vxor.u32 2147483648, %v3193_v50 }
 0x267   :  { %v495_v53 = vsel %vm493_vm14, %v494_v51, %v3193_v50 }
 0x268   :  { %v492_v54 = vsel %vm490_vm15, %v3191_v49, %v491_v52 }
 0x269   :  { %v496_v17 = vsel %vm489_vm3, %v492_v54, %v495_v53 }
 0x26a   :  { %v497_v55 = vsel %vm486_vm4, nan, %v496_v17 }
 0x26b   :  { %499 = vrot.lane.b32.xlu1 %v497_v55, %s3313_s19 }
 0x2dd   :  { %v500_v56 = vpop.permute.xlu1 %499 }
 0x2de   :  { %v502_v57 = vmul.f32 %v500_v56, %v3455_v1  ;;  %v145_v1 = vadd.f32 %v3408_v11, %v3413_v12 }
 0x2e0   :  { %504 = vrot.lane.b32.xlu1 %v502_v57, %s3314_s22 }
 0x352   :  { %v505_v58 = vpop.permute.xlu1 %504 }
 0x353   :  { %507 = vst.msk [vmem:[#allocation3] sm:$0xff] %vm196_vm5, %v505_v58  ;;  %2989 = vmatmul.mubr.msk.f32.vlgmr.msra.gmra.mrb[2].mxu1 %vm196_vm5, %v505_v58 }
 0x354   :  { %3077 = vmatpush3.bf16.msra.mxu1 %v3372_v4  ;;  %3010 = vmatprep.mubr.msk.f32.mxu1 %vm3305_vm2, %v3306_v10 }
 0x355   :  { %3078 = vmatprep.subr.bf16.mxu1 %v3304_v3 }
 0x358   :  { %3080 = vmatpush3.bf16.msra.mxu1 %v3389_v9 }
 0x359   :  { %3087 = vmatprep.subr.bf16.mxu1 %v3304_v3 }
 0x426   :  { %v578_v59 = vpop.f32.mrb[2].mxu1 }
 0x427   :  { %v3511_v22 = vadd.f32 %v578_v59, %v145_v1  ;;  %v2990_v61 = vpop.f32.mrb[3].mxu1 }
 0x429   :  { %v586_v62 = vand.u32 2139095040, %v3511_v22  ;;  %v583_v5 = vand.u32 2147483647, %v3511_v22  ;;  %vm585_vm13 = vcmp.lt.s32.totalorder %v3511_v22, 0 }
 0x42b   :  { %v587_v63 = vshrl.u32 %v586_v62, 23  ;;  %v590_v8 = vand.u32 8388607, %v583_v5  ;;  %vm584_vm14 = vcmp.le.f32.partialorder %v583_v5, 0.7853982 }
 0x42d   :  { %v2829_v0 = vadd.s32 4294967169, %v587_v63  ;;  %v591_v27 = vor.u32 8388608, %v590_v8 }
 0x42f   :  { %v593_v2 = vadd.s32 1, %v2829_v0  ;;  %v631_v47 = vshll.u32 %v591_v27, 8 }
 0x431   :  { %vm594_vm6 = vcmp.gt.s32.totalorder %v593_v2, 0 }
 0x432   :  { %v595_v16 = vsel %vm594_vm6, %v593_v2, 0  ;;  %vm675_vm6 = vweird.f32 %v3511_v22 }
 0x433   :  { %v597_v6 = vand.u32 31, %v595_v16  ;;  %v596_v14 = vshrl.u32 %v595_v16, 5 }
 0x435   :  { %v598_v13 = vsub.s32 32, %v597_v6  ;;  %v600_v11 = vshll.u32 %v3307_v28, %v597_v6  ;;  %v603_v15 = vshll.u32 %v3308_v30, %v597_v6  ;;  %v606_v20 = vshll.u32 %v3309_v33, %v597_v6 }
 0x436   :  { %v609_v23 = vshll.u32 %v3310_v36, %v597_v6  ;;  %v612_v25 = vshll.u32 %v3311_v39, %v597_v6  ;;  %vm615_vm7 = vcmp.lt.s32.totalorder %v596_v14, 1  ;;  %vm618_vm8 = vcmp.lt.s32.totalorder %v596_v14, 4 }
 0x437   :  { %v601_v18 = vshrl.u32 %v3308_v30, %v598_v13  ;;  %v604_v19 = vshrl.u32 %v3309_v33, %v598_v13  ;;  %v607_v21 = vshrl.u32 %v3310_v36, %v598_v13  ;;  %v610_v24 = vshrl.u32 %v3311_v39, %v598_v13 }
 0x438   :  { %v613_v26 = vshrl.u32 %v3312_v42, %v598_v13  ;;  %v599_v41 = vshrl.u32 %v3307_v28, %v598_v13  ;;  %vm617_vm9 = vcmp.lt.s32.totalorder %v596_v14, 3  ;;  %vm616_vm10 = vcmp.lt.s32.totalorder %v596_v14, 2 }
 0x439   :  { %v602_v29 = vor.u32 %v601_v18, %v600_v11  ;;  %v605_v31 = vor.u32 %v604_v19, %v603_v15  ;;  %v608_v32 = vor.u32 %v607_v21, %v606_v20  ;;  %v611_v34 = vor.u32 %v610_v24, %v609_v23 }
 0x43a   :  { %v614_v35 = vor.u32 %v613_v26, %v612_v25  ;;  %v2833_v15 = vmul.f32 -1.442695, %v3511_v22 }
 0x43b   :  { %v620_v37 = vsel %vm618_vm8, %v608_v32, 2102212464  ;;  %v623_v38 = vsel %vm615_vm7, %v602_v29, %v605_v31  ;;  %v627_v40 = vsel %vm615_vm7, %v605_v31, %v608_v32  ;;  %v624_v43 = vsel %vm618_vm8, %v611_v34, 920167782 }
 0x43c   :  { %v628_v44 = vsel %vm618_vm8, %v614_v35, 1326507024  ;;  %v625_v45 = vsel %vm617_vm9, %v608_v32, %v624_v43  ;;  %v619_v48 = vsel %vm615_vm7, %v599_v41, %v602_v29  ;;  %v621_v49 = vsel %vm617_vm9, %v605_v31, %v620_v37 }
 0x43d   :  { %v629_v46 = vsel %vm617_vm9, %v611_v34, %v628_v44  ;;  %v626_v50 = vsel %vm616_vm10, %v623_v38, %v625_v45  ;;  %v622_v55 = vsel %vm616_vm10, %v619_v48, %v621_v49  ;;  %3194 = vpow2.f32 %v2833_v15 }
 0x43e   :  { %v630_v51 = vsel %vm616_vm10, %v627_v40, %v629_v46  ;;  %v3531_v54 = vmul.u32.u64.low %v631_v47, %v626_v50  ;;  %v3532_v17 = vmul.u32.u64.high %v631_v47, %v626_v50, %v3531_v54  ;;  %v638_v57 = vmul.u32 %v631_v47, %v622_v55 }
 0x43f   :  { %v3528_v52 = vmul.u32.u64.low %v631_v47, %v630_v51  ;;  %v3529_v53 = vmul.u32.u64.high %v631_v47, %v630_v51, %v3528_v52 }
 0x440   :  { %v641_v56 = vadd.s32 1, %v3532_v17 }
 0x441   :  { %vm640_vm11 = vc.u32 %v3529_v53, %v3531_v54  ;;  %v639_v13 = vadd.s32 %v3531_v54, %v3529_v53 }
 0x442   :  { %v642_v58 = vsel %vm640_vm11, %v641_v56, %v3532_v17 }
 0x443   :  { %v643_v1 = vadd.s32 %v642_v58, %v638_v57 }
 0x445   :  { %v644_v59 = vadd.s32 536870912, %v643_v1 }
 0x447   :  { %v645_v61 = vshrl.u32 %v644_v59, 30  ;;  %v3195_v35 = vpop.eup %3194 }
 0x448   :  { %v690_v40 = vadd.f32 1.0, %v3195_v35 }
 0x449   :  { %v646_v62 = vshll.u32 %v645_v61, 30  ;;  %v669_v29 = vsub.s32 4, %v645_v61 }
 0x44b   :  { %v647_v63 = vsub.s32 %v643_v1, %v646_v62  ;;  %v670_v34 = vsel %vm585_vm13, %v669_v29, %v645_v61 }
 0x44c   :  { %v672_v38 = vsel %vm584_vm14, 0, %v670_v34 }
 0x44d   :  { %v649_v0 = vsub.s32 0, %v647_v63  ;;  %v676_v41 = vadd.s32 3, %v672_v38 }
 0x44f   :  { %v2830_v2 = vmin.u32 %v649_v0, %v647_v63  ;;  %v677_v43 = vand.u32 3, %v676_v41 }
 0x451   :  { %v651_v16 = vclz %v2830_v2  ;;  %vm682_vm15 = vcmp.eq.s32.totalorder %v677_v43, 2  ;;  %vm679_vm3 = vcmp.eq.s32.totalorder %v677_v43, 0  ;;  %vm678_vm4 = vcmp.lt.s32.totalorder %v677_v43, 2 }
 0x453   :  { %v2831_v6 = vadd.s32 4294967294, %v651_v16 }
 0x455   :  { %vm2832_vm12 = vcmp.lt.s32.totalorder %v2831_v6, 0 }
 0x456   :  { %v654_v8 = vsel %vm2832_vm12, 0, %v2831_v6 }
 0x457   :  { %v655_v14 = vsub.s32 32, %v654_v8  ;;  %v659_v11 = vsub.s32 4294967266, %v654_v8  ;;  %v656_v18 = vshll.u32 %v647_v63, %v654_v8 }
 0x459   :  { %v657_v19 = vshrl.u32 %v639_v13, %v655_v14  ;;  %v660_v20 = vadd.s32 127, %v659_v11 }
 0x45b   :  { %v658_v21 = vor.u32 %v657_v19, %v656_v18  ;;  %v661_v23 = vshll.u32 %v660_v20, 23 }
 0x45d   :  { %v662_v24 = vor.u32 4788187, %v661_v23  ;;  %v665_v26 = vcvt.s32.f32 %v658_v21 }
 0x45f   :  { %v663_v25 = vand.u32 2147483647, %v662_v24 }
 0x461   :  { %v666_v27 = vmul.f32 %v665_v26, %v663_v25 }
 0x463   :  { %v667_v31 = vxor.u32 2147483648, %v666_v27 }
 0x465   :  { %v668_v32 = vsel %vm585_vm13, %v667_v31, %v666_v27 }
 0x466   :  { %v671_v37 = vsel %vm584_vm14, %v3511_v22, %v668_v32 }
 0x467   :  { %3196 = vcosq.f32 %v671_v37 }
 0x468   :  { %3198 = vsinq.f32 %v671_v37 }
 0x469   :  { %3200 = vrcp.f32 %v690_v40 }
 0x471   :  { %v3197_v44 = vpop.eup %3196 }
 0x472   :  { %v3199_v45 = vpop.eup %3198  ;;  %v683_v46 = vxor.u32 2147483648, %v3197_v44 }
 0x473   :  { %v680_v47 = vxor.u32 2147483648, %v3199_v45  ;;  %v3201_v50 = vpop.eup %3200 }
 0x474   :  { %v684_v48 = vsel %vm682_vm15, %v683_v46, %v3199_v45 }
 0x475   :  { %v681_v5 = vsel %vm679_vm3, %v3197_v44, %v680_v47 }
 0x476   :  { %v685_v49 = vsel %vm678_vm4, %v681_v5, %v684_v48 }
 0x477   :  { %v686_v51 = vsel %vm675_vm6, nan, %v685_v49 }
 0x478   :  { %v3546_v52 = vsel %vm3448_vm0, %v686_v51, %v3201_v50 }
 0x479   :  { %698 = vrot.lane.b32.xlu0 %v3546_v52, %s3313_s19  ;;  %2834 = vst [vmem:[%s4241_s7 + $0x8] sm:$0xff] %v3546_v52  ;;  %v696_v22 = vmul.f32 %v3546_v52, %v3466_v7 }
 0x4eb   :  { %v699_v53 = vpop.permute.xlu0 %698 }
 0x4ec   :  { %v701_v54 = vmul.f32 %v699_v53, %v3546_v52 }
 0x4ee   :  { %703 = vrot.lane.b32.xlu1 %v701_v54, %s3313_s19 }
 0x560   :  { %v704_v17 = vpop.permute.xlu1 %703 }
 0x561   :  { %v3558_v55 = vadd.f32 %v704_v17, %v696_v22 }
 0x563   :  { %v710_v56 = vand.u32 2139095040, %v3558_v55  ;;  %v707_v59 = vand.u32 2147483647, %v3558_v55  ;;  %vm709_vm14 = vcmp.lt.s32.totalorder %v3558_v55, 0 }
 0x565   :  { %v711_v57 = vshrl.u32 %v710_v56, 23  ;;  %v714_v0 = vand.u32 8388607, %v707_v59  ;;  %vm708_vm15 = vcmp.le.f32.partialorder %v707_v59, 0.7853982  ;;  %v32_v59 = vld [vmem:[%s4234_s0 + $0x20] sm:$0xff] }
 0x567   :  { %v2835_v58 = vadd.s32 4294967169, %v711_v57  ;;  %v715_v20 = vor.u32 8388608, %v714_v0 }
 0x569   :  { %v717_v1 = vadd.s32 1, %v2835_v58  ;;  %v755_v40 = vshll.u32 %v715_v20, 8 }
 0x56b   :  { %vm718_vm7 = vcmp.gt.s32.totalorder %v717_v1, 0 }
 0x56c   :  { %v719_v61 = vsel %vm718_vm7, %v717_v1, 0  ;;  %vm799_vm7 = vweird.f32 %v3558_v55 }
 0x56d   :  { %v721_v62 = vand.u32 31, %v719_v61  ;;  %v720_v2 = vshrl.u32 %v719_v61, 5 }
 0x56f   :  { %v722_v63 = vsub.s32 32, %v721_v62  ;;  %v724_v7 = vshll.u32 %v3307_v28, %v721_v62  ;;  %v727_v16 = vshll.u32 %v3308_v30, %v721_v62  ;;  %v730_v13 = vshll.u32 %v3309_v33, %v721_v62 }
 0x570   :  { %v733_v11 = vshll.u32 %v3310_v36, %v721_v62  ;;  %v736_v18 = vshll.u32 %v3311_v39, %v721_v62  ;;  %vm739_vm8 = vcmp.lt.s32.totalorder %v720_v2, 1  ;;  %vm742_vm9 = vcmp.lt.s32.totalorder %v720_v2, 4 }
 0x571   :  { %v725_v6 = vshrl.u32 %v3308_v30, %v722_v63  ;;  %v728_v8 = vshrl.u32 %v3309_v33, %v722_v63  ;;  %v731_v14 = vshrl.u32 %v3310_v36, %v722_v63  ;;  %v734_v15 = vshrl.u32 %v3311_v39, %v722_v63 }
 0x572   :  { %v737_v19 = vshrl.u32 %v3312_v42, %v722_v63  ;;  %v723_v32 = vshrl.u32 %v3307_v28, %v722_v63  ;;  %vm741_vm10 = vcmp.lt.s32.totalorder %v720_v2, 3  ;;  %vm740_vm11 = vcmp.lt.s32.totalorder %v720_v2, 2 }
 0x573   :  { %v726_v21 = vor.u32 %v725_v6, %v724_v7  ;;  %v729_v23 = vor.u32 %v728_v8, %v727_v16  ;;  %v732_v24 = vor.u32 %v731_v14, %v730_v13  ;;  %v735_v25 = vor.u32 %v734_v15, %v733_v11 }
 0x574   :  { %v738_v26 = vor.u32 %v737_v19, %v736_v18 }
 0x575   :  { %v744_v27 = vsel %vm742_vm9, %v732_v24, 2102212464  ;;  %v747_v29 = vsel %vm739_vm8, %v726_v21, %v729_v23  ;;  %v751_v31 = vsel %vm739_vm8, %v729_v23, %v732_v24  ;;  %v748_v34 = vsel %vm742_vm9, %v735_v25, 920167782 }
 0x576   :  { %v752_v35 = vsel %vm742_vm9, %v738_v26, 1326507024  ;;  %v749_v37 = vsel %vm741_vm10, %v732_v24, %v748_v34  ;;  %v743_v41 = vsel %vm739_vm8, %v723_v32, %v726_v21  ;;  %v745_v43 = vsel %vm741_vm10, %v729_v23, %v744_v27  ;;  %v33_v34 = vld [vmem:[%s4234_s0 + $0x28] sm:$0xff] }
 0x577   :  { %v753_v38 = vsel %vm741_vm10, %v735_v25, %v752_v35  ;;  %v750_v44 = vsel %vm740_vm11, %v747_v29, %v749_v37  ;;  %v746_v49 = vsel %vm740_vm11, %v743_v41, %v745_v43  ;;  %v30_v29 = vld [vmem:[%s4234_s0 + $0x10] sm:$0xff] }
 0x578   :  { %v754_v45 = vsel %vm740_vm11, %v751_v31, %v753_v38  ;;  %v3578_v48 = vmul.u32.u64.low %v755_v40, %v750_v44  ;;  %v3579_v5 = vmul.u32.u64.high %v755_v40, %v750_v44, %v3578_v48  ;;  %v762_v51 = vmul.u32 %v755_v40, %v746_v49  ;;  %v31_v31 = vld [vmem:[%s4234_s0 + $0x18] sm:$0xff]  ;;  %2960 = vmatprep.mubr.msk.f32.mxu0 %vm44_vm1, %v30_v29  ;;  %v34_v37 = vld [vmem:[%s4234_s0 + $0x30] sm:$0xff] }
 0x579   :  { %v3575_v46 = vmul.u32.u64.low %v755_v40, %v754_v45  ;;  %v3576_v47 = vmul.u32.u64.high %v755_v40, %v754_v45, %v3575_v46  ;;  %2961 = vmatmul.mubr.msk.f32.gmra.mrb[2].mxu0 %vm44_vm1, %v31_v31  ;;  %v35_v44 = vld [vmem:[%s4234_s0 + $0x38] sm:$0xff] }
 0x57a   :  { %v765_v50 = vadd.s32 1, %v3579_v5  ;;  %2963 = vmatprep.mubr.msk.f32.mxu0 %vm44_vm1, %v32_v59 }
 0x57b   :  { %vm764_vm12 = vc.u32 %v3576_v47, %v3578_v48  ;;  %v763_v0 = vadd.s32 %v3578_v48, %v3576_v47 }
 0x57c   :  { %v766_v53 = vsel %vm764_vm12, %v765_v50, %v3579_v5 }
 0x57d   :  { %v767_v54 = vadd.s32 %v766_v53, %v762_v51  ;;  %2964 = vmatmul.mubr.msk.f32.gmra.mrb[4].mxu0 %vm44_vm1, %v33_v34 }
 0x57e   :  { %2966 = vmatprep.mubr.msk.f32.mxu0 %vm44_vm1, %v34_v37 }
 0x57f   :  { %v768_v22 = vadd.s32 536870912, %v767_v54 }
 0x581   :  { %v769_v17 = vshrl.u32 %v768_v22, 30  ;;  %2967 = vmatmul.mubr.msk.f32.gmra.mrb[6].mxu0 %vm44_vm1, %v35_v44 }
 0x582   :  { %2999 = vmatprep.mubr.msk.f32.mxu0 %vm3305_vm2, %v3306_v10 }
 0x583   :  { %v770_v56 = vshll.u32 %v769_v17, 30  ;;  %v793_v20 = vsub.s32 4, %v769_v17 }
 0x585   :  { %v771_v57 = vsub.s32 %v767_v54, %v770_v56  ;;  %v794_v24 = vsel %vm709_vm14, %v793_v20, %v769_v17 }
 0x586   :  { %v796_v26 = vsel %vm708_vm15, 0, %v794_v24 }
 0x587   :  { %v773_v58 = vsub.s32 0, %v771_v57  ;;  %v800_v27 = vadd.s32 3, %v796_v26 }
 0x589   :  { %v2836_v1 = vmin.u32 %v773_v58, %v771_v57  ;;  %v801_v32 = vand.u32 3, %v800_v27 }
 0x58b   :  { %v775_v61 = vclz %v2836_v1  ;;  %vm806_vm3 = vcmp.eq.s32.totalorder %v801_v32, 2  ;;  %vm803_vm4 = vcmp.eq.s32.totalorder %v801_v32, 0  ;;  %vm802_vm6 = vcmp.lt.s32.totalorder %v801_v32, 2 }
 0x58d   :  { %v2837_v62 = vadd.s32 4294967294, %v775_v61 }
 0x58f   :  { %vm2838_vm13 = vcmp.lt.s32.totalorder %v2837_v62, 0 }
 0x590   :  { %v778_v63 = vsel %vm2838_vm13, 0, %v2837_v62 }
 0x591   :  { %v779_v2 = vsub.s32 32, %v778_v63  ;;  %v783_v7 = vsub.s32 4294967266, %v778_v63  ;;  %v780_v16 = vshll.u32 %v771_v57, %v778_v63 }
 0x593   :  { %v781_v6 = vshrl.u32 %v763_v0, %v779_v2  ;;  %v784_v8 = vadd.s32 127, %v783_v7 }
 0x595   :  { %v782_v13 = vor.u32 %v781_v6, %v780_v16  ;;  %v785_v14 = vshll.u32 %v784_v8, 23 }
 0x597   :  { %v786_v11 = vor.u32 4788187, %v785_v14  ;;  %v789_v18 = vcvt.s32.f32 %v782_v13 }
 0x599   :  { %v787_v15 = vand.u32 2147483647, %v786_v11 }
 0x59b   :  { %v790_v19 = vmul.f32 %v789_v18, %v787_v15 }
 0x59d   :  { %v791_v21 = vxor.u32 2147483648, %v790_v19 }
 0x59f   :  { %v792_v23 = vsel %vm709_vm14, %v791_v21, %v790_v19 }
 0x5a0   :  { %v795_v25 = vsel %vm708_vm15, %v3558_v55, %v792_v23 }
 0x5a1   :  { %3202 = vcosq.f32 %v795_v25 }
 0x5a2   :  { %3204 = vsinq.f32 %v795_v25 }
 0x5ab   :  { %v3203_v35 = vpop.eup %3202 }
 0x5ac   :  { %v3205_v38 = vpop.eup %3204  ;;  %v807_v40 = vxor.u32 2147483648, %v3203_v35 }
 0x5ad   :  { %v804_v41 = vxor.u32 2147483648, %v3205_v38 }
 0x5ae   :  { %v808_v43 = vsel %vm806_vm3, %v807_v40, %v3205_v38 }
 0x5af   :  { %v805_v45 = vsel %vm803_vm4, %v3203_v35, %v804_v41 }
 0x5b0   :  { %v809_v46 = vsel %vm802_vm6, %v805_v45, %v808_v43 }
 0x5b1   :  { %v810_v47 = vsel %vm799_vm7, nan, %v809_v46 }
 0x5b2   :  { %812 = vrot.lane.b32.xlu0 %v810_v47, %s3313_s19 }
 0x624   :  { %v813_v48 = vpop.permute.xlu0 %812 }
 0x625   :  { %v815_v5 = vmul.f32 %v813_v48, %v3546_v52 }
 0x627   :  { %817 = vrot.lane.b32.xlu1 %v815_v5, %s3314_s22 }
 0x64c   :  { %v3619_v49 = vpop.f32.mrb[2].mxu0 }
 0x64d   :  { %v149_v50 = vpop.f32.mrb[3].mxu0 }
 0x64e   :  { %v150_v52 = vadd.f32 %v3413_v12, %v149_v50 }
 0x650   :  { %v3621_v51 = vpop.f32.mrb[4].mxu0 }
 0x651   :  { %v3623_v53 = vpop.f32.mrb[5].mxu0 }
 0x654   :  { %v3625_v54 = vpop.f32.mrb[6].mxu0 }
 0x655   :  { %v3627_v22 = vpop.f32.mrb[7].mxu0 }
 0x699   :  { %v818_v17 = vpop.permute.xlu1 %817 }
 0x69a   :  { %821 = vst.msk [vmem:[#allocation3 + $0x8] sm:$0xff] %vm196_vm5, %v818_v17  ;;  %3000 = vmatmul.mubr.msk.f32.vlgmr.msra.gmra.mrb[8].mxu0 %vm196_vm5, %v818_v17 }
 0x69b   :  { %3083 = vmatpush3.bf16.msra.mxu0 %v3372_v4  ;;  %3021 = vmatprep.mubr.msk.f32.mxu0 %vm3305_vm2, %v3306_v10 }
 0x69c   :  { %3084 = vmatprep.subr.bf16.mxu0 %v3304_v3 }
 0x69f   :  { %3086 = vmatpush3.bf16.msra.mxu0 %v3389_v9 }
 0x6a0   :  { %3093 = vmatprep.subr.bf16.mxu0 %v3304_v3 }
 0x76d   :  { %v892_v56 = vpop.f32.mrb[8].mxu0 }
 0x76e   :  { %v3638_v57 = vadd.f32 %v892_v56, %v150_v52  ;;  %v3001_v58 = vpop.f32.mrb[9].mxu0 }
 0x770   :  { %v900_v1 = vand.u32 2139095040, %v3638_v57  ;;  %v897_v0 = vand.u32 2147483647, %v3638_v57  ;;  %vm899_vm14 = vcmp.lt.s32.totalorder %v3638_v57, 0  ;;  %vm989_vm7 = vweird.f32 %v3638_v57 }
 0x772   :  { %v901_v61 = vshrl.u32 %v900_v1, 23  ;;  %v904_v16 = vand.u32 8388607, %v897_v0  ;;  %vm898_vm15 = vcmp.le.f32.partialorder %v897_v0, 0.7853982 }
 0x774   :  { %v2840_v62 = vadd.s32 4294967169, %v901_v61  ;;  %v905_v24 = vor.u32 8388608, %v904_v16 }
 0x776   :  { %v907_v63 = vadd.s32 1, %v2840_v62  ;;  %v945_v43 = vshll.u32 %v905_v24, 8 }
 0x778   :  { %vm908_vm1 = vcmp.gt.s32.totalorder %v907_v63, 0 }
 0x779   :  { %v909_v2 = vsel %vm908_vm1, %v907_v63, 0 }
 0x77a   :  { %v911_v7 = vand.u32 31, %v909_v2  ;;  %v910_v8 = vshrl.u32 %v909_v2, 5 }
 0x77c   :  { %v912_v6 = vsub.s32 32, %v911_v7  ;;  %v914_v12 = vshll.u32 %v3307_v28, %v911_v7  ;;  %v917_v13 = vshll.u32 %v3308_v30, %v911_v7  ;;  %v920_v15 = vshll.u32 %v3309_v33, %v911_v7 }
 0x77d   :  { %v923_v19 = vshll.u32 %v3310_v36, %v911_v7  ;;  %v926_v21 = vshll.u32 %v3311_v39, %v911_v7  ;;  %vm929_vm8 = vcmp.lt.s32.totalorder %v910_v8, 1  ;;  %vm932_vm9 = vcmp.lt.s32.totalorder %v910_v8, 4 }
 0x77e   :  { %v915_v14 = vshrl.u32 %v3308_v30, %v912_v6  ;;  %v918_v11 = vshrl.u32 %v3309_v33, %v912_v6  ;;  %v921_v18 = vshrl.u32 %v3310_v36, %v912_v6  ;;  %v924_v20 = vshrl.u32 %v3311_v39, %v912_v6 }
 0x77f   :  { %v927_v23 = vshrl.u32 %v3312_v42, %v912_v6  ;;  %v913_v35 = vshrl.u32 %v3307_v28, %v912_v6  ;;  %vm931_vm10 = vcmp.lt.s32.totalorder %v910_v8, 3  ;;  %vm930_vm11 = vcmp.lt.s32.totalorder %v910_v8, 2 }
 0x780   :  { %v916_v25 = vor.u32 %v915_v14, %v914_v12  ;;  %v919_v26 = vor.u32 %v918_v11, %v917_v13  ;;  %v922_v27 = vor.u32 %v921_v18, %v920_v15  ;;  %v925_v29 = vor.u32 %v924_v20, %v923_v19 }
 0x781   :  { %v928_v31 = vor.u32 %v927_v23, %v926_v21  ;;  %v2844_v18 = vmul.f32 -1.442695, %v3638_v57 }
 0x782   :  { %v934_v59 = vsel %vm932_vm9, %v922_v27, 2102212464  ;;  %v937_v32 = vsel %vm929_vm8, %v916_v25, %v919_v26  ;;  %v941_v34 = vsel %vm929_vm8, %v919_v26, %v922_v27  ;;  %v938_v37 = vsel %vm932_vm9, %v925_v29, 920167782 }
 0x783   :  { %v942_v38 = vsel %vm932_vm9, %v928_v31, 1326507024  ;;  %v939_v40 = vsel %vm931_vm10, %v922_v27, %v938_v37  ;;  %v933_v44 = vsel %vm929_vm8, %v913_v35, %v916_v25  ;;  %v935_v45 = vsel %vm931_vm10, %v919_v26, %v934_v59 }
 0x784   :  { %v943_v41 = vsel %vm931_vm10, %v925_v29, %v942_v38  ;;  %v940_v46 = vsel %vm930_vm11, %v937_v32, %v939_v40  ;;  %v936_v52 = vsel %vm930_vm11, %v933_v44, %v935_v45  ;;  %3206 = vpow2.f32 %v2844_v18 }
 0x785   :  { %v944_v47 = vsel %vm930_vm11, %v941_v34, %v943_v41  ;;  %v3658_v50 = vmul.u32.u64.low %v945_v43, %v940_v46  ;;  %v3659_v17 = vmul.u32.u64.high %v945_v43, %v940_v46, %v3658_v50  ;;  %v952_v58 = vmul.u32 %v945_v43, %v936_v52 }
 0x786   :  { %v3655_v48 = vmul.u32.u64.low %v945_v43, %v944_v47  ;;  %v3656_v5 = vmul.u32.u64.high %v945_v43, %v944_v47, %v3655_v48 }
 0x787   :  { %v955_v56 = vadd.s32 1, %v3659_v17 }
 0x788   :  { %vm954_vm12 = vc.u32 %v3656_v5, %v3658_v50  ;;  %v953_v14 = vadd.s32 %v3658_v50, %v3656_v5 }
 0x789   :  { %v956_v1 = vsel %vm954_vm12, %v955_v56, %v3659_v17 }
 0x78a   :  { %v957_v61 = vadd.s32 %v956_v1, %v952_v58 }
 0x78c   :  { %v958_v62 = vadd.s32 536870912, %v957_v61 }
 0x78e   :  { %v959_v63 = vshrl.u32 %v958_v62, 30  ;;  %v3207_v35 = vpop.eup %3206 }
 0x78f   :  { %v1004_v40 = vadd.f32 1.0, %v3207_v35 }
 0x790   :  { %v960_v2 = vshll.u32 %v959_v63, 30  ;;  %v983_v31 = vsub.s32 4, %v959_v63 }
 0x792   :  { %v961_v7 = vsub.s32 %v957_v61, %v960_v2  ;;  %v984_v34 = vsel %vm899_vm14, %v983_v31, %v959_v63 }
 0x793   :  { %v986_v38 = vsel %vm898_vm15, 0, %v984_v34 }
 0x794   :  { %v963_v16 = vsub.s32 0, %v961_v7  ;;  %v990_v41 = vadd.s32 3, %v986_v38 }
 0x796   :  { %v2841_v6 = vmin.u32 %v963_v16, %v961_v7  ;;  %v991_v43 = vand.u32 3, %v990_v41 }
 0x798   :  { %v965_v8 = vclz %v2841_v6  ;;  %vm996_vm3 = vcmp.eq.s32.totalorder %v991_v43, 2  ;;  %vm993_vm4 = vcmp.eq.s32.totalorder %v991_v43, 0  ;;  %vm992_vm6 = vcmp.lt.s32.totalorder %v991_v43, 2 }
 0x79a   :  { %v2842_v12 = vadd.s32 4294967294, %v965_v8 }
 0x79c   :  { %vm2843_vm13 = vcmp.lt.s32.totalorder %v2842_v12, 0 }
 0x79d   :  { %v968_v13 = vsel %vm2843_vm13, 0, %v2842_v12 }
 0x79e   :  { %v969_v11 = vsub.s32 32, %v968_v13  ;;  %v973_v15 = vsub.s32 4294967266, %v968_v13  ;;  %v970_v19 = vshll.u32 %v961_v7, %v968_v13 }
 0x7a0   :  { %v971_v20 = vshrl.u32 %v953_v14, %v969_v11  ;;  %v974_v21 = vadd.s32 127, %v973_v15 }
 0x7a2   :  { %v972_v23 = vor.u32 %v971_v20, %v970_v19  ;;  %v975_v24 = vshll.u32 %v974_v21, 23 }
 0x7a4   :  { %v976_v25 = vor.u32 4788187, %v975_v24  ;;  %v979_v27 = vcvt.s32.f32 %v972_v23 }
 0x7a6   :  { %v977_v26 = vand.u32 2147483647, %v976_v25 }
 0x7a8   :  { %v980_v29 = vmul.f32 %v979_v27, %v977_v26 }
 0x7aa   :  { %v981_v59 = vxor.u32 2147483648, %v980_v29 }
 0x7ac   :  { %v982_v32 = vsel %vm899_vm14, %v981_v59, %v980_v29 }
 0x7ad   :  { %v985_v37 = vsel %vm898_vm15, %v3638_v57, %v982_v32 }
 0x7ae   :  { %3208 = vcosq.f32 %v985_v37 }
 0x7af   :  { %3210 = vsinq.f32 %v985_v37 }
 0x7b0   :  { %3212 = vrcp.f32 %v1004_v40 }
 0x7b8   :  { %v3209_v44 = vpop.eup %3208 }
 0x7b9   :  { %v3211_v45 = vpop.eup %3210  ;;  %v997_v46 = vxor.u32 2147483648, %v3209_v44 }
 0x7ba   :  { %v994_v47 = vxor.u32 2147483648, %v3211_v45  ;;  %v3213_v50 = vpop.eup %3212 }
 0x7bb   :  { %v998_v48 = vsel %vm996_vm3, %v997_v46, %v3211_v45 }
 0x7bc   :  { %v995_v0 = vsel %vm993_vm4, %v3209_v44, %v994_v47 }
 0x7bd   :  { %v999_v5 = vsel %vm992_vm6, %v995_v0, %v998_v48 }
 0x7be   :  { %v1000_v17 = vsel %vm989_vm7, nan, %v999_v5 }
 0x7bf   :  { %v3673_v52 = vsel %vm3448_vm0, %v1000_v17, %v3213_v50 }
 0x7c0   :  { %1012 = vrot.lane.b32.xlu0 %v3673_v52, %s3313_s19  ;;  %2845 = vst [vmem:[%s4241_s7 + $0x10] sm:$0xff] %v3673_v52  ;;  %v1010_v57 = vmul.f32 %v3673_v52, %v3558_v55 }
 0x832   :  { %v1013_v56 = vpop.permute.xlu0 %1012 }
 0x833   :  { %v1015_v58 = vmul.f32 %v1013_v56, %v3673_v52 }
 0x835   :  { %1017 = vrot.lane.b32.xlu1 %v1015_v58, %s3313_s19 }
 0x8a7   :  { %v1018_v1 = vpop.permute.xlu1 %1017 }
 0x8a8   :  { %v3685_v61 = vadd.f32 %v1018_v1, %v1010_v57 }
 0x8aa   :  { %v1024_v62 = vand.u32 2139095040, %v3685_v61  ;;  %v1021_v16 = vand.u32 2147483647, %v3685_v61  ;;  %vm1023_vm14 = vcmp.lt.s32.totalorder %v3685_v61, 0  ;;  %vm1113_vm7 = vweird.f32 %v3685_v61 }
 0x8ac   :  { %v1025_v63 = vshrl.u32 %v1024_v62, 23  ;;  %v1028_v13 = vand.u32 8388607, %v1021_v16  ;;  %vm1022_vm15 = vcmp.le.f32.partialorder %v1021_v16, 0.7853982 }
 0x8ae   :  { %v2846_v2 = vadd.s32 4294967169, %v1025_v63  ;;  %v1029_v26 = vor.u32 8388608, %v1028_v13 }
 0x8b0   :  { %v1031_v7 = vadd.s32 1, %v2846_v2  ;;  %v1069_v45 = vshll.u32 %v1029_v26, 8 }
 0x8b2   :  { %vm1032_vm1 = vcmp.gt.s32.totalorder %v1031_v7, 0 }
 0x8b3   :  { %v1033_v6 = vsel %vm1032_vm1, %v1031_v7, 0 }
 0x8b4   :  { %v1035_v8 = vand.u32 31, %v1033_v6  ;;  %v1034_v14 = vshrl.u32 %v1033_v6, 5 }
 0x8b6   :  { %v1036_v12 = vsub.s32 32, %v1035_v8  ;;  %v1038_v55 = vshll.u32 %v3307_v28, %v1035_v8  ;;  %v1041_v11 = vshll.u32 %v3308_v30, %v1035_v8  ;;  %v1044_v19 = vshll.u32 %v3309_v33, %v1035_v8 }
 0x8b7   :  { %v1047_v21 = vshll.u32 %v3310_v36, %v1035_v8  ;;  %v1050_v24 = vshll.u32 %v3311_v39, %v1035_v8  ;;  %vm1053_vm8 = vcmp.lt.s32.totalorder %v1034_v14, 1  ;;  %vm1056_vm9 = vcmp.lt.s32.totalorder %v1034_v14, 4 }
 0x8b8   :  { %v1039_v15 = vshrl.u32 %v3308_v30, %v1036_v12  ;;  %v1042_v18 = vshrl.u32 %v3309_v33, %v1036_v12  ;;  %v1045_v20 = vshrl.u32 %v3310_v36, %v1036_v12  ;;  %v1048_v23 = vshrl.u32 %v3311_v39, %v1036_v12 }
 0x8b9   :  { %v1051_v25 = vshrl.u32 %v3312_v42, %v1036_v12  ;;  %v1037_v38 = vshrl.u32 %v3307_v28, %v1036_v12  ;;  %vm1055_vm10 = vcmp.lt.s32.totalorder %v1034_v14, 3  ;;  %vm1054_vm11 = vcmp.lt.s32.totalorder %v1034_v14, 2 }
 0x8ba   :  { %v1040_v27 = vor.u32 %v1039_v15, %v1038_v55  ;;  %v1043_v29 = vor.u32 %v1042_v18, %v1041_v11  ;;  %v1046_v31 = vor.u32 %v1045_v20, %v1044_v19  ;;  %v1049_v59 = vor.u32 %v1048_v23, %v1047_v21 }
 0x8bb   :  { %v1052_v32 = vor.u32 %v1051_v25, %v1050_v24 }
 0x8bc   :  { %v1058_v34 = vsel %vm1056_vm9, %v1046_v31, 2102212464  ;;  %v1061_v35 = vsel %vm1053_vm8, %v1040_v27, %v1043_v29  ;;  %v1065_v37 = vsel %vm1053_vm8, %v1043_v29, %v1046_v31  ;;  %v1062_v40 = vsel %vm1056_vm9, %v1049_v59, 920167782 }
 0x8bd   :  { %v1066_v41 = vsel %vm1056_vm9, %v1052_v32, 1326507024  ;;  %v1063_v43 = vsel %vm1055_vm10, %v1046_v31, %v1062_v40  ;;  %v1057_v46 = vsel %vm1053_vm8, %v1037_v38, %v1040_v27  ;;  %v1059_v47 = vsel %vm1055_vm10, %v1043_v29, %v1058_v34 }
 0x8be   :  { %v1067_v44 = vsel %vm1055_vm10, %v1049_v59, %v1066_v41  ;;  %v1064_v48 = vsel %vm1054_vm11, %v1061_v35, %v1063_v43  ;;  %v1060_v58 = vsel %vm1054_vm11, %v1057_v46, %v1059_v47 }
 0x8bf   :  { %v1068_v0 = vsel %vm1054_vm11, %v1065_v37, %v1067_v44  ;;  %v3705_v17 = vmul.u32.u64.low %v1069_v45, %v1064_v48  ;;  %v3706_v56 = vmul.u32.u64.high %v1069_v45, %v1064_v48, %v3705_v17  ;;  %v1076_v1 = vmul.u32 %v1069_v45, %v1060_v58 }
 0x8c0   :  { %v3702_v5 = vmul.u32.u64.low %v1069_v45, %v1068_v0  ;;  %v3703_v50 = vmul.u32.u64.high %v1069_v45, %v1068_v0, %v3702_v5 }
 0x8c1   :  { %v1079_v57 = vadd.s32 1, %v3706_v56 }
 0x8c2   :  { %vm1078_vm12 = vc.u32 %v3703_v50, %v3705_v17  ;;  %v1077_v15 = vadd.s32 %v3705_v17, %v3703_v50 }
 0x8c3   :  { %v1080_v62 = vsel %vm1078_vm12, %v1079_v57, %v3706_v56 }
 0x8c4   :  { %v1081_v63 = vadd.s32 %v1080_v62, %v1076_v1 }
 0x8c6   :  { %v1082_v2 = vadd.s32 536870912, %v1081_v63 }
 0x8c8   :  { %v1083_v7 = vshrl.u32 %v1082_v2, 30 }
 0x8ca   :  { %v1084_v6 = vshll.u32 %v1083_v7, 30  ;;  %v1107_v59 = vsub.s32 4, %v1083_v7 }
 0x8cc   :  { %v1085_v8 = vsub.s32 %v1081_v63, %v1084_v6  ;;  %v1108_v35 = vsel %vm1023_vm14, %v1107_v59, %v1083_v7 }
 0x8cd   :  { %v1110_v38 = vsel %vm1022_vm15, 0, %v1108_v35 }
 0x8ce   :  { %v1087_v12 = vsub.s32 0, %v1085_v8  ;;  %v1114_v40 = vadd.s32 3, %v1110_v38 }
 0x8d0   :  { %v2847_v13 = vmin.u32 %v1087_v12, %v1085_v8  ;;  %v1115_v41 = vand.u32 3, %v1114_v40 }
 0x8d2   :  { %v1089_v14 = vclz %v2847_v13  ;;  %vm1120_vm3 = vcmp.eq.s32.totalorder %v1115_v41, 2  ;;  %vm1117_vm4 = vcmp.eq.s32.totalorder %v1115_v41, 0  ;;  %vm1116_vm6 = vcmp.lt.s32.totalorder %v1115_v41, 2 }
 0x8d4   :  { %v2848_v55 = vadd.s32 4294967294, %v1089_v14 }
 0x8d6   :  { %vm2849_vm13 = vcmp.lt.s32.totalorder %v2848_v55, 0 }
 0x8d7   :  { %v1092_v11 = vsel %vm2849_vm13, 0, %v2848_v55 }
 0x8d8   :  { %v1093_v18 = vsub.s32 32, %v1092_v11  ;;  %v1097_v19 = vsub.s32 4294967266, %v1092_v11  ;;  %v1094_v20 = vshll.u32 %v1085_v8, %v1092_v11 }
 0x8da   :  { %v1095_v21 = vshrl.u32 %v1077_v15, %v1093_v18  ;;  %v1098_v23 = vadd.s32 127, %v1097_v19 }
 0x8dc   :  { %v1096_v24 = vor.u32 %v1095_v21, %v1094_v20  ;;  %v1099_v25 = vshll.u32 %v1098_v23, 23 }
 0x8de   :  { %v1100_v26 = vor.u32 4788187, %v1099_v25  ;;  %v1103_v29 = vcvt.s32.f32 %v1096_v24 }
 0x8e0   :  { %v1101_v27 = vand.u32 2147483647, %v1100_v26 }
 0x8e2   :  { %v1104_v31 = vmul.f32 %v1103_v29, %v1101_v27 }
 0x8e4   :  { %v1105_v32 = vxor.u32 2147483648, %v1104_v31 }
 0x8e6   :  { %v1106_v34 = vsel %vm1023_vm14, %v1105_v32, %v1104_v31 }
 0x8e7   :  { %v1109_v37 = vsel %vm1022_vm15, %v3685_v61, %v1106_v34 }
 0x8e8   :  { %3214 = vcosq.f32 %v1109_v37 }
 0x8e9   :  { %3216 = vsinq.f32 %v1109_v37 }
 0x8f2   :  { %v3215_v43 = vpop.eup %3214 }
 0x8f3   :  { %v3217_v44 = vpop.eup %3216  ;;  %v1121_v45 = vxor.u32 2147483648, %v3215_v43 }
 0x8f4   :  { %v1118_v46 = vxor.u32 2147483648, %v3217_v44 }
 0x8f5   :  { %v1122_v47 = vsel %vm1120_vm3, %v1121_v45, %v3217_v44 }
 0x8f6   :  { %v1119_v48 = vsel %vm1117_vm4, %v3215_v43, %v1118_v46 }
 0x8f7   :  { %v1123_v16 = vsel %vm1116_vm6, %v1119_v48, %v1122_v47 }
 0x8f8   :  { %v1124_v0 = vsel %vm1113_vm7, nan, %v1123_v16 }
 0x8f9   :  { %1126 = vrot.lane.b32.xlu0 %v1124_v0, %s3313_s19 }
 0x96b   :  { %v1127_v5 = vpop.permute.xlu0 %1126 }
 0x96c   :  { %v1129_v50 = vmul.f32 %v1127_v5, %v3673_v52  ;;  %v3731_v52 = vld [vmem:[%s4237_s3] ss:$0 sm:$0xff] }
 0x96d   :  { %v155_v56 = vadd.f32 %v3731_v52, %v3619_v49 }
 0x96e   :  { %1131 = vrot.lane.b32.xlu1 %v1129_v50, %s3314_s22 }
 0x9e0   :  { %v1132_v17 = vpop.permute.xlu1 %1131 }
 0x9e1   :  { %1135 = vst.msk [vmem:[#allocation3 + $0x10] sm:$0xff] %vm196_vm5, %v1132_v17  ;;  %3011 = vmatmul.mubr.msk.f32.vlgmr.msra.gmra.mrb[4].mxu1 %vm196_vm5, %v1132_v17 }
 0x9e2   :  { %3089 = vmatpush3.bf16.msra.mxu1 %v3372_v4  ;;  %3032 = vmatprep.mubr.msk.f32.mxu1 %vm3305_vm2, %v3306_v10 }
 0x9e3   :  { %3090 = vmatprep.subr.bf16.mxu1 %v3304_v3 }
 0x9e6   :  { %3092 = vmatpush3.bf16.msra.mxu1 %v3389_v9 }
 0x9e7   :  { %3099 = vmatprep.subr.bf16.mxu1 %v3304_v3 }
 0xab4   :  { %v1206_v58 = vpop.f32.mrb[4].mxu1 }
 0xab5   :  { %v3735_v57 = vadd.f32 %v1206_v58, %v155_v56  ;;  %v3012_v1 = vpop.f32.mrb[5].mxu1 }
 0xab7   :  { %v1214_v62 = vand.u32 2139095040, %v3735_v57  ;;  %v1211_v6 = vand.u32 2147483647, %v3735_v57  ;;  %vm1213_vm14 = vcmp.lt.s32.totalorder %v3735_v57, 0  ;;  %vm1303_vm7 = vweird.f32 %v3735_v57 }
 0xab9   :  { %v1215_v63 = vshrl.u32 %v1214_v62, 23  ;;  %v1218_v13 = vand.u32 8388607, %v1211_v6  ;;  %vm1212_vm15 = vcmp.le.f32.partialorder %v1211_v6, 0.7853982 }
 0xabb   :  { %v2851_v2 = vadd.s32 4294967169, %v1215_v63  ;;  %v1219_v26 = vor.u32 8388608, %v1218_v13 }
 0xabd   :  { %v1221_v7 = vadd.s32 1, %v2851_v2  ;;  %v1259_v45 = vshll.u32 %v1219_v26, 8 }
 0xabf   :  { %vm1222_vm1 = vcmp.gt.s32.totalorder %v1221_v7, 0 }
 0xac0   :  { %v1223_v8 = vsel %vm1222_vm1, %v1221_v7, 0 }
 0xac1   :  { %v1225_v12 = vand.u32 31, %v1223_v8  ;;  %v1224_v55 = vshrl.u32 %v1223_v8, 5 }
 0xac3   :  { %v1226_v14 = vsub.s32 32, %v1225_v12  ;;  %v1228_v49 = vshll.u32 %v3307_v28, %v1225_v12  ;;  %v1231_v11 = vshll.u32 %v3308_v30, %v1225_v12  ;;  %v1234_v19 = vshll.u32 %v3309_v33, %v1225_v12 }
 0xac4   :  { %v1237_v21 = vshll.u32 %v3310_v36, %v1225_v12  ;;  %v1240_v24 = vshll.u32 %v3311_v39, %v1225_v12  ;;  %vm1243_vm8 = vcmp.lt.s32.totalorder %v1224_v55, 1  ;;  %vm1246_vm9 = vcmp.lt.s32.totalorder %v1224_v55, 4 }
 0xac5   :  { %v1229_v15 = vshrl.u32 %v3308_v30, %v1226_v14  ;;  %v1232_v18 = vshrl.u32 %v3309_v33, %v1226_v14  ;;  %v1235_v20 = vshrl.u32 %v3310_v36, %v1226_v14  ;;  %v1238_v23 = vshrl.u32 %v3311_v39, %v1226_v14 }
 0xac6   :  { %v1241_v25 = vshrl.u32 %v3312_v42, %v1226_v14  ;;  %v1227_v38 = vshrl.u32 %v3307_v28, %v1226_v14  ;;  %vm1245_vm10 = vcmp.lt.s32.totalorder %v1224_v55, 3  ;;  %vm1244_vm11 = vcmp.lt.s32.totalorder %v1224_v55, 2 }
 0xac7   :  { %v1230_v27 = vor.u32 %v1229_v15, %v1228_v49  ;;  %v1233_v29 = vor.u32 %v1232_v18, %v1231_v11  ;;  %v1236_v31 = vor.u32 %v1235_v20, %v1234_v19  ;;  %v1239_v59 = vor.u32 %v1238_v23, %v1237_v21 }
 0xac8   :  { %v1242_v32 = vor.u32 %v1241_v25, %v1240_v24  ;;  %v2855_v20 = vmul.f32 -1.442695, %v3735_v57 }
 0xac9   :  { %v1248_v34 = vsel %vm1246_vm9, %v1236_v31, 2102212464  ;;  %v1251_v35 = vsel %vm1243_vm8, %v1230_v27, %v1233_v29  ;;  %v1255_v37 = vsel %vm1243_vm8, %v1233_v29, %v1236_v31  ;;  %v1252_v40 = vsel %vm1246_vm9, %v1239_v59, 920167782 }
 0xaca   :  { %v1256_v41 = vsel %vm1246_vm9, %v1242_v32, 1326507024  ;;  %v1253_v43 = vsel %vm1245_vm10, %v1236_v31, %v1252_v40  ;;  %v1247_v46 = vsel %vm1243_vm8, %v1227_v38, %v1230_v27  ;;  %v1249_v47 = vsel %vm1245_vm10, %v1233_v29, %v1248_v34 }
 0xacb   :  { %v1257_v44 = vsel %vm1245_vm10, %v1239_v59, %v1256_v41  ;;  %v1254_v48 = vsel %vm1244_vm11, %v1251_v35, %v1253_v43  ;;  %v1250_v56 = vsel %vm1244_vm11, %v1247_v46, %v1249_v47  ;;  %3218 = vpow2.f32 %v2855_v20 }
 0xacc   :  { %v1258_v16 = vsel %vm1244_vm11, %v1255_v37, %v1257_v44  ;;  %v3755_v50 = vmul.u32.u64.low %v1259_v45, %v1254_v48  ;;  %v3756_v17 = vmul.u32.u64.high %v1259_v45, %v1254_v48, %v3755_v50  ;;  %v1266_v1 = vmul.u32 %v1259_v45, %v1250_v56 }
 0xacd   :  { %v3752_v0 = vmul.u32.u64.low %v1259_v45, %v1258_v16  ;;  %v3753_v5 = vmul.u32.u64.high %v1259_v45, %v1258_v16, %v3752_v0 }
 0xace   :  { %v1269_v58 = vadd.s32 1, %v3756_v17 }
 0xacf   :  { %vm1268_vm12 = vc.u32 %v3753_v5, %v3755_v50  ;;  %v1267_v15 = vadd.s32 %v3755_v50, %v3753_v5 }
 0xad0   :  { %v1270_v62 = vsel %vm1268_vm12, %v1269_v58, %v3756_v17 }
 0xad1   :  { %v1271_v63 = vadd.s32 %v1270_v62, %v1266_v1 }
 0xad3   :  { %v1272_v2 = vadd.s32 536870912, %v1271_v63 }
 0xad5   :  { %v1273_v7 = vshrl.u32 %v1272_v2, 30  ;;  %v3219_v38 = vpop.eup %3218 }
 0xad6   :  { %v1318_v43 = vadd.f32 1.0, %v3219_v38 }
 0xad7   :  { %v1274_v8 = vshll.u32 %v1273_v7, 30  ;;  %v1297_v32 = vsub.s32 4, %v1273_v7 }
 0xad9   :  { %v1275_v12 = vsub.s32 %v1271_v63, %v1274_v8  ;;  %v1298_v37 = vsel %vm1213_vm14, %v1297_v32, %v1273_v7 }
 0xada   :  { %v1300_v41 = vsel %vm1212_vm15, 0, %v1298_v37 }
 0xadb   :  { %v1277_v13 = vsub.s32 0, %v1275_v12  ;;  %v1304_v44 = vadd.s32 3, %v1300_v41 }
 0xadd   :  { %v2852_v14 = vmin.u32 %v1277_v13, %v1275_v12  ;;  %v1305_v45 = vand.u32 3, %v1304_v44 }
 0xadf   :  { %v1279_v55 = vclz %v2852_v14  ;;  %vm1310_vm3 = vcmp.eq.s32.totalorder %v1305_v45, 2  ;;  %vm1307_vm4 = vcmp.eq.s32.totalorder %v1305_v45, 0  ;;  %vm1306_vm6 = vcmp.lt.s32.totalorder %v1305_v45, 2 }
 0xae1   :  { %v2853_v49 = vadd.s32 4294967294, %v1279_v55 }
 0xae3   :  { %vm2854_vm13 = vcmp.lt.s32.totalorder %v2853_v49, 0 }
 0xae4   :  { %v1282_v11 = vsel %vm2854_vm13, 0, %v2853_v49 }
 0xae5   :  { %v1283_v18 = vsub.s32 32, %v1282_v11  ;;  %v1287_v19 = vsub.s32 4294967266, %v1282_v11  ;;  %v1284_v21 = vshll.u32 %v1275_v12, %v1282_v11 }
 0xae7   :  { %v1285_v23 = vshrl.u32 %v1267_v15, %v1283_v18  ;;  %v1288_v24 = vadd.s32 127, %v1287_v19 }
 0xae9   :  { %v1286_v25 = vor.u32 %v1285_v23, %v1284_v21  ;;  %v1289_v26 = vshll.u32 %v1288_v24, 23 }
 0xaeb   :  { %v1290_v27 = vor.u32 4788187, %v1289_v26  ;;  %v1293_v31 = vcvt.s32.f32 %v1286_v25 }
 0xaed   :  { %v1291_v29 = vand.u32 2147483647, %v1290_v27 }
 0xaef   :  { %v1294_v59 = vmul.f32 %v1293_v31, %v1291_v29 }
 0xaf1   :  { %v1295_v34 = vxor.u32 2147483648, %v1294_v59 }
 0xaf3   :  { %v1296_v35 = vsel %vm1213_vm14, %v1295_v34, %v1294_v59 }
 0xaf4   :  { %v1299_v40 = vsel %vm1212_vm15, %v3735_v57, %v1296_v35 }
 0xaf5   :  { %3220 = vcosq.f32 %v1299_v40 }
 0xaf6   :  { %3222 = vsinq.f32 %v1299_v40 }
 0xaf7   :  { %3224 = vrcp.f32 %v1318_v43 }
 0xaff   :  { %v3221_v46 = vpop.eup %3220 }
 0xb00   :  { %v3223_v47 = vpop.eup %3222  ;;  %v1311_v48 = vxor.u32 2147483648, %v3221_v46 }
 0xb01   :  { %v1308_v16 = vxor.u32 2147483648, %v3223_v47  ;;  %v3225_v50 = vpop.eup %3224 }
 0xb02   :  { %v1312_v0 = vsel %vm1310_vm3, %v1311_v48, %v3223_v47 }
 0xb03   :  { %v1309_v6 = vsel %vm1307_vm4, %v3221_v46, %v1308_v16 }
 0xb04   :  { %v1313_v5 = vsel %vm1306_vm6, %v1309_v6, %v1312_v0 }
 0xb05   :  { %v1314_v17 = vsel %vm1303_vm7, nan, %v1313_v5 }
 0xb06   :  { %v3770_v56 = vsel %vm3448_vm0, %v1314_v17, %v3225_v50 }
 0xb07   :  { %1326 = vrot.lane.b32.xlu0 %v3770_v56, %s3313_s19  ;;  %2856 = vst [vmem:[%s4241_s7 + $0x18] sm:$0xff] %v3770_v56  ;;  %v1324_v57 = vmul.f32 %v3770_v56, %v3685_v61 }
 0xb79   :  { %v1327_v58 = vpop.permute.xlu0 %1326 }
 0xb7a   :  { %v1329_v1 = vmul.f32 %v1327_v58, %v3770_v56 }
 0xb7c   :  { %1331 = vrot.lane.b32.xlu1 %v1329_v1, %s3313_s19 }
 0xbee   :  { %v1332_v62 = vpop.permute.xlu1 %1331 }
 0xbef   :  { %v3782_v63 = vadd.f32 %v1332_v62, %v1324_v57 }
 0xbf1   :  { %v1338_v2 = vand.u32 2139095040, %v3782_v63  ;;  %v1335_v13 = vand.u32 2147483647, %v3782_v63  ;;  %vm1337_vm14 = vcmp.lt.s32.totalorder %v3782_v63, 0  ;;  %vm1427_vm7 = vweird.f32 %v3782_v63 }
 0xbf3   :  { %v1339_v7 = vshrl.u32 %v1338_v2, 23  ;;  %v1342_v11 = vand.u32 8388607, %v1335_v13  ;;  %vm1336_vm15 = vcmp.le.f32.partialorder %v1335_v13, 0.7853982 }
 0xbf5   :  { %v2857_v8 = vadd.s32 4294967169, %v1339_v7  ;;  %v1343_v29 = vor.u32 8388608, %v1342_v11 }
 0xbf7   :  { %v1345_v12 = vadd.s32 1, %v2857_v8  ;;  %v1383_v47 = vshll.u32 %v1343_v29, 8 }
 0xbf9   :  { %vm1346_vm1 = vcmp.gt.s32.totalorder %v1345_v12, 0 }
 0xbfa   :  { %v1347_v14 = vsel %vm1346_vm1, %v1345_v12, 0 }
 0xbfb   :  { %v1349_v55 = vand.u32 31, %v1347_v14  ;;  %v1348_v15 = vshrl.u32 %v1347_v14, 5 }
 0xbfd   :  { %v1350_v49 = vsub.s32 32, %v1349_v55  ;;  %v1352_v61 = vshll.u32 %v3307_v28, %v1349_v55  ;;  %v1355_v18 = vshll.u32 %v3308_v30, %v1349_v55  ;;  %v1358_v21 = vshll.u32 %v3309_v33, %v1349_v55 }
 0xbfe   :  { %v1361_v24 = vshll.u32 %v3310_v36, %v1349_v55  ;;  %v1364_v26 = vshll.u32 %v3311_v39, %v1349_v55  ;;  %vm1367_vm8 = vcmp.lt.s32.totalorder %v1348_v15, 1  ;;  %vm1370_vm9 = vcmp.lt.s32.totalorder %v1348_v15, 4 }
 0xbff   :  { %v1353_v19 = vshrl.u32 %v3308_v30, %v1350_v49  ;;  %v1356_v20 = vshrl.u32 %v3309_v33, %v1350_v49  ;;  %v1359_v23 = vshrl.u32 %v3310_v36, %v1350_v49  ;;  %v1362_v25 = vshrl.u32 %v3311_v39, %v1350_v49 }
 0xc00   :  { %v1365_v27 = vshrl.u32 %v3312_v42, %v1350_v49  ;;  %v1351_v41 = vshrl.u32 %v3307_v28, %v1350_v49  ;;  %vm1369_vm10 = vcmp.lt.s32.totalorder %v1348_v15, 3  ;;  %vm1368_vm11 = vcmp.lt.s32.totalorder %v1348_v15, 2 }
 0xc01   :  { %v1354_v31 = vor.u32 %v1353_v19, %v1352_v61  ;;  %v1357_v59 = vor.u32 %v1356_v20, %v1355_v18  ;;  %v1360_v32 = vor.u32 %v1359_v23, %v1358_v21  ;;  %v1363_v34 = vor.u32 %v1362_v25, %v1361_v24 }
 0xc02   :  { %v1366_v35 = vor.u32 %v1365_v27, %v1364_v26 }
 0xc03   :  { %v1372_v37 = vsel %vm1370_vm9, %v1360_v32, 2102212464  ;;  %v1375_v38 = vsel %vm1367_vm8, %v1354_v31, %v1357_v59  ;;  %v1379_v40 = vsel %vm1367_vm8, %v1357_v59, %v1360_v32  ;;  %v1376_v43 = vsel %vm1370_vm9, %v1363_v34, 920167782 }
 0xc04   :  { %v1380_v44 = vsel %vm1370_vm9, %v1366_v35, 1326507024  ;;  %v1377_v45 = vsel %vm1369_vm10, %v1360_v32, %v1376_v43  ;;  %v1371_v48 = vsel %vm1367_vm8, %v1351_v41, %v1354_v31  ;;  %v1373_v16 = vsel %vm1369_vm10, %v1357_v59, %v1372_v37 }
 0xc05   :  { %v1381_v46 = vsel %vm1369_vm10, %v1363_v34, %v1380_v44  ;;  %v1378_v0 = vsel %vm1368_vm11, %v1375_v38, %v1377_v45  ;;  %v1374_v1 = vsel %vm1368_vm11, %v1371_v48, %v1373_v16 }
 0xc06   :  { %v1382_v6 = vsel %vm1368_vm11, %v1379_v40, %v1381_v46  ;;  %v3802_v17 = vmul.u32.u64.low %v1383_v47, %v1378_v0  ;;  %v3803_v58 = vmul.u32.u64.high %v1383_v47, %v1378_v0, %v3802_v17  ;;  %v1390_v62 = vmul.u32 %v1383_v47, %v1374_v1 }
 0xc07   :  { %v3799_v5 = vmul.u32.u64.low %v1383_v47, %v1382_v6  ;;  %v3800_v50 = vmul.u32.u64.high %v1383_v47, %v1382_v6, %v3799_v5 }
 0xc08   :  { %v1393_v57 = vadd.s32 1, %v3803_v58 }
 0xc09   :  { %vm1392_vm12 = vc.u32 %v3800_v50, %v3802_v17  ;;  %v1391_v19 = vadd.s32 %v3802_v17, %v3800_v50 }
 0xc0a   :  { %v1394_v2 = vsel %vm1392_vm12, %v1393_v57, %v3803_v58  ;;  %v160_v58 = vadd.f32 %v3731_v52, %v3623_v53 }
 0xc0b   :  { %v1395_v7 = vadd.s32 %v1394_v2, %v1390_v62 }
 0xc0d   :  { %v1396_v8 = vadd.s32 536870912, %v1395_v7 }
 0xc0f   :  { %v1397_v12 = vshrl.u32 %v1396_v8, 30 }
 0xc11   :  { %v1398_v14 = vshll.u32 %v1397_v12, 30  ;;  %v1421_v34 = vsub.s32 4, %v1397_v12 }
 0xc13   :  { %v1399_v55 = vsub.s32 %v1395_v7, %v1398_v14  ;;  %v1422_v38 = vsel %vm1337_vm14, %v1421_v34, %v1397_v12 }
 0xc14   :  { %v1424_v41 = vsel %vm1336_vm15, 0, %v1422_v38 }
 0xc15   :  { %v1401_v49 = vsub.s32 0, %v1399_v55  ;;  %v1428_v43 = vadd.s32 3, %v1424_v41 }
 0xc17   :  { %v2858_v11 = vmin.u32 %v1401_v49, %v1399_v55  ;;  %v1429_v44 = vand.u32 3, %v1428_v43 }
 0xc19   :  { %v1403_v15 = vclz %v2858_v11  ;;  %vm1434_vm3 = vcmp.eq.s32.totalorder %v1429_v44, 2  ;;  %vm1431_vm4 = vcmp.eq.s32.totalorder %v1429_v44, 0  ;;  %vm1430_vm6 = vcmp.lt.s32.totalorder %v1429_v44, 2 }
 0xc1b   :  { %v2859_v61 = vadd.s32 4294967294, %v1403_v15 }
 0xc1d   :  { %vm2860_vm13 = vcmp.lt.s32.totalorder %v2859_v61, 0 }
 0xc1e   :  { %v1406_v18 = vsel %vm2860_vm13, 0, %v2859_v61 }
 0xc1f   :  { %v1407_v20 = vsub.s32 32, %v1406_v18  ;;  %v1411_v21 = vsub.s32 4294967266, %v1406_v18  ;;  %v1408_v23 = vshll.u32 %v1399_v55, %v1406_v18 }
 0xc21   :  { %v1409_v24 = vshrl.u32 %v1391_v19, %v1407_v20  ;;  %v1412_v25 = vadd.s32 127, %v1411_v21 }
 0xc23   :  { %v1410_v26 = vor.u32 %v1409_v24, %v1408_v23  ;;  %v1413_v27 = vshll.u32 %v1412_v25, 23 }
 0xc25   :  { %v1414_v29 = vor.u32 4788187, %v1413_v27  ;;  %v1417_v59 = vcvt.s32.f32 %v1410_v26 }
 0xc27   :  { %v1415_v31 = vand.u32 2147483647, %v1414_v29 }
 0xc29   :  { %v1418_v32 = vmul.f32 %v1417_v59, %v1415_v31 }
 0xc2b   :  { %v1419_v35 = vxor.u32 2147483648, %v1418_v32 }
 0xc2d   :  { %v1420_v37 = vsel %vm1337_vm14, %v1419_v35, %v1418_v32 }
 0xc2e   :  { %v1423_v40 = vsel %vm1336_vm15, %v3782_v63, %v1420_v37 }
 0xc2f   :  { %3226 = vcosq.f32 %v1423_v40 }
 0xc30   :  { %3228 = vsinq.f32 %v1423_v40 }
 0xc39   :  { %v3227_v45 = vpop.eup %3226 }
 0xc3a   :  { %v3229_v46 = vpop.eup %3228  ;;  %v1435_v47 = vxor.u32 2147483648, %v3227_v45 }
 0xc3b   :  { %v1432_v48 = vxor.u32 2147483648, %v3229_v46 }
 0xc3c   :  { %v1436_v16 = vsel %vm1434_vm3, %v1435_v47, %v3229_v46 }
 0xc3d   :  { %v1433_v0 = vsel %vm1431_vm4, %v3227_v45, %v1432_v48 }
 0xc3e   :  { %v1437_v13 = vsel %vm1430_vm6, %v1433_v0, %v1436_v16 }
 0xc3f   :  { %v1438_v6 = vsel %vm1427_vm7, nan, %v1437_v13 }
 0xc40   :  { %1440 = vrot.lane.b32.xlu0 %v1438_v6, %s3313_s19 }
 0xcb2   :  { %v1441_v5 = vpop.permute.xlu0 %1440 }
 0xcb3   :  { %v1443_v50 = vmul.f32 %v1441_v5, %v3770_v56 }
 0xcb5   :  { %1445 = vrot.lane.b32.xlu1 %v1443_v50, %s3314_s22 }
 0xd27   :  { %v1446_v17 = vpop.permute.xlu1 %1445 }
 0xd28   :  { %1449 = vst.msk [vmem:[#allocation3 + $0x18] sm:$0xff] %vm196_vm5, %v1446_v17  ;;  %3022 = vmatmul.mubr.msk.f32.vlgmr.msra.gmra.mrb[10].mxu0 %vm196_vm5, %v1446_v17 }
 0xd29   :  { %3095 = vmatpush3.bf16.msra.mxu0 %v3372_v4  ;;  %3043 = vmatprep.mubr.msk.f32.mxu0 %vm3305_vm2, %v3306_v10 }
 0xd2a   :  { %3096 = vmatprep.subr.bf16.mxu0 %v3304_v3 }
 0xd2d   :  { %3098 = vmatpush3.bf16.msra.mxu0 %v3389_v9 }
 0xdfb   :  { %v1520_v56 = vpop.f32.mrb[10].mxu0 }
 0xdfc   :  { %v3826_v1 = vadd.f32 %v1520_v56, %v160_v58  ;;  %v3023_v57 = vpop.f32.mrb[11].mxu0 }
 0xdfe   :  { %v1528_v62 = vand.u32 2139095040, %v3826_v1  ;;  %v1525_v12 = vand.u32 2147483647, %v3826_v1  ;;  %vm1527_vm14 = vcmp.lt.s32.totalorder %v3826_v1, 0  ;;  %vm1617_vm7 = vweird.f32 %v3826_v1 }
 0xe00   :  { %v1529_v2 = vshrl.u32 %v1528_v62, 23  ;;  %v1532_v49 = vand.u32 8388607, %v1525_v12  ;;  %vm1526_vm15 = vcmp.le.f32.partialorder %v1525_v12, 0.7853982 }
 0xe02   :  { %v2862_v7 = vadd.s32 4294967169, %v1529_v2  ;;  %v1533_v27 = vor.u32 8388608, %v1532_v49 }
 0xe04   :  { %v1535_v8 = vadd.s32 1, %v2862_v7  ;;  %v1573_v46 = vshll.u32 %v1533_v27, 8 }
 0xe06   :  { %vm1536_vm1 = vcmp.gt.s32.totalorder %v1535_v8, 0 }
 0xe07   :  { %v1537_v14 = vsel %vm1536_vm1, %v1535_v8, 0 }
 0xe08   :  { %v1539_v55 = vand.u32 31, %v1537_v14  ;;  %v1538_v15 = vshrl.u32 %v1537_v14, 5 }
 0xe0a   :  { %v1540_v11 = vsub.s32 32, %v1539_v55  ;;  %v1542_v53 = vshll.u32 %v3307_v28, %v1539_v55  ;;  %v1545_v61 = vshll.u32 %v3308_v30, %v1539_v55  ;;  %v1548_v20 = vshll.u32 %v3309_v33, %v1539_v55 }
 0xe0b   :  { %v1551_v23 = vshll.u32 %v3310_v36, %v1539_v55  ;;  %v1554_v25 = vshll.u32 %v3311_v39, %v1539_v55  ;;  %vm1557_vm8 = vcmp.lt.s32.totalorder %v1538_v15, 1  ;;  %vm1560_vm9 = vcmp.lt.s32.totalorder %v1538_v15, 4 }
 0xe0c   :  { %v1543_v18 = vshrl.u32 %v3308_v30, %v1540_v11  ;;  %v1546_v19 = vshrl.u32 %v3309_v33, %v1540_v11  ;;  %v1549_v21 = vshrl.u32 %v3310_v36, %v1540_v11  ;;  %v1552_v24 = vshrl.u32 %v3311_v39, %v1540_v11 }
 0xe0d   :  { %v1555_v26 = vshrl.u32 %v3312_v42, %v1540_v11  ;;  %v1541_v40 = vshrl.u32 %v3307_v28, %v1540_v11  ;;  %vm1559_vm10 = vcmp.lt.s32.totalorder %v1538_v15, 3  ;;  %vm1558_vm11 = vcmp.lt.s32.totalorder %v1538_v15, 2 }
 0xe0e   :  { %v1544_v29 = vor.u32 %v1543_v18, %v1542_v53  ;;  %v1547_v31 = vor.u32 %v1546_v19, %v1545_v61  ;;  %v1550_v59 = vor.u32 %v1549_v21, %v1548_v20  ;;  %v1553_v32 = vor.u32 %v1552_v24, %v1551_v23 }
 0xe0f   :  { %v1556_v34 = vor.u32 %v1555_v26, %v1554_v25  ;;  %v2866_v20 = vmul.f32 -1.442695, %v3826_v1 }
 0xe10   :  { %v1562_v35 = vsel %vm1560_vm9, %v1550_v59, 2102212464  ;;  %v1565_v37 = vsel %vm1557_vm8, %v1544_v29, %v1547_v31  ;;  %v1569_v38 = vsel %vm1557_vm8, %v1547_v31, %v1550_v59  ;;  %v1566_v41 = vsel %vm1560_vm9, %v1553_v32, 920167782 }
 0xe11   :  { %v1570_v43 = vsel %vm1560_vm9, %v1556_v34, 1326507024  ;;  %v1567_v44 = vsel %vm1559_vm10, %v1550_v59, %v1566_v41  ;;  %v1561_v47 = vsel %vm1557_vm8, %v1541_v40, %v1544_v29  ;;  %v1563_v48 = vsel %vm1559_vm10, %v1547_v31, %v1562_v35 }
 0xe12   :  { %v1571_v45 = vsel %vm1559_vm10, %v1553_v32, %v1570_v43  ;;  %v1568_v16 = vsel %vm1558_vm11, %v1565_v37, %v1567_v44  ;;  %v1564_v17 = vsel %vm1558_vm11, %v1561_v47, %v1563_v48  ;;  %3230 = vpow2.f32 %v2866_v20 }
 0xe13   :  { %v1572_v0 = vsel %vm1558_vm11, %v1569_v38, %v1571_v45  ;;  %v3846_v5 = vmul.u32.u64.low %v1573_v46, %v1568_v16  ;;  %v3847_v50 = vmul.u32.u64.high %v1573_v46, %v1568_v16, %v3846_v5  ;;  %v1580_v56 = vmul.u32 %v1573_v46, %v1564_v17 }
 0xe14   :  { %v3843_v13 = vmul.u32.u64.low %v1573_v46, %v1572_v0  ;;  %v3844_v6 = vmul.u32.u64.high %v1573_v46, %v1572_v0, %v3843_v13 }
 0xe15   :  { %v1583_v58 = vadd.s32 1, %v3847_v50 }
 0xe16   :  { %vm1582_vm12 = vc.u32 %v3844_v6, %v3846_v5  ;;  %v1581_v61 = vadd.s32 %v3846_v5, %v3844_v6 }
 0xe17   :  { %v1584_v57 = vsel %vm1582_vm12, %v1583_v58, %v3847_v50 }
 0xe18   :  { %v1585_v62 = vadd.s32 %v1584_v57, %v1580_v56 }
 0xe1a   :  { %v1586_v2 = vadd.s32 536870912, %v1585_v62 }
 0xe1c   :  { %v1587_v7 = vshrl.u32 %v1586_v2, 30  ;;  %v3231_v38 = vpop.eup %3230 }
 0xe1d   :  { %v1632_v43 = vadd.f32 1.0, %v3231_v38 }
 0xe1e   :  { %v1588_v8 = vshll.u32 %v1587_v7, 30  ;;  %v1611_v32 = vsub.s32 4, %v1587_v7 }
 0xe20   :  { %v1589_v14 = vsub.s32 %v1585_v62, %v1588_v8  ;;  %v1612_v37 = vsel %vm1527_vm14, %v1611_v32, %v1587_v7 }
 0xe21   :  { %v1614_v41 = vsel %vm1526_vm15, 0, %v1612_v37 }
 0xe22   :  { %v1591_v55 = vsub.s32 0, %v1589_v14  ;;  %v1618_v44 = vadd.s32 3, %v1614_v41 }
 0xe24   :  { %v2863_v49 = vmin.u32 %v1591_v55, %v1589_v14  ;;  %v1619_v45 = vand.u32 3, %v1618_v44 }
 0xe26   :  { %v1593_v11 = vclz %v2863_v49  ;;  %vm1624_vm3 = vcmp.eq.s32.totalorder %v1619_v45, 2  ;;  %vm1621_vm4 = vcmp.eq.s32.totalorder %v1619_v45, 0  ;;  %vm1620_vm6 = vcmp.lt.s32.totalorder %v1619_v45, 2 }
 0xe28   :  { %v2864_v15 = vadd.s32 4294967294, %v1593_v11 }
 0xe2a   :  { %vm2865_vm13 = vcmp.lt.s32.totalorder %v2864_v15, 0 }
 0xe2b   :  { %v1596_v53 = vsel %vm2865_vm13, 0, %v2864_v15 }
 0xe2c   :  { %v1597_v18 = vsub.s32 32, %v1596_v53  ;;  %v1601_v19 = vsub.s32 4294967266, %v1596_v53  ;;  %v1598_v21 = vshll.u32 %v1589_v14, %v1596_v53 }
 0xe2e   :  { %v1599_v23 = vshrl.u32 %v1581_v61, %v1597_v18  ;;  %v1602_v24 = vadd.s32 127, %v1601_v19 }
 0xe30   :  { %v1600_v25 = vor.u32 %v1599_v23, %v1598_v21  ;;  %v1603_v26 = vshll.u32 %v1602_v24, 23 }
 0xe32   :  { %v1604_v27 = vor.u32 4788187, %v1603_v26  ;;  %v1607_v31 = vcvt.s32.f32 %v1600_v25 }
 0xe34   :  { %v1605_v29 = vand.u32 2147483647, %v1604_v27 }
 0xe36   :  { %v1608_v59 = vmul.f32 %v1607_v31, %v1605_v29 }
 0xe38   :  { %v1609_v34 = vxor.u32 2147483648, %v1608_v59 }
 0xe3a   :  { %v1610_v35 = vsel %vm1527_vm14, %v1609_v34, %v1608_v59 }
 0xe3b   :  { %v1613_v40 = vsel %vm1526_vm15, %v3826_v1, %v1610_v35 }
 0xe3c   :  { %3232 = vcosq.f32 %v1613_v40 }
 0xe3d   :  { %3234 = vsinq.f32 %v1613_v40 }
 0xe3e   :  { %3236 = vrcp.f32 %v1632_v43 }
 0xe46   :  { %v3233_v46 = vpop.eup %3232 }
 0xe47   :  { %v3235_v47 = vpop.eup %3234  ;;  %v1625_v48 = vxor.u32 2147483648, %v3233_v46 }
 0xe48   :  { %v1622_v16 = vxor.u32 2147483648, %v3235_v47  ;;  %v3237_v6 = vpop.eup %3236 }
 0xe49   :  { %v1626_v0 = vsel %vm1624_vm3, %v1625_v48, %v3235_v47 }
 0xe4a   :  { %v1623_v12 = vsel %vm1621_vm4, %v3233_v46, %v1622_v16 }
 0xe4b   :  { %v1627_v13 = vsel %vm1620_vm6, %v1623_v12, %v1626_v0 }
 0xe4c   :  { %v1628_v5 = vsel %vm1617_vm7, nan, %v1627_v13 }
 0xe4d   :  { %v3861_v50 = vsel %vm3448_vm0, %v1628_v5, %v3237_v6 }
 0xe4e   :  { %1640 = vrot.lane.b32.xlu0 %v3861_v50, %s3313_s19  ;;  %2867 = vst [vmem:[%s4241_s7 + $0x20] sm:$0xff] %v3861_v50  ;;  %v1638_v1 = vmul.f32 %v3861_v50, %v3782_v63 }
 0xec0   :  { %v1641_v17 = vpop.permute.xlu0 %1640 }
 0xec1   :  { %v1643_v58 = vmul.f32 %v1641_v17, %v3861_v50 }
 0xec3   :  { %1645 = vrot.lane.b32.xlu1 %v1643_v58, %s3313_s19 }
 0xf35   :  { %v1646_v56 = vpop.permute.xlu1 %1645 }
 0xf36   :  { %v3873_v57 = vadd.f32 %v1646_v56, %v1638_v1 }
 0xf38   :  { %v1652_v62 = vand.u32 2139095040, %v3873_v57  ;;  %v1649_v14 = vand.u32 2147483647, %v3873_v57  ;;  %vm1651_vm14 = vcmp.lt.s32.totalorder %v3873_v57, 0  ;;  %vm1741_vm7 = vweird.f32 %v3873_v57 }
 0xf3a   :  { %v1653_v2 = vshrl.u32 %v1652_v62, 23  ;;  %v1656_v15 = vand.u32 8388607, %v1649_v14  ;;  %vm1650_vm15 = vcmp.le.f32.partialorder %v1649_v14, 0.7853982 }
 0xf3c   :  { %v2868_v7 = vadd.s32 4294967169, %v1653_v2  ;;  %v1657_v27 = vor.u32 8388608, %v1656_v15 }
 0xf3e   :  { %v1659_v8 = vadd.s32 1, %v2868_v7  ;;  %v1697_v46 = vshll.u32 %v1657_v27, 8 }
 0xf40   :  { %vm1660_vm1 = vcmp.gt.s32.totalorder %v1659_v8, 0 }
 0xf41   :  { %v1661_v55 = vsel %vm1660_vm1, %v1659_v8, 0 }
 0xf42   :  { %v1663_v49 = vand.u32 31, %v1661_v55  ;;  %v1662_v53 = vshrl.u32 %v1661_v55, 5 }
 0xf44   :  { %v1664_v11 = vsub.s32 32, %v1663_v49  ;;  %v1666_v63 = vshll.u32 %v3307_v28, %v1663_v49  ;;  %v1669_v61 = vshll.u32 %v3308_v30, %v1663_v49  ;;  %v1672_v20 = vshll.u32 %v3309_v33, %v1663_v49 }
 0xf45   :  { %v1675_v23 = vshll.u32 %v3310_v36, %v1663_v49  ;;  %v1678_v25 = vshll.u32 %v3311_v39, %v1663_v49  ;;  %vm1681_vm8 = vcmp.lt.s32.totalorder %v1662_v53, 1  ;;  %vm1684_vm9 = vcmp.lt.s32.totalorder %v1662_v53, 4 }
 0xf46   :  { %v1667_v18 = vshrl.u32 %v3308_v30, %v1664_v11  ;;  %v1670_v19 = vshrl.u32 %v3309_v33, %v1664_v11  ;;  %v1673_v21 = vshrl.u32 %v3310_v36, %v1664_v11  ;;  %v1676_v24 = vshrl.u32 %v3311_v39, %v1664_v11 }
 0xf47   :  { %v1679_v26 = vshrl.u32 %v3312_v42, %v1664_v11  ;;  %v1665_v40 = vshrl.u32 %v3307_v28, %v1664_v11  ;;  %vm1683_vm10 = vcmp.lt.s32.totalorder %v1662_v53, 3  ;;  %vm1682_vm11 = vcmp.lt.s32.totalorder %v1662_v53, 2 }
 0xf48   :  { %v1668_v29 = vor.u32 %v1667_v18, %v1666_v63  ;;  %v1671_v31 = vor.u32 %v1670_v19, %v1669_v61  ;;  %v1674_v59 = vor.u32 %v1673_v21, %v1672_v20  ;;  %v1677_v32 = vor.u32 %v1676_v24, %v1675_v23 }
 0xf49   :  { %v1680_v34 = vor.u32 %v1679_v26, %v1678_v25 }
 0xf4a   :  { %v1686_v35 = vsel %vm1684_vm9, %v1674_v59, 2102212464  ;;  %v1689_v37 = vsel %vm1681_vm8, %v1668_v29, %v1671_v31  ;;  %v1693_v38 = vsel %vm1681_vm8, %v1671_v31, %v1674_v59  ;;  %v1690_v41 = vsel %vm1684_vm9, %v1677_v32, 920167782 }
 0xf4b   :  { %v1694_v43 = vsel %vm1684_vm9, %v1680_v34, 1326507024  ;;  %v1691_v44 = vsel %vm1683_vm10, %v1674_v59, %v1690_v41  ;;  %v1685_v47 = vsel %vm1681_vm8, %v1665_v40, %v1668_v29  ;;  %v1687_v48 = vsel %vm1683_vm10, %v1671_v31, %v1686_v35 }
 0xf4c   :  { %v1695_v45 = vsel %vm1683_vm10, %v1677_v32, %v1694_v43  ;;  %v1692_v16 = vsel %vm1682_vm11, %v1689_v37, %v1691_v44  ;;  %v1688_v17 = vsel %vm1682_vm11, %v1685_v47, %v1687_v48 }
 0xf4d   :  { %v1696_v0 = vsel %vm1682_vm11, %v1693_v38, %v1695_v45  ;;  %v3893_v6 = vmul.u32.u64.low %v1697_v46, %v1692_v16  ;;  %v3894_v5 = vmul.u32.u64.high %v1697_v46, %v1692_v16, %v3893_v6  ;;  %v1704_v1 = vmul.u32 %v1697_v46, %v1688_v17 }
 0xf4e   :  { %v3890_v12 = vmul.u32.u64.low %v1697_v46, %v1696_v0  ;;  %v3891_v13 = vmul.u32.u64.high %v1697_v46, %v1696_v0, %v3890_v12 }
 0xf4f   :  { %v1707_v58 = vadd.s32 1, %v3894_v5 }
 0xf50   :  { %vm1706_vm12 = vc.u32 %v3891_v13, %v3893_v6  ;;  %v1705_v61 = vadd.s32 %v3893_v6, %v3891_v13  ;;  %v165_v6 = vadd.f32 %v3731_v52, %v3621_v51 }
 0xf51   :  { %v1708_v56 = vsel %vm1706_vm12, %v1707_v58, %v3894_v5 }
 0xf52   :  { %v1709_v62 = vadd.s32 %v1708_v56, %v1704_v1 }
 0xf54   :  { %v1710_v2 = vadd.s32 536870912, %v1709_v62 }
 0xf56   :  { %v1711_v7 = vshrl.u32 %v1710_v2, 30 }
 0xf58   :  { %v1712_v8 = vshll.u32 %v1711_v7, 30  ;;  %v1735_v59 = vsub.s32 4, %v1711_v7 }
 0xf5a   :  { %v1713_v55 = vsub.s32 %v1709_v62, %v1712_v8  ;;  %v1736_v35 = vsel %vm1651_vm14, %v1735_v59, %v1711_v7 }
 0xf5b   :  { %v1738_v38 = vsel %vm1650_vm15, 0, %v1736_v35 }
 0xf5c   :  { %v1715_v49 = vsub.s32 0, %v1713_v55  ;;  %v1742_v40 = vadd.s32 3, %v1738_v38 }
 0xf5e   :  { %v2869_v11 = vmin.u32 %v1715_v49, %v1713_v55  ;;  %v1743_v41 = vand.u32 3, %v1742_v40 }
 0xf60   :  { %v1717_v15 = vclz %v2869_v11  ;;  %vm1748_vm3 = vcmp.eq.s32.totalorder %v1743_v41, 2  ;;  %vm1745_vm4 = vcmp.eq.s32.totalorder %v1743_v41, 0  ;;  %vm1744_vm6 = vcmp.lt.s32.totalorder %v1743_v41, 2 }
 0xf62   :  { %v2870_v53 = vadd.s32 4294967294, %v1717_v15 }
 0xf64   :  { %vm2871_vm13 = vcmp.lt.s32.totalorder %v2870_v53, 0 }
 0xf65   :  { %v1720_v63 = vsel %vm2871_vm13, 0, %v2870_v53 }
 0xf66   :  { %v1721_v18 = vsub.s32 32, %v1720_v63  ;;  %v1725_v19 = vsub.s32 4294967266, %v1720_v63  ;;  %v1722_v20 = vshll.u32 %v1713_v55, %v1720_v63 }
 0xf68   :  { %v1723_v21 = vshrl.u32 %v1705_v61, %v1721_v18  ;;  %v1726_v23 = vadd.s32 127, %v1725_v19 }
 0xf6a   :  { %v1724_v24 = vor.u32 %v1723_v21, %v1722_v20  ;;  %v1727_v25 = vshll.u32 %v1726_v23, 23 }
 0xf6c   :  { %v1728_v26 = vor.u32 4788187, %v1727_v25  ;;  %v1731_v29 = vcvt.s32.f32 %v1724_v24 }
 0xf6e   :  { %v1729_v27 = vand.u32 2147483647, %v1728_v26 }
 0xf70   :  { %v1732_v31 = vmul.f32 %v1731_v29, %v1729_v27 }
 0xf72   :  { %v1733_v32 = vxor.u32 2147483648, %v1732_v31 }
 0xf74   :  { %v1734_v34 = vsel %vm1651_vm14, %v1733_v32, %v1732_v31 }
 0xf75   :  { %v1737_v37 = vsel %vm1650_vm15, %v3873_v57, %v1734_v34 }
 0xf76   :  { %3238 = vcosq.f32 %v1737_v37 }
 0xf77   :  { %3240 = vsinq.f32 %v1737_v37 }
 0xf80   :  { %v3239_v43 = vpop.eup %3238 }
 0xf81   :  { %v3241_v44 = vpop.eup %3240  ;;  %v1749_v45 = vxor.u32 2147483648, %v3239_v43 }
 0xf82   :  { %v1746_v46 = vxor.u32 2147483648, %v3241_v44 }
 0xf83   :  { %v1750_v47 = vsel %vm1748_vm3, %v1749_v45, %v3241_v44 }
 0xf84   :  { %v1747_v48 = vsel %vm1745_vm4, %v3239_v43, %v1746_v46 }
 0xf85   :  { %v1751_v14 = vsel %vm1744_vm6, %v1747_v48, %v1750_v47 }
 0xf86   :  { %v1752_v16 = vsel %vm1741_vm7, nan, %v1751_v14 }
 0xf87   :  { %1754 = vrot.lane.b32.xlu0 %v1752_v16, %s3313_s19 }
 0xff9   :  { %v1755_v0 = vpop.permute.xlu0 %1754 }
 0xffa   :  { %v1757_v12 = vmul.f32 %v1755_v0, %v3861_v50 }
 0xffc   :  { %1759 = vrot.lane.b32.xlu1 %v1757_v12, %s3314_s22 }
0x106e   :  { %v1760_v13 = vpop.permute.xlu1 %1759 }
0x106f   :  { %1763 = vst.msk [vmem:[#allocation3 + $0x20] sm:$0xff] %vm196_vm5, %v1760_v13  ;;  %3033 = vmatmul.mubr.msk.f32.vlgmr.msra.gmra.mrb[6].mxu1 %vm196_vm5, %v1760_v13 }
0x1070   :  { %3101 = vmatpush3.bf16.msra.mxu1 %v3372_v4  ;;  %3054 = vmatprep.mubr.msk.f32.mxu1 %vm3305_vm2, %v3306_v10 }
0x1071   :  { %3102 = vmatprep.subr.bf16.mxu1 %v3304_v3 }
0x1074   :  { %3104 = vmatpush3.bf16.msra.mxu1 %v3389_v9 }
0x1142   :  { %v1834_v50 = vpop.f32.mrb[6].mxu1 }
0x1143   :  { %v3917_v5 = vadd.f32 %v1834_v50, %v165_v6  ;;  %v3034_v17 = vpop.f32.mrb[7].mxu1 }
0x1145   :  { %v1842_v58 = vand.u32 2139095040, %v3917_v5  ;;  %v1839_v4 = vand.u32 2147483647, %v3917_v5  ;;  %vm1841_vm13 = vcmp.lt.s32.totalorder %v3917_v5, 0  ;;  %vm1931_vm6 = vweird.f32 %v3917_v5 }
0x1147   :  { %v1843_v1 = vshrl.u32 %v1842_v58, 23  ;;  %v1846_v3 = vand.u32 8388607, %v1839_v4  ;;  %vm1840_vm14 = vcmp.le.f32.partialorder %v1839_v4, 0.7853982 }
0x1149   :  { %v2873_v56 = vadd.s32 4294967169, %v1843_v1  ;;  %v1847_v18 = vor.u32 8388608, %v1846_v3 }
0x114b   :  { %v1849_v62 = vadd.s32 1, %v2873_v56  ;;  %v1887_v35 = vshll.u32 %v1847_v18, 8 }
0x114d   :  { %vm1850_vm1 = vcmp.gt.s32.totalorder %v1849_v62, 0 }
0x114e   :  { %v1851_v10 = vsel %vm1850_vm1, %v1849_v62, 0 }
0x114f   :  { %v1853_v2 = vand.u32 31, %v1851_v10  ;;  %v1852_v7 = vshrl.u32 %v1851_v10, 5 }
0x1151   :  { %v1854_v9 = vsub.s32 32, %v1853_v2  ;;  %v1856_v51 = vshll.u32 %v3307_v28, %v1853_v2  ;;  %v1859_v52 = vshll.u32 %v3308_v30, %v1853_v2  ;;  %v1862_v49 = vshll.u32 %v3309_v33, %v1853_v2 }
0x1152   :  { %v1865_v15 = vshll.u32 %v3310_v36, %v1853_v2  ;;  %v1868_v63 = vshll.u32 %v3311_v39, %v1853_v2  ;;  %vm1871_vm2 = vcmp.lt.s32.totalorder %v1852_v7, 1  ;;  %vm1874_vm8 = vcmp.lt.s32.totalorder %v1852_v7, 4 }
0x1153   :  { %v1857_v8 = vshrl.u32 %v3308_v30, %v1854_v9  ;;  %v1860_v55 = vshrl.u32 %v3309_v33, %v1854_v9  ;;  %v1863_v11 = vshrl.u32 %v3310_v36, %v1854_v9  ;;  %v1866_v53 = vshrl.u32 %v3311_v39, %v1854_v9 }
0x1154   :  { %v1869_v61 = vshrl.u32 %v3312_v42, %v1854_v9  ;;  %v1855_v29 = vshrl.u32 %v3307_v28, %v1854_v9  ;;  %vm1873_vm9 = vcmp.lt.s32.totalorder %v1852_v7, 3  ;;  %vm1872_vm10 = vcmp.lt.s32.totalorder %v1852_v7, 2 }
0x1155   :  { %v1858_v19 = vor.u32 %v1857_v8, %v1856_v51  ;;  %v1861_v20 = vor.u32 %v1860_v55, %v1859_v52  ;;  %v1864_v21 = vor.u32 %v1863_v11, %v1862_v49  ;;  %v1867_v23 = vor.u32 %v1866_v53, %v1865_v15 }
0x1156   :  { %v1870_v24 = vor.u32 %v1869_v61, %v1868_v63  ;;  %v2877_v9 = vmul.f32 -1.442695, %v3917_v5 }
0x1157   :  { %v1876_v25 = vsel %vm1874_vm8, %v1864_v21, 2102212464  ;;  %v1879_v26 = vsel %vm1871_vm2, %v1858_v19, %v1861_v20  ;;  %v1883_v27 = vsel %vm1871_vm2, %v1861_v20, %v1864_v21  ;;  %v1880_v31 = vsel %vm1874_vm8, %v1867_v23, 920167782 }
0x1158   :  { %v1884_v59 = vsel %vm1874_vm8, %v1870_v24, 1326507024  ;;  %v1881_v32 = vsel %vm1873_vm9, %v1864_v21, %v1880_v31  ;;  %v1875_v37 = vsel %vm1871_vm2, %v1855_v29, %v1858_v19  ;;  %v1877_v38 = vsel %vm1873_vm9, %v1861_v20, %v1876_v25 }
0x1159   :  { %v1885_v34 = vsel %vm1873_vm9, %v1867_v23, %v1884_v59  ;;  %v1882_v40 = vsel %vm1872_vm10, %v1879_v26, %v1881_v32  ;;  %v1878_v47 = vsel %vm1872_vm10, %v1875_v37, %v1877_v38  ;;  %3242 = vpow2.f32 %v2877_v9 }
0x115a   :  { %v1886_v41 = vsel %vm1872_vm10, %v1883_v27, %v1885_v34  ;;  %v3937_v45 = vmul.u32.u64.low %v1887_v35, %v1882_v40  ;;  %v3938_v46 = vmul.u32.u64.high %v1887_v35, %v1882_v40, %v3937_v45  ;;  %v1894_v14 = vmul.u32 %v1887_v35, %v1878_v47 }
0x115b   :  { %v3934_v43 = vmul.u32.u64.low %v1887_v35, %v1886_v41  ;;  %v3935_v44 = vmul.u32.u64.high %v1887_v35, %v1886_v41, %v3934_v43 }
0x115c   :  { %v1897_v48 = vadd.s32 1, %v3938_v46 }
0x115d   :  { %vm1896_vm11 = vc.u32 %v3935_v44, %v3937_v45  ;;  %v1895_v10 = vadd.s32 %v3937_v45, %v3935_v44 }
0x115e   :  { %v1898_v16 = vsel %vm1896_vm11, %v1897_v48, %v3938_v46 }
0x115f   :  { %v1899_v0 = vadd.s32 %v1898_v16, %v1894_v14 }
0x1161   :  { %v1900_v12 = vadd.s32 536870912, %v1899_v0 }
0x1163   :  { %v1901_v13 = vshrl.u32 %v1900_v12, 30  ;;  %v3243_v20 = vpop.eup %3242 }
0x1164   :  { %v1946_v24 = vadd.f32 1.0, %v3243_v20 }
0x1165   :  { %v1902_v6 = vshll.u32 %v1901_v13, 30  ;;  %v1925_v63 = vsub.s32 4, %v1901_v13 }
0x1167   :  { %v1903_v50 = vsub.s32 %v1899_v0, %v1902_v6  ;;  %v1926_v19 = vsel %vm1841_vm13, %v1925_v63, %v1901_v13 }
0x1168   :  { %v1928_v23 = vsel %vm1840_vm14, 0, %v1926_v19 }
0x1169   :  { %v1905_v17 = vsub.s32 0, %v1903_v50  ;;  %v1932_v25 = vadd.s32 3, %v1928_v23 }
0x116b   :  { %v2874_v58 = vmin.u32 %v1905_v17, %v1903_v50  ;;  %v1933_v26 = vand.u32 3, %v1932_v25 }
0x116d   :  { %v1907_v1 = vclz %v2874_v58  ;;  %vm1938_vm15 = vcmp.eq.s32.totalorder %v1933_v26, 2  ;;  %vm1935_vm3 = vcmp.eq.s32.totalorder %v1933_v26, 0  ;;  %vm1934_vm4 = vcmp.lt.s32.totalorder %v1933_v26, 2 }
0x116f   :  { %v2875_v56 = vadd.s32 4294967294, %v1907_v1 }
0x1171   :  { %vm2876_vm12 = vcmp.lt.s32.totalorder %v2875_v56, 0 }
0x1172   :  { %v1910_v62 = vsel %vm2876_vm12, 0, %v2875_v56 }
0x1173   :  { %v1911_v2 = vsub.s32 32, %v1910_v62  ;;  %v1915_v3 = vsub.s32 4294967266, %v1910_v62  ;;  %v1912_v7 = vshll.u32 %v1903_v50, %v1910_v62 }
0x1175   :  { %v1913_v51 = vshrl.u32 %v1895_v10, %v1911_v2  ;;  %v1916_v52 = vadd.s32 127, %v1915_v3 }
0x1177   :  { %v1914_v8 = vor.u32 %v1913_v51, %v1912_v7  ;;  %v1917_v55 = vshll.u32 %v1916_v52, 23 }
0x1179   :  { %v1918_v49 = vor.u32 4788187, %v1917_v55  ;;  %v1921_v15 = vcvt.s32.f32 %v1914_v8 }
0x117b   :  { %v1919_v11 = vand.u32 2147483647, %v1918_v49 }
0x117d   :  { %v1922_v53 = vmul.f32 %v1921_v15, %v1919_v11 }
0x117f   :  { %v1923_v61 = vxor.u32 2147483648, %v1922_v53 }
0x1181   :  { %v1924_v18 = vsel %vm1841_vm13, %v1923_v61, %v1922_v53 }
0x1182   :  { %v1927_v21 = vsel %vm1840_vm14, %v3917_v5, %v1924_v18 }
0x1183   :  { %3244 = vcosq.f32 %v1927_v21 }
0x1184   :  { %3246 = vsinq.f32 %v1927_v21 }
0x1185   :  { %3248 = vrcp.f32 %v1946_v24 }
0x118d   :  { %v3245_v27 = vpop.eup %3244 }
0x118e   :  { %v3247_v29 = vpop.eup %3246  ;;  %v1939_v31 = vxor.u32 2147483648, %v3245_v27 }
0x118f   :  { %v1936_v59 = vxor.u32 2147483648, %v3247_v29  ;;  %v3249_v35 = vpop.eup %3248 }
0x1190   :  { %v1940_v32 = vsel %vm1938_vm15, %v1939_v31, %v3247_v29 }
0x1191   :  { %v1937_v4 = vsel %vm1935_vm3, %v3245_v27, %v1936_v59 }
0x1192   :  { %v1941_v34 = vsel %vm1934_vm4, %v1937_v4, %v1940_v32 }
0x1193   :  { %v1942_v37 = vsel %vm1931_vm6, nan, %v1941_v34 }
0x1194   :  { %v3952_v38 = vsel %vm3448_vm0, %v1942_v37, %v3249_v35 }
0x1195   :  { %1954 = vrot.lane.b32.xlu0 %v3952_v38, %s3313_s19  ;;  %2878 = vst [vmem:[%s4241_s7 + $0x28] sm:$0xff] %v3952_v38  ;;  %v1952_v5 = vmul.f32 %v3952_v38, %v3873_v57 }
0x1207   :  { %v1955_v40 = vpop.permute.xlu0 %1954 }
0x1208   :  { %v1957_v41 = vmul.f32 %v1955_v40, %v3952_v38 }
0x120a   :  { %1959 = vrot.lane.b32.xlu1 %v1957_v41, %s3313_s19 }
0x127c   :  { %v1960_v43 = vpop.permute.xlu1 %1959 }
0x127d   :  { %v3964_v44 = vadd.f32 %v1960_v43, %v1952_v5 }
0x127f   :  { %v1966_v45 = vand.u32 2139095040, %v3964_v44  ;;  %v1963_v14 = vand.u32 2147483647, %v3964_v44  ;;  %vm1965_vm12 = vcmp.lt.s32.totalorder %v3964_v44, 0  ;;  %vm2055_vm4 = vweird.f32 %v3964_v44 }
0x1281   :  { %v1967_v46 = vshrl.u32 %v1966_v45, 23  ;;  %v1970_v13 = vand.u32 8388607, %v1963_v14  ;;  %vm1964_vm13 = vcmp.le.f32.partialorder %v1963_v14, 0.7853982 }
0x1283   :  { %v2879_v47 = vadd.s32 4294967169, %v1967_v46  ;;  %v1971_v9 = vor.u32 8388608, %v1970_v13 }
0x1285   :  { %v1973_v48 = vadd.s32 1, %v2879_v47  ;;  %v2011_v20 = vshll.u32 %v1971_v9, 8 }
0x1287   :  { %vm1974_vm7 = vcmp.gt.s32.totalorder %v1973_v48, 0 }
0x1288   :  { %v1975_v16 = vsel %vm1974_vm7, %v1973_v48, 0 }
0x1289   :  { %v1977_v0 = vand.u32 31, %v1975_v16  ;;  %v1976_v6 = vshrl.u32 %v1975_v16, 5 }
0x128b   :  { %v1978_v12 = vsub.s32 32, %v1977_v0  ;;  %v1980_v57 = vshll.u32 %v3307_v28, %v1977_v0  ;;  %v1983_v50 = vshll.u32 %v3308_v30, %v1977_v0  ;;  %v1986_v1 = vshll.u32 %v3309_v33, %v1977_v0 }
0x128c   :  { %v1989_v62 = vshll.u32 %v3310_v36, %v1977_v0  ;;  %v1992_v2 = vshll.u32 %v3311_v39, %v1977_v0  ;;  %vm1995_vm1 = vcmp.lt.s32.totalorder %v1976_v6, 1  ;;  %vm1998_vm2 = vcmp.lt.s32.totalorder %v1976_v6, 4 }
0x128d   :  { %v1981_v17 = vshrl.u32 %v3308_v30, %v1978_v12  ;;  %v1984_v58 = vshrl.u32 %v3309_v33, %v1978_v12  ;;  %v1987_v56 = vshrl.u32 %v3310_v36, %v1978_v12  ;;  %v1990_v10 = vshrl.u32 %v3311_v39, %v1978_v12 }
0x128e   :  { %v1993_v3 = vshrl.u32 %v3312_v42, %v1978_v12  ;;  %v1979_v53 = vshrl.u32 %v3307_v28, %v1978_v12  ;;  %vm1997_vm8 = vcmp.lt.s32.totalorder %v1976_v6, 3  ;;  %vm1996_vm9 = vcmp.lt.s32.totalorder %v1976_v6, 2 }
0x128f   :  { %v1982_v7 = vor.u32 %v1981_v17, %v1980_v57  ;;  %v1985_v51 = vor.u32 %v1984_v58, %v1983_v50  ;;  %v1988_v52 = vor.u32 %v1987_v56, %v1986_v1  ;;  %v1991_v8 = vor.u32 %v1990_v10, %v1989_v62 }
0x1290   :  { %v1994_v55 = vor.u32 %v1993_v3, %v1992_v2 }
0x1291   :  { %v2000_v49 = vsel %vm1998_vm2, %v1988_v52, 2102212464  ;;  %v2003_v11 = vsel %vm1995_vm1, %v1982_v7, %v1985_v51  ;;  %v2007_v15 = vsel %vm1995_vm1, %v1985_v51, %v1988_v52  ;;  %v2004_v63 = vsel %vm1998_vm2, %v1991_v8, 920167782 }
0x1292   :  { %v2008_v61 = vsel %vm1998_vm2, %v1994_v55, 1326507024  ;;  %v2005_v18 = vsel %vm1997_vm8, %v1988_v52, %v2004_v63  ;;  %v1999_v21 = vsel %vm1995_vm1, %v1979_v53, %v1982_v7  ;;  %v2001_v23 = vsel %vm1997_vm8, %v1985_v51, %v2000_v49 }
0x1293   :  { %v2009_v19 = vsel %vm1997_vm8, %v1991_v8, %v2008_v61  ;;  %v2006_v24 = vsel %vm1996_vm9, %v2003_v11, %v2005_v18  ;;  %v2002_v59 = vsel %vm1996_vm9, %v1999_v21, %v2001_v23  ;;  %v4004_v21 = vld [vmem:[%s4237_s3] ss:$0 sm:$0xff] }
0x1294   :  { %v2010_v25 = vsel %vm1996_vm9, %v2007_v15, %v2009_v19  ;;  %v3984_v29 = vmul.u32.u64.low %v2011_v20, %v2006_v24  ;;  %v3985_v31 = vmul.u32.u64.high %v2011_v20, %v2006_v24, %v3984_v29  ;;  %v2018_v4 = vmul.u32 %v2011_v20, %v2002_v59 }
0x1295   :  { %v3981_v26 = vmul.u32.u64.low %v2011_v20, %v2010_v25  ;;  %v3982_v27 = vmul.u32.u64.high %v2011_v20, %v2010_v25, %v3981_v26  ;;  %v170_v23 = vadd.f32 %v4004_v21, %v3627_v22 }
0x1296   :  { %v2021_v32 = vadd.s32 1, %v3985_v31 }
0x1297   :  { %vm2020_vm10 = vc.u32 %v3982_v27, %v3984_v29  ;;  %v2019_v16 = vadd.s32 %v3984_v29, %v3982_v27 }
0x1298   :  { %v2022_v34 = vsel %vm2020_vm10, %v2021_v32, %v3985_v31 }
0x1299   :  { %v2023_v35 = vadd.s32 %v2022_v34, %v2018_v4 }
0x129b   :  { %v2024_v37 = vadd.s32 536870912, %v2023_v35 }
0x129d   :  { %v2025_v40 = vshrl.u32 %v2024_v37, 30 }
0x129f   :  { %v2026_v41 = vshll.u32 %v2025_v40, 30  ;;  %v2049_v10 = vsub.s32 4, %v2025_v40 }
0x12a1   :  { %v2027_v5 = vsub.s32 %v2023_v35, %v2026_v41  ;;  %v2050_v9 = vsel %vm1965_vm12, %v2049_v10, %v2025_v40 }
0x12a2   :  { %v2052_v51 = vsel %vm1964_vm13, 0, %v2050_v9 }
0x12a3   :  { %v2029_v43 = vsub.s32 0, %v2027_v5  ;;  %v2056_v52 = vadd.s32 3, %v2052_v51 }
0x12a5   :  { %v2880_v45 = vmin.u32 %v2029_v43, %v2027_v5  ;;  %v2057_v8 = vand.u32 3, %v2056_v52 }
0x12a7   :  { %v2031_v46 = vclz %v2880_v45  ;;  %vm2062_vm14 = vcmp.eq.s32.totalorder %v2057_v8, 2  ;;  %vm2059_vm15 = vcmp.eq.s32.totalorder %v2057_v8, 0  ;;  %vm2058_vm3 = vcmp.lt.s32.totalorder %v2057_v8, 2 }
0x12a9   :  { %v2881_v47 = vadd.s32 4294967294, %v2031_v46 }
0x12ab   :  { %vm2882_vm11 = vcmp.lt.s32.totalorder %v2881_v47, 0 }
0x12ac   :  { %v2034_v48 = vsel %vm2882_vm11, 0, %v2881_v47 }
0x12ad   :  { %v2035_v0 = vsub.s32 32, %v2034_v48  ;;  %v2039_v12 = vsub.s32 4294967266, %v2034_v48  ;;  %v2036_v13 = vshll.u32 %v2027_v5, %v2034_v48 }
0x12af   :  { %v2037_v6 = vshrl.u32 %v2019_v16, %v2035_v0  ;;  %v2040_v57 = vadd.s32 127, %v2039_v12 }
0x12b1   :  { %v2038_v50 = vor.u32 %v2037_v6, %v2036_v13  ;;  %v2041_v17 = vshll.u32 %v2040_v57, 23 }
0x12b3   :  { %v2042_v58 = vor.u32 4788187, %v2041_v17  ;;  %v2045_v56 = vcvt.s32.f32 %v2038_v50 }
0x12b5   :  { %v2043_v1 = vand.u32 2147483647, %v2042_v58 }
0x12b7   :  { %v2046_v62 = vmul.f32 %v2045_v56, %v2043_v1 }
0x12b9   :  { %v2047_v2 = vxor.u32 2147483648, %v2046_v62 }
0x12bb   :  { %v2048_v3 = vsel %vm1965_vm12, %v2047_v2, %v2046_v62 }
0x12bc   :  { %v2051_v7 = vsel %vm1964_vm13, %v3964_v44, %v2048_v3 }
0x12bd   :  { %3250 = vcosq.f32 %v2051_v7 }
0x12be   :  { %3252 = vsinq.f32 %v2051_v7 }
0x12c7   :  { %v3251_v55 = vpop.eup %3250 }
0x12c8   :  { %v3253_v49 = vpop.eup %3252  ;;  %v2063_v11 = vxor.u32 2147483648, %v3251_v55 }
0x12c9   :  { %v2060_v15 = vxor.u32 2147483648, %v3253_v49 }
0x12ca   :  { %v2064_v53 = vsel %vm2062_vm14, %v2063_v11, %v3253_v49 }
0x12cb   :  { %v2061_v63 = vsel %vm2059_vm15, %v3251_v55, %v2060_v15 }
0x12cc   :  { %v2065_v14 = vsel %vm2058_vm3, %v2061_v63, %v2064_v53 }
0x12cd   :  { %v2066_v61 = vsel %vm2055_vm4, nan, %v2065_v14 }
0x12ce   :  { %2068 = vrot.lane.b32.xlu0 %v2066_v61, %s3313_s19 }
0x1340   :  { %v2069_v18 = vpop.permute.xlu0 %2068 }
0x1341   :  { %v2071_v19 = vmul.f32 %v2069_v18, %v3952_v38 }
0x1343   :  { %2073 = vrot.lane.b32.xlu1 %v2071_v19, %s3314_s22 }
0x13b5   :  { %v2074_v20 = vpop.permute.xlu1 %2073 }
0x13b6   :  { %2077 = vst.msk [vmem:[#allocation3 + $0x28] sm:$0xff] %vm196_vm5, %v2074_v20  ;;  %3044 = vmatmul.mubr.msk.f32.vlgmr.msra.gmra.mrb[12].mxu0 %vm196_vm5, %v2074_v20 }
0x1489   :  { %v2148_v24 = vpop.f32.mrb[12].mxu0 }
0x148a   :  { %v4008_v25 = vadd.f32 %v2148_v24, %v170_v23  ;;  %v3045_v26 = vpop.f32.mrb[13].mxu0 }
0x148c   :  { %v2156_v38 = vand.u32 2139095040, %v4008_v25  ;;  %v2153_v59 = vand.u32 2147483647, %v4008_v25  ;;  %vm2155_vm11 = vcmp.lt.s32.totalorder %v4008_v25, 0  ;;  %vm2245_vm3 = vweird.f32 %v4008_v25 }
0x148e   :  { %v2157_v27 = vshrl.u32 %v2156_v38, 23  ;;  %v2160_v34 = vand.u32 8388607, %v2153_v59  ;;  %vm2154_vm12 = vcmp.le.f32.partialorder %v2153_v59, 0.7853982 }
0x1490   :  { %v2884_v29 = vadd.s32 4294967169, %v2157_v27  ;;  %v2161_v0 = vor.u32 8388608, %v2160_v34 }
0x1492   :  { %v2163_v31 = vadd.s32 1, %v2884_v29  ;;  %v2201_v9 = vshll.u32 %v2161_v0, 8 }
0x1494   :  { %vm2164_vm6 = vcmp.gt.s32.totalorder %v2163_v31, 0 }
0x1495   :  { %v2165_v32 = vsel %vm2164_vm6, %v2163_v31, 0 }
0x1496   :  { %v2167_v4 = vand.u32 31, %v2165_v32  ;;  %v2166_v37 = vshrl.u32 %v2165_v32, 5 }
0x1498   :  { %v2168_v35 = vsub.s32 32, %v2167_v4  ;;  %v2170_v22 = vshll.u32 %v3307_v28, %v2167_v4  ;;  %v2173_v40 = vshll.u32 %v3308_v30, %v2167_v4  ;;  %v2176_v43 = vshll.u32 %v3309_v33, %v2167_v4 }
0x1499   :  { %v2179_v46 = vshll.u32 %v3310_v36, %v2167_v4  ;;  %v2182_v48 = vshll.u32 %v3311_v39, %v2167_v4  ;;  %vm2185_vm7 = vcmp.lt.s32.totalorder %v2166_v37, 1  ;;  %vm2188_vm1 = vcmp.lt.s32.totalorder %v2166_v37, 4 }
0x149a   :  { %v2171_v41 = vshrl.u32 %v3308_v30, %v2168_v35  ;;  %v2174_v5 = vshrl.u32 %v3309_v33, %v2168_v35  ;;  %v2177_v45 = vshrl.u32 %v3310_v36, %v2168_v35  ;;  %v2180_v47 = vshrl.u32 %v3311_v39, %v2168_v35 }
0x149b   :  { %v2183_v16 = vshrl.u32 %v3312_v42, %v2168_v35  ;;  %v2169_v56 = vshrl.u32 %v3307_v28, %v2168_v35  ;;  %vm2187_vm2 = vcmp.lt.s32.totalorder %v2166_v37, 3  ;;  %vm2186_vm8 = vcmp.lt.s32.totalorder %v2166_v37, 2 }
0x149c   :  { %v2172_v12 = vor.u32 %v2171_v41, %v2170_v22  ;;  %v2175_v13 = vor.u32 %v2174_v5, %v2173_v40  ;;  %v2178_v6 = vor.u32 %v2177_v45, %v2176_v43  ;;  %v2181_v57 = vor.u32 %v2180_v47, %v2179_v46 }
0x149d   :  { %v2184_v50 = vor.u32 %v2183_v16, %v2182_v48  ;;  %v2888_v35 = vmul.f32 -1.442695, %v4008_v25 }
0x149e   :  { %v2190_v17 = vsel %vm2188_vm1, %v2178_v6, 2102212464  ;;  %v2193_v58 = vsel %vm2185_vm7, %v2172_v12, %v2175_v13  ;;  %v2197_v1 = vsel %vm2185_vm7, %v2175_v13, %v2178_v6  ;;  %v2194_v62 = vsel %vm2188_vm1, %v2181_v57, 920167782 }
0x149f   :  { %v2198_v10 = vsel %vm2188_vm1, %v2184_v50, 1326507024  ;;  %v2195_v2 = vsel %vm2187_vm2, %v2178_v6, %v2194_v62  ;;  %v2189_v7 = vsel %vm2185_vm7, %v2169_v56, %v2172_v12  ;;  %v2191_v51 = vsel %vm2187_vm2, %v2175_v13, %v2190_v17 }
0x14a0   :  { %v2199_v3 = vsel %vm2187_vm2, %v2181_v57, %v2198_v10  ;;  %v2196_v52 = vsel %vm2186_vm8, %v2193_v58, %v2195_v2  ;;  %v2192_v53 = vsel %vm2186_vm8, %v2189_v7, %v2191_v51  ;;  %3254 = vpow2.f32 %v2888_v35 }
0x14a1   :  { %v2200_v8 = vsel %vm2186_vm8, %v2197_v1, %v2199_v3  ;;  %v4028_v11 = vmul.u32.u64.low %v2201_v9, %v2196_v52  ;;  %v4029_v15 = vmul.u32.u64.high %v2201_v9, %v2196_v52, %v4028_v11  ;;  %v2208_v14 = vmul.u32 %v2201_v9, %v2192_v53 }
0x14a2   :  { %v4025_v55 = vmul.u32.u64.low %v2201_v9, %v2200_v8  ;;  %v4026_v49 = vmul.u32.u64.high %v2201_v9, %v2200_v8, %v4025_v55 }
0x14a3   :  { %v2211_v63 = vadd.s32 1, %v4029_v15 }
0x14a4   :  { %vm2210_vm9 = vc.u32 %v4026_v49, %v4028_v11  ;;  %v2209_v32 = vadd.s32 %v4028_v11, %v4026_v49 }
0x14a5   :  { %v2212_v61 = vsel %vm2210_vm9, %v2211_v63, %v4029_v15 }
0x14a6   :  { %v2213_v18 = vadd.s32 %v2212_v61, %v2208_v14 }
0x14a8   :  { %v2214_v19 = vadd.s32 536870912, %v2213_v18 }
0x14aa   :  { %v2215_v20 = vshrl.u32 %v2214_v19, 30  ;;  %v3255_v13 = vpop.eup %3254 }
0x14ab   :  { %v2260_v50 = vadd.f32 1.0, %v3255_v13 }
0x14ac   :  { %v2216_v23 = vshll.u32 %v2215_v20, 30  ;;  %v2239_v48 = vsub.s32 4, %v2215_v20 }
0x14ae   :  { %v2217_v24 = vsub.s32 %v2213_v18, %v2216_v23  ;;  %v2240_v12 = vsel %vm2155_vm11, %v2239_v48, %v2215_v20 }
0x14af   :  { %v2242_v57 = vsel %vm2154_vm12, 0, %v2240_v12 }
0x14b0   :  { %v2219_v26 = vsub.s32 0, %v2217_v24  ;;  %v2246_v17 = vadd.s32 3, %v2242_v57 }
0x14b2   :  { %v2885_v38 = vmin.u32 %v2219_v26, %v2217_v24  ;;  %v2247_v58 = vand.u32 3, %v2246_v17 }
0x14b4   :  { %v2221_v27 = vclz %v2885_v38  ;;  %vm2252_vm13 = vcmp.eq.s32.totalorder %v2247_v58, 2  ;;  %vm2249_vm14 = vcmp.eq.s32.totalorder %v2247_v58, 0  ;;  %vm2248_vm15 = vcmp.lt.s32.totalorder %v2247_v58, 2 }
0x14b6   :  { %v2886_v29 = vadd.s32 4294967294, %v2221_v27 }
0x14b8   :  { %vm2887_vm10 = vcmp.lt.s32.totalorder %v2886_v29, 0 }
0x14b9   :  { %v2224_v31 = vsel %vm2887_vm10, 0, %v2886_v29 }
0x14ba   :  { %v2225_v4 = vsub.s32 32, %v2224_v31  ;;  %v2229_v34 = vsub.s32 4294967266, %v2224_v31  ;;  %v2226_v37 = vshll.u32 %v2217_v24, %v2224_v31 }
0x14bc   :  { %v2227_v22 = vshrl.u32 %v2209_v32, %v2225_v4  ;;  %v2230_v40 = vadd.s32 127, %v2229_v34 }
0x14be   :  { %v2228_v41 = vor.u32 %v2227_v22, %v2226_v37  ;;  %v2231_v5 = vshll.u32 %v2230_v40, 23 }
0x14c0   :  { %v2232_v43 = vor.u32 4788187, %v2231_v5  ;;  %v2235_v46 = vcvt.s32.f32 %v2228_v41 }
0x14c2   :  { %v2233_v45 = vand.u32 2147483647, %v2232_v43 }
0x14c4   :  { %v2236_v47 = vmul.f32 %v2235_v46, %v2233_v45 }
0x14c6   :  { %v2237_v16 = vxor.u32 2147483648, %v2236_v47 }
0x14c8   :  { %v2238_v0 = vsel %vm2155_vm11, %v2237_v16, %v2236_v47 }
0x14c9   :  { %v2241_v6 = vsel %vm2154_vm12, %v4008_v25, %v2238_v0 }
0x14ca   :  { %3256 = vcosq.f32 %v2241_v6 }
0x14cb   :  { %3258 = vsinq.f32 %v2241_v6 }
0x14cc   :  { %3260 = vrcp.f32 %v2260_v50 }
0x14d4   :  { %v3257_v1 = vpop.eup %3256 }
0x14d5   :  { %v3259_v56 = vpop.eup %3258  ;;  %v2253_v62 = vxor.u32 2147483648, %v3257_v1 }
0x14d6   :  { %v2250_v10 = vxor.u32 2147483648, %v3259_v56  ;;  %v3261_v9 = vpop.eup %3260 }
0x14d7   :  { %v2254_v2 = vsel %vm2252_vm13, %v2253_v62, %v3259_v56 }
0x14d8   :  { %v2251_v59 = vsel %vm2249_vm14, %v3257_v1, %v2250_v10 }
0x14d9   :  { %v2255_v3 = vsel %vm2248_vm15, %v2251_v59, %v2254_v2 }
0x14da   :  { %v2256_v7 = vsel %vm2245_vm3, nan, %v2255_v3 }
0x14db   :  { %v4043_v51 = vsel %vm3448_vm0, %v2256_v7, %v3261_v9 }
0x14dc   :  { %2268 = vrot.lane.b32.xlu0 %v4043_v51, %s3313_s19  ;;  %2889 = vst [vmem:[%s4241_s7 + $0x30] sm:$0xff] %v4043_v51  ;;  %v2266_v25 = vmul.f32 %v4043_v51, %v3964_v44 }
0x154e   :  { %v2269_v52 = vpop.permute.xlu0 %2268 }
0x154f   :  { %v2271_v8 = vmul.f32 %v2269_v52, %v4043_v51 }
0x1551   :  { %2273 = vrot.lane.b32.xlu1 %v2271_v8, %s3313_s19 }
0x15c3   :  { %v2274_v55 = vpop.permute.xlu1 %2273 }
0x15c4   :  { %v4055_v49 = vadd.f32 %v2274_v55, %v2266_v25 }
0x15c6   :  { %v2280_v11 = vand.u32 2139095040, %v4055_v49  ;;  %v2277_v14 = vand.u32 2147483647, %v4055_v49  ;;  %vm2279_vm10 = vcmp.lt.s32.totalorder %v4055_v49, 0  ;;  %vm2369_vm15 = vweird.f32 %v4055_v49 }
0x15c8   :  { %v2281_v15 = vshrl.u32 %v2280_v11, 23  ;;  %v2284_v20 = vand.u32 8388607, %v2277_v14  ;;  %vm2278_vm11 = vcmp.le.f32.partialorder %v2277_v14, 0.7853982 }
0x15ca   :  { %v2890_v53 = vadd.s32 4294967169, %v2281_v15  ;;  %v2285_v35 = vor.u32 8388608, %v2284_v20 }
0x15cc   :  { %v2287_v63 = vadd.s32 1, %v2890_v53  ;;  %v2325_v13 = vshll.u32 %v2285_v35, 8 }
0x15ce   :  { %vm2288_vm4 = vcmp.gt.s32.totalorder %v2287_v63, 0 }
0x15cf   :  { %v2289_v61 = vsel %vm2288_vm4, %v2287_v63, 0 }
0x15d0   :  { %v2291_v18 = vand.u32 31, %v2289_v61  ;;  %v2290_v23 = vshrl.u32 %v2289_v61, 5 }
0x15d2   :  { %v2292_v19 = vsub.s32 32, %v2291_v18  ;;  %v2294_v44 = vshll.u32 %v3307_v28, %v2291_v18  ;;  %v2297_v24 = vshll.u32 %v3308_v30, %v2291_v18  ;;  %v2300_v27 = vshll.u32 %v3309_v33, %v2291_v18 }
0x15d3   :  { %v2303_v31 = vshll.u32 %v3310_v36, %v2291_v18  ;;  %v2306_v4 = vshll.u32 %v3311_v39, %v2291_v18  ;;  %vm2309_vm6 = vcmp.lt.s32.totalorder %v2290_v23, 1  ;;  %vm2312_vm7 = vcmp.lt.s32.totalorder %v2290_v23, 4 }
0x15d4   :  { %v2295_v26 = vshrl.u32 %v3308_v30, %v2292_v19  ;;  %v2298_v38 = vshrl.u32 %v3309_v33, %v2292_v19  ;;  %v2301_v29 = vshrl.u32 %v3310_v36, %v2292_v19  ;;  %v2304_v32 = vshrl.u32 %v3311_v39, %v2292_v19 }
0x15d5   :  { %v2307_v34 = vshrl.u32 %v3312_v42, %v2292_v19  ;;  %v2293_v47 = vshrl.u32 %v3307_v28, %v2292_v19  ;;  %vm2311_vm1 = vcmp.lt.s32.totalorder %v2290_v23, 3  ;;  %vm2310_vm2 = vcmp.lt.s32.totalorder %v2290_v23, 2 }
0x15d6   :  { %v2296_v37 = vor.u32 %v2295_v26, %v2294_v44  ;;  %v2299_v22 = vor.u32 %v2298_v38, %v2297_v24  ;;  %v2302_v40 = vor.u32 %v2301_v29, %v2300_v27  ;;  %v2305_v41 = vor.u32 %v2304_v32, %v2303_v31 }
0x15d7   :  { %v2308_v5 = vor.u32 %v2307_v34, %v2306_v4 }
0x15d8   :  { %v2314_v43 = vsel %vm2312_vm7, %v2302_v40, 2102212464  ;;  %v2317_v45 = vsel %vm2309_vm6, %v2296_v37, %v2299_v22  ;;  %v2321_v46 = vsel %vm2309_vm6, %v2299_v22, %v2302_v40  ;;  %v2318_v48 = vsel %vm2312_vm7, %v2305_v41, 920167782 }
0x15d9   :  { %v2322_v16 = vsel %vm2312_vm7, %v2308_v5, 1326507024  ;;  %v2319_v0 = vsel %vm2311_vm1, %v2302_v40, %v2318_v48  ;;  %v2313_v6 = vsel %vm2309_vm6, %v2293_v47, %v2296_v37  ;;  %v2315_v57 = vsel %vm2311_vm1, %v2299_v22, %v2314_v43 }
0x15da   :  { %v2323_v12 = vsel %vm2311_vm1, %v2305_v41, %v2322_v16  ;;  %v2320_v50 = vsel %vm2310_vm2, %v2317_v45, %v2319_v0  ;;  %v2316_v10 = vsel %vm2310_vm2, %v2313_v6, %v2315_v57  ;;  %v175_v6 = vadd.f32 %v4004_v21, %v3625_v54 }
0x15db   :  { %v2324_v17 = vsel %vm2310_vm2, %v2321_v46, %v2323_v12  ;;  %v4075_v56 = vmul.u32.u64.low %v2325_v13, %v2320_v50  ;;  %v4076_v62 = vmul.u32.u64.high %v2325_v13, %v2320_v50, %v4075_v56  ;;  %v2332_v59 = vmul.u32 %v2325_v13, %v2316_v10 }
0x15dc   :  { %v4072_v58 = vmul.u32.u64.low %v2325_v13, %v2324_v17  ;;  %v4073_v1 = vmul.u32.u64.high %v2325_v13, %v2324_v17, %v4072_v58 }
0x15dd   :  { %v2335_v2 = vadd.s32 1, %v4076_v62 }
0x15de   :  { %vm2334_vm8 = vc.u32 %v4073_v1, %v4075_v56  ;;  %v2333_v61 = vadd.s32 %v4075_v56, %v4073_v1 }
0x15df   :  { %v2336_v3 = vsel %vm2334_vm8, %v2335_v2, %v4076_v62 }
0x15e0   :  { %v2337_v9 = vadd.s32 %v2336_v3, %v2332_v59 }
0x15e2   :  { %v2338_v7 = vadd.s32 536870912, %v2337_v9 }
0x15e4   :  { %v2339_v52 = vshrl.u32 %v2338_v7, 30 }
0x15e6   :  { %v2340_v8 = vshll.u32 %v2339_v52, 30  ;;  %v2363_v32 = vsub.s32 4, %v2339_v52 }
0x15e8   :  { %v2341_v25 = vsub.s32 %v2337_v9, %v2340_v8  ;;  %v2364_v35 = vsel %vm2279_vm10, %v2363_v32, %v2339_v52 }
0x15e9   :  { %v2366_v22 = vsel %vm2278_vm11, 0, %v2364_v35 }
0x15ea   :  { %v2343_v55 = vsub.s32 0, %v2341_v25  ;;  %v2370_v40 = vadd.s32 3, %v2366_v22 }
0x15ec   :  { %v2891_v11 = vmin.u32 %v2343_v55, %v2341_v25  ;;  %v2371_v41 = vand.u32 3, %v2370_v40 }
0x15ee   :  { %v2345_v15 = vclz %v2891_v11  ;;  %vm2376_vm12 = vcmp.eq.s32.totalorder %v2371_v41, 2  ;;  %vm2373_vm13 = vcmp.eq.s32.totalorder %v2371_v41, 0  ;;  %vm2372_vm14 = vcmp.lt.s32.totalorder %v2371_v41, 2 }
0x15f0   :  { %v2892_v53 = vadd.s32 4294967294, %v2345_v15 }
0x15f2   :  { %vm2893_vm9 = vcmp.lt.s32.totalorder %v2892_v53, 0 }
0x15f3   :  { %v2348_v63 = vsel %vm2893_vm9, 0, %v2892_v53 }
0x15f4   :  { %v2349_v18 = vsub.s32 32, %v2348_v63  ;;  %v2353_v19 = vsub.s32 4294967266, %v2348_v63  ;;  %v2350_v20 = vshll.u32 %v2341_v25, %v2348_v63 }
0x15f6   :  { %v2351_v23 = vshrl.u32 %v2333_v61, %v2349_v18  ;;  %v2354_v44 = vadd.s32 127, %v2353_v19 }
0x15f8   :  { %v2352_v24 = vor.u32 %v2351_v23, %v2350_v20  ;;  %v2355_v26 = vshll.u32 %v2354_v44, 23 }
0x15fa   :  { %v2356_v38 = vor.u32 4788187, %v2355_v26  ;;  %v2359_v29 = vcvt.s32.f32 %v2352_v24 }
0x15fc   :  { %v2357_v27 = vand.u32 2147483647, %v2356_v38 }
0x15fe   :  { %v2360_v31 = vmul.f32 %v2359_v29, %v2357_v27 }
0x1600   :  { %v2361_v4 = vxor.u32 2147483648, %v2360_v31 }
0x1602   :  { %v2362_v34 = vsel %vm2279_vm10, %v2361_v4, %v2360_v31 }
0x1603   :  { %v2365_v37 = vsel %vm2278_vm11, %v4055_v49, %v2362_v34 }
0x1604   :  { %3262 = vcosq.f32 %v2365_v37 }
0x1605   :  { %3264 = vsinq.f32 %v2365_v37 }
0x160e   :  { %v3263_v5 = vpop.eup %3262 }
0x160f   :  { %v3265_v43 = vpop.eup %3264  ;;  %v2377_v45 = vxor.u32 2147483648, %v3263_v5 }
0x1610   :  { %v2374_v46 = vxor.u32 2147483648, %v3265_v43 }
0x1611   :  { %v2378_v47 = vsel %vm2376_vm12, %v2377_v45, %v3265_v43 }
0x1612   :  { %v2375_v48 = vsel %vm2373_vm13, %v3263_v5, %v2374_v46 }
0x1613   :  { %v2379_v14 = vsel %vm2372_vm14, %v2375_v48, %v2378_v47 }
0x1614   :  { %v2380_v16 = vsel %vm2369_vm15, nan, %v2379_v14 }
0x1615   :  { %2382 = vrot.lane.b32.xlu0 %v2380_v16, %s3313_s19 }
0x1687   :  { %v2383_v0 = vpop.permute.xlu0 %2382 }
0x1688   :  { %v2385_v12 = vmul.f32 %v2383_v0, %v4043_v51 }
0x168a   :  { %2387 = vrot.lane.b32.xlu1 %v2385_v12, %s3314_s22 }
0x16fc   :  { %v2388_v13 = vpop.permute.xlu1 %2387 }
0x16fd   :  { %2391 = vst.msk [vmem:[#allocation3 + $0x30] sm:$0xff] %vm196_vm5, %v2388_v13  ;;  %3055 = vmatmul.mubr.msk.f32.vlgmr.msra.gmra.mrb[8].mxu1 %vm196_vm5, %v2388_v13 }
0x17d0   :  { %v2462_v57 = vpop.f32.mrb[8].mxu1 }
0x17d1   :  { %v4094_v50 = vadd.f32 %v2462_v57, %v175_v6  ;;  %v3056_v17 = vpop.f32.mrb[9].mxu1 }
0x17d3   :  { %v2470_v58 = vand.u32 2139095040, %v4094_v50  ;;  %v2467_v51 = vand.u32 2147483647, %v4094_v50  ;;  %vm2469_vm9 = vcmp.lt.s32.totalorder %v4094_v50, 0  ;;  %vm2559_vm14 = vweird.f32 %v4094_v50 }
0x17d5   :  { %v2471_v1 = vshrl.u32 %v2470_v58, 23  ;;  %v2474_v59 = vand.u32 8388607, %v2467_v51  ;;  %vm2468_vm10 = vcmp.le.f32.partialorder %v2467_v51, 0.7853982 }
0x17d7   :  { %v2895_v56 = vadd.s32 4294967169, %v2471_v1  ;;  %v2475_v63 = vor.u32 8388608, %v2474_v59 }
0x17d9   :  { %v2477_v62 = vadd.s32 1, %v2895_v56  ;;  %v2515_v4 = vshll.u32 %v2475_v63, 8 }
0x17db   :  { %vm2478_vm3 = vcmp.gt.s32.totalorder %v2477_v62, 0 }
0x17dc   :  { %v2479_v10 = vsel %vm2478_vm3, %v2477_v62, 0 }
0x17dd   :  { %v2481_v2 = vand.u32 31, %v2479_v10  ;;  %v2480_v9 = vshrl.u32 %v2479_v10, 5 }
0x17df   :  { %v2482_v3 = vsub.s32 32, %v2481_v2  ;;  %v2484_v54 = vshll.u32 %v3307_v28, %v2481_v2  ;;  %v2487_v21 = vshll.u32 %v3308_v30, %v2481_v2  ;;  %v2490_v8 = vshll.u32 %v3309_v33, %v2481_v2 }
0x17e0   :  { %v2493_v55 = vshll.u32 %v3310_v36, %v2481_v2  ;;  %v2496_v15 = vshll.u32 %v3311_v39, %v2481_v2  ;;  %vm2499_vm4 = vcmp.lt.s32.totalorder %v2480_v9, 1  ;;  %vm2502_vm6 = vcmp.lt.s32.totalorder %v2480_v9, 4 }
0x17e1   :  { %v2485_v7 = vshrl.u32 %v3308_v30, %v2482_v3  ;;  %v2488_v52 = vshrl.u32 %v3309_v33, %v2482_v3  ;;  %v2491_v25 = vshrl.u32 %v3310_v36, %v2482_v3  ;;  %v2494_v11 = vshrl.u32 %v3311_v39, %v2482_v3 }
0x17e2   :  { %v2497_v53 = vshrl.u32 %v3312_v42, %v2482_v3  ;;  %v2483_v38 = vshrl.u32 %v3307_v28, %v2482_v3  ;;  %vm2501_vm7 = vcmp.lt.s32.totalorder %v2480_v9, 3  ;;  %vm2500_vm1 = vcmp.lt.s32.totalorder %v2480_v9, 2 }
0x17e3   :  { %v2486_v61 = vor.u32 %v2485_v7, %v2484_v54  ;;  %v2489_v18 = vor.u32 %v2488_v52, %v2487_v21  ;;  %v2492_v19 = vor.u32 %v2491_v25, %v2490_v8  ;;  %v2495_v20 = vor.u32 %v2494_v11, %v2493_v55 }
0x17e4   :  { %v2498_v23 = vor.u32 %v2497_v53, %v2496_v15  ;;  %v2899_v2 = vmul.f32 -1.442695, %v4094_v50 }
0x17e5   :  { %v2504_v44 = vsel %vm2502_vm6, %v2492_v19, 2102212464  ;;  %v2507_v24 = vsel %vm2499_vm4, %v2486_v61, %v2489_v18  ;;  %v2511_v26 = vsel %vm2499_vm4, %v2489_v18, %v2492_v19  ;;  %v2508_v27 = vsel %vm2502_vm6, %v2495_v20, 920167782 }
0x17e6   :  { %v2512_v29 = vsel %vm2502_vm6, %v2498_v23, 1326507024  ;;  %v2509_v31 = vsel %vm2501_vm7, %v2492_v19, %v2508_v27  ;;  %v2503_v34 = vsel %vm2499_vm4, %v2483_v38, %v2486_v61  ;;  %v2505_v35 = vsel %vm2501_vm7, %v2489_v18, %v2504_v44 }
0x17e7   :  { %v2513_v32 = vsel %vm2501_vm7, %v2495_v20, %v2512_v29  ;;  %v2510_v37 = vsel %vm2500_vm1, %v2507_v24, %v2509_v31  ;;  %v2506_v45 = vsel %vm2500_vm1, %v2503_v34, %v2505_v35  ;;  %3266 = vpow2.f32 %v2899_v2 }
0x17e8   :  { %v2514_v22 = vsel %vm2500_vm1, %v2511_v26, %v2513_v32  ;;  %v4114_v5 = vmul.u32.u64.low %v2515_v4, %v2510_v37  ;;  %v4115_v43 = vmul.u32.u64.high %v2515_v4, %v2510_v37, %v4114_v5  ;;  %v2522_v47 = vmul.u32 %v2515_v4, %v2506_v45 }
0x17e9   :  { %v4111_v40 = vmul.u32.u64.low %v2515_v4, %v2514_v22  ;;  %v4112_v41 = vmul.u32.u64.high %v2515_v4, %v2514_v22, %v4111_v40 }
0x17ea   :  { %v2525_v46 = vadd.s32 1, %v4115_v43 }
0x17eb   :  { %vm2524_vm2 = vc.u32 %v4112_v41, %v4114_v5  ;;  %v2523_v56 = vadd.s32 %v4114_v5, %v4112_v41 }
0x17ec   :  { %v2526_v48 = vsel %vm2524_vm2, %v2525_v46, %v4115_v43 }
0x17ed   :  { %v2527_v14 = vadd.s32 %v2526_v48, %v2522_v47 }
0x17ef   :  { %v2528_v16 = vadd.s32 536870912, %v2527_v14 }
0x17f1   :  { %v2529_v0 = vshrl.u32 %v2528_v16, 30  ;;  %v3267_v63 = vpop.eup %3266 }
0x17f2   :  { %v2574_v19 = vadd.f32 1.0, %v3267_v63 }
0x17f3   :  { %v2530_v12 = vshll.u32 %v2529_v0, 30  ;;  %v2553_v55 = vsub.s32 4, %v2529_v0 }
0x17f5   :  { %v2531_v13 = vsub.s32 %v2527_v14, %v2530_v12  ;;  %v2554_v53 = vsel %vm2469_vm9, %v2553_v55, %v2529_v0 }
0x17f6   :  { %v2556_v18 = vsel %vm2468_vm10, 0, %v2554_v53 }
0x17f7   :  { %v2533_v6 = vsub.s32 0, %v2531_v13  ;;  %v2560_v20 = vadd.s32 3, %v2556_v18 }
0x17f9   :  { %v2896_v57 = vmin.u32 %v2533_v6, %v2531_v13  ;;  %v2561_v23 = vand.u32 3, %v2560_v20 }
0x17fb   :  { %v2535_v17 = vclz %v2896_v57  ;;  %vm2566_vm11 = vcmp.eq.s32.totalorder %v2561_v23, 2  ;;  %vm2563_vm12 = vcmp.eq.s32.totalorder %v2561_v23, 0  ;;  %vm2562_vm13 = vcmp.lt.s32.totalorder %v2561_v23, 2 }
0x17fd   :  { %v2897_v58 = vadd.s32 4294967294, %v2535_v17 }
0x17ff   :  { %vm2898_vm8 = vcmp.lt.s32.totalorder %v2897_v58, 0 }
0x1800   :  { %v2538_v1 = vsel %vm2898_vm8, 0, %v2897_v58 }
0x1801   :  { %v2539_v62 = vsub.s32 32, %v2538_v1  ;;  %v2543_v10 = vsub.s32 4294967266, %v2538_v1  ;;  %v2540_v59 = vshll.u32 %v2531_v13, %v2538_v1 }
0x1803   :  { %v2541_v3 = vshrl.u32 %v2523_v56, %v2539_v62  ;;  %v2544_v9 = vadd.s32 127, %v2543_v10 }
0x1805   :  { %v2542_v54 = vor.u32 %v2541_v3, %v2540_v59  ;;  %v2545_v21 = vshll.u32 %v2544_v9, 23 }
0x1807   :  { %v2546_v7 = vor.u32 4788187, %v2545_v21  ;;  %v2549_v8 = vcvt.s32.f32 %v2542_v54 }
0x1809   :  { %v2547_v52 = vand.u32 2147483647, %v2546_v7 }
0x180b   :  { %v2550_v25 = vmul.f32 %v2549_v8, %v2547_v52 }
0x180d   :  { %v2551_v11 = vxor.u32 2147483648, %v2550_v25 }
0x180f   :  { %v2552_v15 = vsel %vm2469_vm9, %v2551_v11, %v2550_v25 }
0x1810   :  { %v2555_v61 = vsel %vm2468_vm10, %v4094_v50, %v2552_v15 }
0x1811   :  { %3268 = vcosq.f32 %v2555_v61 }
0x1812   :  { %3270 = vsinq.f32 %v2555_v61 }
0x1813   :  { %3272 = vrcp.f32 %v2574_v19 }
0x181b   :  { %v3269_v44 = vpop.eup %3268 }
0x181c   :  { %v3271_v24 = vpop.eup %3270  ;;  %v2567_v26 = vxor.u32 2147483648, %v3269_v44 }
0x181d   :  { %v2564_v38 = vxor.u32 2147483648, %v3271_v24  ;;  %v3273_v31 = vpop.eup %3272 }
0x181e   :  { %v2568_v27 = vsel %vm2566_vm11, %v2567_v26, %v3271_v24 }
0x181f   :  { %v2565_v51 = vsel %vm2563_vm12, %v3269_v44, %v2564_v38 }
0x1820   :  { %v2569_v29 = vsel %vm2562_vm13, %v2565_v51, %v2568_v27  ;;  %vm2717_vm13 = vcmask 523264  }
0x1821   :  { %v2570_v32 = vsel %vm2559_vm14, nan, %v2569_v29  ;;  %vm2719_vm14 = vcmask 785408  }
0x1822   :  { %v4129_v4 = vsel %vm3448_vm0, %v2570_v32, %v3273_v31 }
0x1823   :  { %2582 = vrot.lane.b32.xlu0 %v4129_v4, %s3313_s19  ;;  %2900 = vst [vmem:[%s4241_s7 + $0x38] sm:$0xff] %v4129_v4  ;;  %v2580_v50 = vmul.f32 %v4129_v4, %v4055_v49 }
0x1895   :  { %v2583_v34 = vpop.permute.xlu0 %2582 }
0x1896   :  { %v2585_v35 = vmul.f32 %v2583_v34, %v4129_v4 }
0x1898   :  { %2587 = vrot.lane.b32.xlu1 %v2585_v35, %s3313_s19 }
0x190a   :  { %v2588_v37 = vpop.permute.xlu1 %2587 }
0x190b   :  { %v4141_v60 = vadd.f32 %v2588_v37, %v2580_v50 }
0x190d   :  { %v2594_v22 = vand.u32 2139095040, %v4141_v60  ;;  %v2591_v43 = vand.u32 2147483647, %v4141_v60  ;;  %vm2593_vm2 = vcmp.lt.s32.totalorder %v4141_v60, 0  ;;  %vm2683_vm12 = vweird.f32 %v4141_v60 }
0x190f   :  { %v2595_v40 = vshrl.u32 %v2594_v22, 23  ;;  %v2598_v47 = vand.u32 8388607, %v2591_v43  ;;  %vm2592_vm8 = vcmp.le.f32.partialorder %v2591_v43, 0.7853982 }
0x1911   :  { %v2901_v41 = vadd.s32 4294967169, %v2595_v40  ;;  %v2599_v56 = vor.u32 8388608, %v2598_v47 }
0x1913   :  { %v2601_v5 = vadd.s32 1, %v2901_v41 }
0x1915   :  { %vm2602_vm0 = vcmp.gt.s32.totalorder %v2601_v5, 0 }
0x1916   :  { %v2603_v45 = vsel %vm2602_vm0, %v2601_v5, 0 }
0x1917   :  { %v2605_v46 = vand.u32 31, %v2603_v45  ;;  %v2604_v14 = vshrl.u32 %v2603_v45, 5 }
0x1919   :  { %v2606_v48 = vsub.s32 32, %v2605_v46  ;;  %v2608_v49 = vshll.u32 %v3307_v28, %v2605_v46  ;;  %v2611_v16 = vshll.u32 %v3308_v30, %v2605_v46  ;;  %v2614_v13 = vshll.u32 %v3309_v33, %v2605_v46 }
0x191a   :  { %v2617_v57 = vshll.u32 %v3310_v36, %v2605_v46  ;;  %v2620_v58 = vshll.u32 %v3311_v39, %v2605_v46  ;;  %vm2623_vm15 = vcmp.lt.s32.totalorder %v2604_v14, 1  ;;  %vm2626_vm3 = vcmp.lt.s32.totalorder %v2604_v14, 4 }
0x191b   :  { %v2609_v0 = vshrl.u32 %v3308_v30, %v2606_v48  ;;  %v2612_v12 = vshrl.u32 %v3309_v33, %v2606_v48  ;;  %v2615_v6 = vshrl.u32 %v3310_v36, %v2606_v48  ;;  %v2618_v17 = vshrl.u32 %v3311_v39, %v2606_v48 }
0x191c   :  { %v2621_v1 = vshrl.u32 %v3312_v42, %v2606_v48  ;;  %v2607_v54 = vshrl.u32 %v3307_v28, %v2606_v48  ;;  %vm2625_vm4 = vcmp.lt.s32.totalorder %v2604_v14, 3  ;;  %vm2624_vm6 = vcmp.lt.s32.totalorder %v2604_v14, 2 }
0x191d   :  { %v2610_v62 = vor.u32 %v2609_v0, %v2608_v49  ;;  %v2613_v10 = vor.u32 %v2612_v12, %v2611_v16  ;;  %v2616_v2 = vor.u32 %v2615_v6, %v2614_v13  ;;  %v2619_v59 = vor.u32 %v2618_v17, %v2617_v57 }
0x191e   :  { %v2622_v30 = vor.u32 %v2621_v1, %v2620_v58  ;;  %v2639_v42 = vshll.u32 %v2599_v56, 8 }
0x191f   :  { %v2628_v3 = vsel %vm2626_vm3, %v2616_v2, 2102212464  ;;  %v2631_v33 = vsel %vm2623_vm15, %v2610_v62, %v2613_v10  ;;  %v2635_v9 = vsel %vm2623_vm15, %v2613_v10, %v2616_v2  ;;  %v2632_v36 = vsel %vm2626_vm3, %v2619_v59, 920167782 }
0x1920   :  { %v2636_v21 = vsel %vm2626_vm3, %v2622_v30, 1326507024  ;;  %v2633_v39 = vsel %vm2625_vm4, %v2616_v2, %v2632_v36  ;;  %v2627_v52 = vsel %vm2623_vm15, %v2607_v54, %v2610_v62  ;;  %v2629_v8 = vsel %vm2625_vm4, %v2613_v10, %v2628_v3  ;;  %v2722_v2 = vld [vmem:[#allocation3] sm:$0xff]  ;;  %v2724_v3 = vld [vmem:[#allocation3 + $0x10] sm:$0xff]  ;;  %v2725_v54 = vld [vmem:[#allocation3 + $0x18] sm:$0xff] }
0x1921   :  { %v2637_v7 = vsel %vm2625_vm4, %v2619_v59, %v2636_v21  ;;  %v2634_v25 = vsel %vm2624_vm6, %v2631_v33, %v2633_v39  ;;  %v2630_v61 = vsel %vm2624_vm6, %v2627_v52, %v2629_v8  ;;  %v2905_v59 = vld [vmem:[%s4238_s4] ss:$0 sm:$0xff]  ;;  %v2727_v39 = vld [vmem:[#allocation3 + $0x28] sm:$0xff] }
0x1922   :  { %v2638_v55 = vsel %vm2624_vm6, %v2635_v9, %v2637_v7  ;;  %v4161_v53 = vmul.u32.u64.low %v2639_v42, %v2634_v25  ;;  %v4162_v63 = vmul.u32.u64.high %v2639_v42, %v2634_v25, %v4161_v53  ;;  %v2646_v18 = vmul.u32 %v2639_v42, %v2630_v61  ;;  %v2728_v61 = vld [vmem:[#allocation3 + $0x30] sm:$0xff] }
0x1923   :  { %v4158_v11 = vmul.u32.u64.low %v2639_v42, %v2638_v55  ;;  %v4159_v15 = vmul.u32.u64.high %v2639_v42, %v2638_v55, %v4158_v11  ;;  %v2737_v30 = vmul.f32 %v2905_v59, %v2722_v2  ;;  %v2739_v9 = vmul.f32 %v2905_v59, %v2724_v3  ;;  %v2723_v55 = vld [vmem:[#allocation3 + $0x8] sm:$0xff] }
0x1924   :  { %v2649_v28 = vadd.s32 1, %v4162_v63  ;;  %v2740_v21 = vmul.f32 %v2905_v59, %v2725_v54  ;;  %v2742_v42 = vmul.f32 %v2905_v59, %v2727_v39  ;;  %v2738_v11 = vmul.f32 %v2905_v59, %v2723_v55 }
0x1925   :  { %vm2648_vm7 = vc.u32 %v4159_v15, %v4161_v53  ;;  %v2647_v32 = vadd.s32 %v4161_v53, %v4159_v15  ;;  %v2745_v33 = vsel %vm196_vm5, %v2737_v30, 0.0  ;;  %v2751_v36 = vsel %vm196_vm5, %v2739_v9, 0.0  ;;  %v2726_v15 = vld [vmem:[#allocation3 + $0x20] sm:$0xff] }
0x1926   :  { %v2650_v19 = vsel %vm2648_vm7, %v2649_v28, %v4162_v63  ;;  %v2754_v7 = vsel %vm196_vm5, %v2740_v21, 0.0  ;;  %v2760_v52 = vsel %vm196_vm5, %v2742_v42, 0.0  ;;  %v2748_v53 = vsel %vm196_vm5, %v2738_v11, 0.0 }
0x1927   :  { %v2651_v20 = vadd.s32 %v2650_v19, %v2646_v18  ;;  %v2741_v63 = vmul.f32 %v2905_v59, %v2726_v15  ;;  %v2743_v18 = vmul.f32 %v2905_v59, %v2728_v61 }
0x1929   :  { %v2652_v23 = vadd.s32 536870912, %v2651_v20  ;;  %v2757_v28 = vsel %vm196_vm5, %v2741_v63, 0.0  ;;  %v2763_v19 = vsel %vm196_vm5, %v2743_v18, 0.0 }
0x192b   :  { %v2653_v44 = vshrl.u32 %v2652_v23, 30 }
0x192d   :  { %v2654_v24 = vshll.u32 %v2653_v44, 30  ;;  %v2677_v48 = vsub.s32 4, %v2653_v44 }
0x192f   :  { %v2655_v26 = vsub.s32 %v2651_v20, %v2654_v24  ;;  %v2678_v16 = vsel %vm2593_vm2, %v2677_v48, %v2653_v44 }
0x1930   :  { %v2680_v12 = vsel %vm2592_vm8, 0, %v2678_v16 }
0x1931   :  { %v2657_v38 = vsub.s32 0, %v2655_v26  ;;  %v2684_v13 = vadd.s32 3, %v2680_v12 }
0x1933   :  { %v2902_v27 = vmin.u32 %v2657_v38, %v2655_v26  ;;  %v2685_v6 = vand.u32 3, %v2684_v13 }
0x1935   :  { %v2659_v51 = vclz %v2902_v27  ;;  %vm2690_vm9 = vcmp.eq.s32.totalorder %v2685_v6, 2  ;;  %vm2687_vm10 = vcmp.eq.s32.totalorder %v2685_v6, 0  ;;  %vm2686_vm11 = vcmp.lt.s32.totalorder %v2685_v6, 2 }
0x1937   :  { %v2903_v29 = vadd.s32 4294967294, %v2659_v51 }
0x1939   :  { %vm2904_vm1 = vcmp.lt.s32.totalorder %v2903_v29, 0 }
0x193a   :  { %v2662_v31 = vsel %vm2904_vm1, 0, %v2903_v29 }
0x193b   :  { %v2663_v34 = vsub.s32 32, %v2662_v31  ;;  %v2667_v35 = vsub.s32 4294967266, %v2662_v31  ;;  %v2664_v50 = vshll.u32 %v2655_v26, %v2662_v31 }
0x193d   :  { %v2665_v37 = vshrl.u32 %v2647_v32, %v2663_v34  ;;  %v2668_v22 = vadd.s32 127, %v2667_v35 }
0x193f   :  { %v2666_v40 = vor.u32 %v2665_v37, %v2664_v50  ;;  %v2669_v41 = vshll.u32 %v2668_v22, 23 }
0x1941   :  { %v2670_v5 = vor.u32 4788187, %v2669_v41  ;;  %v2673_v46 = vcvt.s32.f32 %v2666_v40 }
0x1943   :  { %v2671_v45 = vand.u32 2147483647, %v2670_v5 }
0x1945   :  { %v2674_v47 = vmul.f32 %v2673_v46, %v2671_v45 }
0x1947   :  { %v2675_v14 = vxor.u32 2147483648, %v2674_v47 }
0x1949   :  { %v2676_v49 = vsel %vm2593_vm2, %v2675_v14, %v2674_v47 }
0x194a   :  { %v2679_v0 = vsel %vm2592_vm8, %v4141_v60, %v2676_v49 }
0x194b   :  { %3274 = vcosq.f32 %v2679_v0 }
0x194c   :  { %3276 = vsinq.f32 %v2679_v0 }
0x1955   :  { %v3275_v57 = vpop.eup %3274 }
0x1956   :  { %v3277_v17 = vpop.eup %3276  ;;  %v2691_v58 = vxor.u32 2147483648, %v3275_v57 }
0x1957   :  { %v2688_v1 = vxor.u32 2147483648, %v3277_v17 }
0x1958   :  { %v2692_v56 = vsel %vm2690_vm9, %v2691_v58, %v3277_v17 }
0x1959   :  { %v2689_v62 = vsel %vm2687_vm10, %v3275_v57, %v2688_v1 }
0x195a   :  { %v2693_v43 = vsel %vm2686_vm11, %v2689_v62, %v2692_v56 }
0x195b   :  { %v2694_v10 = vsel %vm2683_vm12, nan, %v2693_v43 }
0x195c   :  { %2696 = vrot.lane.b32.xlu0 %v2694_v10, %s3313_s19 }
0x197b   :  { %2746 = vadd.xlane.f32.xlu0 %v2745_v33 }
0x197f   :  { %2752 = vadd.xlane.f32.xlu0 %v2751_v36 }
0x1983   :  { %2755 = vadd.xlane.f32.xlu0 %v2754_v7 }
0x1987   :  { %2761 = vadd.xlane.f32.xlu0 %v2760_v52 }
0x19ce   :  { %v2697_v8 = vpop.permute.xlu0 %2696 }
0x19cf   :  { %v2699_v25 = vmul.f32 %v2697_v8, %v4129_v4  ;;  %v2770_v4 = vstv %s4239_s5 }
0x19d1   :  { %2701 = vrot.lane.b32.xlu1 %v2699_v25, %s3314_s22 }
0x19f5   :  { %2749 = vadd.xlane.f32.xlu1 %v2748_v53 }
0x19f9   :  { %2758 = vadd.xlane.f32.xlu1 %v2757_v28 }
0x19fd   :  { %2764 = vadd.xlane.f32.xlu1 %v2763_v19 }
0x1a08   :  { %v2747_v20 = vpop.xlane.xlu0 %2746 }
0x1a09   :  { %v2771_v23 = vadd.f32 %v2770_v4, %v2747_v20 }
0x1a0b   :  { %2779 = vst [vmem:[%s4240_s6] sm:$0xff] %v2771_v23 }
0x1a0c   :  { %v2753_v44 = vpop.xlane.xlu0 %2752 }
0x1a0d   :  { %v2773_v24 = vadd.f32 %v2770_v4, %v2753_v44 }
0x1a0e   :  { %2707 = vrot.lane.b32.xlu1 %v4141_v60, %s3314_s22  ;;  %s3315_s22 = smov 64  }
0x1a0f   :  { %2781 = vst [vmem:[%s4240_s6 + $0x10] sm:$0xff] %v2773_v24 }
0x1a10   :  { %v2756_v26 = vpop.xlane.xlu0 %2755 }
0x1a11   :  { %v2774_v38 = vadd.f32 %v2770_v4, %v2756_v26 }
0x1a12   :  { %2713 = vrot.lane.b32.xlu1 %v4141_v60, %s3313_s19 }
0x1a13   :  { %2782 = vst [vmem:[%s4240_s6 + $0x18] sm:$0xff] %v2774_v38 }
0x1a14   :  { %v2762_v27 = vpop.xlane.xlu0 %2761 }
0x1a15   :  { %v2776_v51 = vadd.f32 %v2770_v4, %v2762_v27 }
0x1a17   :  { %2784 = vst [vmem:[%s4240_s6 + $0x28] sm:$0xff] %v2776_v51 }
0x1a43   :  { %v2702_v29 = vpop.permute.xlu1 %2701 }
0x1a44   :  { %2705 = vst.msk [vmem:[#allocation3 + $0x38] sm:$0xff] %vm196_vm5, %v2702_v29 }
0x1a4b   :  { %v2729_v31 = vld [vmem:[#allocation3 + $0x38] sm:$0xff] }
0x1a4c   :  { %v2744_v32 = vmul.f32 %v2905_v59, %v2729_v31 }
0x1a4e   :  { %v2766_v34 = vsel %vm196_vm5, %v2744_v32, 0.0 }
0x1a4f   :  { %2767 = vadd.xlane.f32.xlu0 %v2766_v34 }
0x1a65   :  { %2710 = vrot.lane.b32.xlu0 %v4141_v60, %s3315_s22 }
0x1a82   :  { %v2750_v35 = vpop.xlane.xlu1 %2749 }
0x1a83   :  { %v2772_v50 = vadd.f32 %v2770_v4, %v2750_v35 }
0x1a85   :  { %2780 = vst [vmem:[%s4240_s6 + $0x8] sm:$0xff] %v2772_v50 }
0x1a86   :  { %v2759_v37 = vpop.xlane.xlu1 %2758 }
0x1a87   :  { %v2775_v22 = vadd.f32 %v2770_v4, %v2759_v37 }
0x1a89   :  { %2783 = vst [vmem:[%s4240_s6 + $0x20] sm:$0xff] %v2775_v22 }
0x1a8a   :  { %v2765_v40 = vpop.xlane.xlu1 %2764 }
0x1a8b   :  { %v2777_v41 = vadd.f32 %v2770_v4, %v2765_v40 }
0x1a8d   :  { %2785 = vst [vmem:[%s4240_s6 + $0x30] sm:$0xff] %v2777_v41 }
0x1a8e   :  { %v2708_v5 = vpop.permute.xlu1 %2707 }
0x1a8f   :  { %v2716_v47 = vsel %vm196_vm5, %v4141_v60, %v2708_v5 }
0x1a92   :  { %v2714_v14 = vpop.permute.xlu1 %2713 }
0x1adc   :  { %v2768_v45 = vpop.xlane.xlu0 %2767 }
0x1add   :  { %v2778_v46 = vadd.f32 %v2770_v4, %v2768_v45 }
0x1adf   :  { %2786 = vst [vmem:[%s4240_s6 + $0x38] sm:$0xff] %v2778_v46 }
0x1ae0   :  { %v2711_v48 = vpop.permute.xlu0 %2710 }
0x1ae1   :  { %v2718_v49 = vsel %vm2717_vm13, %v2716_v47, %v2711_v48 }
0x1ae2   :  { %v2720_v16 = vsel %vm2719_vm14, %v2718_v49, %v2714_v14 }
0x1ae3   :  { %2721 = vst [vmem:[#allocation5] sm:$0xff] %v2720_v16 }
0x1ae4   :  { %3291 = shalt.err (!%p3288_p4)
}
0x1ae5   :  { %s3292_s6 = scalar_lea.hbm %s4242_s8, 128 }
0x1ae6   :  { %p3293_p5 = scmp.ne.s32.totalorder %s4242_s8, %s3292_s6  ;;  %p3296_p6 = scmp.lt.u32.totalorder %s3292_s6, %s4242_s8 }
0x1ae8   :  { %p3298_p7 = pnand %p3296_p6, %p3293_p5 }
0x1aea   :  { %3301 = shalt.err (!%p3298_p7)
}
0x1aeb   :  { %2800 = dma.vmem_to_hbm [thread:$0]  %s2798_s20, 128, %s4242_s8, [#allocation6]  }
0x1aec   :  { %3302 = dma.done.wait [#allocation6], 128  }
0x1aed   :  { %3303 = vsyncadd [#allocation6], 4294967168 }
0x1aee   :  { %2808 = vsyncpa [#allocation6], 1 }

</bundles_post_ra>
